<compile_context>
chip_gen: v7x
topology: tpu7x:2x2x1
jax: 0.10.0
libtpu: 0.0.40
codegen_flags: <defaults>
</compile_context>

<pallas_src>
import functools

import numpy as np
import jax
import jax.numpy as jnp
from jax.experimental import pallas as pl
from jax.experimental.pallas import tpu as pltpu


# --------------------------------------------------------------------------
# Small helpers
# --------------------------------------------------------------------------
def _largest_divisor(n, cap):
    d = min(n, cap)
    while n % d:
        d -= 1
    return max(d, 1)


def _row_tile(n, cap=512):
    """Row-tile for the batched matmul kernel (divides n; multiple of 8 if tiled)."""
    if n <= cap:
        return n
    for d in range(cap, 7, -1):
        if n % d == 0 and d % 8 == 0:
            return d
    return n


def _nbytes(shape, dtype):
    return int(np.prod(shape)) * np.dtype(dtype).itemsize


def _vmem_limit(*entries):
    """Explicit scoped-VMEM budget from block footprints (double-buffered) + headroom."""
    total = sum(_nbytes(s, d) for s, d in entries)
    return int(min(max(2 * total + (4 << 20), 16 << 20), 48 << 20))


# --------------------------------------------------------------------------
# Batched linear kernel:  Y = X @ W + b   (bf16 MXU operands, f32 accumulate)
# Used for the LSTM input projections (all timesteps at once) and the
# attention q/k projections (all batch elements at once).
# --------------------------------------------------------------------------
def _linear_kernel(x_ref, w_ref, b_ref, o_ref):
    x = x_ref[...].astype(jnp.bfloat16)                       # cast at the MXU
    o_ref[...] = (jnp.dot(x, w_ref[...], preferred_element_type=jnp.float32)
                  + b_ref[...])


def linear_pallas(x2d, w_bf16, bias_f32):
    """x2d: (N, IN) f32; w_bf16: (IN, OUT) bf16; bias: (1, OUT) f32 -> (N, OUT) f32."""
    N, IN = x2d.shape
    OUT = w_bf16.shape[1]
    rt = _row_tile(N)
    vmem = _vmem_limit(((rt, IN), jnp.float32), ((IN, OUT), jnp.bfloat16),
                       ((1, OUT), jnp.float32), ((rt, OUT), jnp.float32))
    return pl.pallas_call(
        _linear_kernel,
        out_shape=jax.ShapeDtypeStruct((N, OUT), jnp.float32),
        grid_spec=pltpu.PrefetchScalarGridSpec(
            num_scalar_prefetch=0,
            grid=(N // rt,),
            in_specs=[
                pl.BlockSpec((rt, IN), lambda i: (i, 0)),
                pl.BlockSpec((IN, OUT), lambda i: (0, 0)),   # resident weight
                pl.BlockSpec((1, OUT), lambda i: (0, 0)),
            ],
            out_specs=pl.BlockSpec((rt, OUT), lambda i: (i, 0)),
        ),
        compiler_params=pltpu.CompilerParams(
            dimension_semantics=("parallel",),
            vmem_limit_bytes=vmem),
    )(x2d, w_bf16, bias_f32)


# --------------------------------------------------------------------------
# Recurrent LSTM kernel: K timesteps per grid step, only h @ W_hh inside the
# recurrence (input gates are precomputed).  Optionally fuses a residual add.
# --------------------------------------------------------------------------
def _lstm_recur_kernel(gx_ref, whh_ref, *rest, residual):
    if residual:
        res_ref, o_ref, h_sc, c_sc = rest
    else:
        o_ref, h_sc, c_sc = rest

    @pl.when(pl.program_id(0) == 0)
    def _():
        h_sc[...] = jnp.zeros_like(h_sc)
        c_sc[...] = jnp.zeros_like(c_sc)

    H = h_sc.shape[-1]
    K = gx_ref.shape[0]
    whh = whh_ref[...]                                        # (H, 4H) bf16, resident
    h = h_sc[...]
    c = c_sc[...]
    for r in range(K):                                        # static unroll over block
        gates = gx_ref[r] + jnp.dot(h.astype(jnp.bfloat16), whh,
                                    preferred_element_type=jnp.float32)
        i = jax.nn.sigmoid(gates[:, 0:H])
        f = jax.nn.sigmoid(gates[:, H:2 * H])
        g = jnp.tanh(gates[:, 2 * H:3 * H])
        o = jax.nn.sigmoid(gates[:, 3 * H:4 * H])
        c = f * c + i * g
        h = o * jnp.tanh(c)
        if residual:
            o_ref[r] = h + res_ref[r]
        else:
            o_ref[r] = h
    h_sc[...] = h
    c_sc[...] = c


def lstm_pallas(x, wih_bf16, whh_bf16, bias_f32, residual=None):
    """x: (T, B, H) f32; wih/whh: (H, 4H) bf16; bias: (1, 4H) f32 (= b_ih + b_hh).
    Zero initial (h, c).  Returns hidden states (plus residual if given)."""
    T, B, H = x.shape

    # (1) input projection for all timesteps as one big MXU matmul.
    gx = linear_pallas(x.reshape(T * B, H), wih_bf16, bias_f32)
    gx = gx.reshape(T, B, 4 * H)

    # (2) sequential recurrence, K timesteps per grid step.
    K = _largest_divisor(T, 8)
    kern = functools.partial(_lstm_recur_kernel, residual=residual is not None)
    in_specs = [
        pl.BlockSpec((K, B, 4 * H), lambda t: (t, 0, 0)),
        # constant index_map -> weight stays VMEM-resident across the grid.
        # TODO(synk): at real H=1024 add pipeline_mode=pl.Buffered(1) so the
        # resident recurrent weight is single-buffered (halves its VMEM on v7x).
        pl.BlockSpec((H, 4 * H), lambda t: (0, 0)),
    ]
    args = [gx, whh_bf16]
    if residual is not None:
        in_specs.append(pl.BlockSpec((K, B, H), lambda t: (t, 0, 0)))
        args.append(residual)
    vmem = _vmem_limit(((K, B, 4 * H), jnp.float32), ((H, 4 * H), jnp.bfloat16),
                       ((K, B, H), jnp.float32), ((K, B, H), jnp.float32),
                       ((B, H), jnp.float32), ((B, H), jnp.float32))
    return pl.pallas_call(
        kern,
        out_shape=jax.ShapeDtypeStruct((T, B, H), jnp.float32),
        grid_spec=pltpu.PrefetchScalarGridSpec(
            num_scalar_prefetch=0,
            grid=(T // K,),
            in_specs=in_specs,
            out_specs=pl.BlockSpec((K, B, H), lambda t: (t, 0, 0)),
            scratch_shapes=[pltpu.VMEM((B, H), jnp.float32),
                            pltpu.VMEM((B, H), jnp.float32)],
        ),
        compiler_params=pltpu.CompilerParams(
            dimension_semantics=("arbitrary",),   # true time recurrence
            vmem_limit_bytes=vmem),
    )(*args)


# --------------------------------------------------------------------------
# Embedding: DMA row gather from an HBM-resident table (padding_idx=0 handled
# by a zeroed row 0).  ids are scalar-prefetched into SMEM; each grid step
# issues RB concurrent row DMAs.
# --------------------------------------------------------------------------
def _embed_gather_kernel(ids_ref, table_ref, o_ref, buf, sems):
    blk = pl.program_id(0)
    RB = o_ref.shape[0]
    base = blk * RB
    copies = []
    for r in range(RB):                                        # static unroll
        row = ids_ref[base + r]
        cp = pltpu.make_async_copy(table_ref.at[pl.ds(row, 1)],
                                   buf.at[pl.ds(r, 1)],
                                   sems.at[r])
        cp.start()
        copies.append(cp)
    for cp in copies:
        cp.wait()
    o_ref[...] = buf[...]


def embedding_pallas(ids, table):
    """ids: (T, B) int32; table: (V, H) f32 with row 0 == 0.  Returns (T, B, H)."""
    T, B = ids.shape
    V, H = table.shape
    N = T * B
    RB = 8                                                     # rows per grid step
    N_pad = ((N + RB - 1) // RB) * RB
    flat = ids.reshape(N)
    if N_pad != N:
        flat = jnp.concatenate([flat, jnp.zeros((N_pad - N,), jnp.int32)])
    vmem = _vmem_limit(((RB, H), table.dtype), ((RB, H), table.dtype))
    out = pl.pallas_call(
        _embed_gather_kernel,
        out_shape=jax.ShapeDtypeStruct((N_pad, H), table.dtype),
        grid_spec=pltpu.PrefetchScalarGridSpec(
            num_scalar_prefetch=1,                  # ids -> SMEM
            grid=(N_pad // RB,),
            in_specs=[pl.BlockSpec(memory_space=pl.ANY)],   # table stays in HBM
            out_specs=pl.BlockSpec((RB, H), lambda i, ids: (i, 0)),
            scratch_shapes=[pltpu.VMEM((RB, H), table.dtype),
                            pltpu.SemaphoreType.DMA((RB,))],
        ),
        compiler_params=pltpu.CompilerParams(
            dimension_semantics=("arbitrary",),
            vmem_limit_bytes=vmem),
    )(flat, table)
    return out[:N].reshape(T, B, H)


# --------------------------------------------------------------------------
# Normalized Bahdanau attention.  Projections pq = q@Wq, pk = k@Wk + nbias and
# the v-vector normalization are hoisted out of the per-batch grid; the kernel
# only does tanh-combine (chunked over keys), masked softmax and the context
# matmul.
# --------------------------------------------------------------------------
def _attn_kernel(lens_ref, pq_ref, pk_ref, k_ref, v_ref, o_ref, *, tk_chunk):
    b = pl.program_id(0)
    length = lens_ref[b]                                       # scalar (SMEM)
    pq = pq_ref[0]                                             # (Tq, U) f32
    pk = pk_ref[0]                                             # (Tk, U) f32 (nbias folded)
    keys = k_ref[0]                                            # (Tk, H) f32
    v = v_ref[...]                                             # (1, U) normalized att vec
    Tq = pq.shape[0]
    Tk = pk.shape[0]

    # Additive scores, chunked over the key axis so the (Tq, chunk, U) tanh
    # intermediate stays bounded at real sequence lengths.
    parts = []
    for c0 in range(0, Tk, tk_chunk):
        pk_c = pk[c0:c0 + tk_chunk, :]
        t = jnp.tanh(pq[:, None, :] + pk_c[None, :, :])        # (Tq, C, U)
        parts.append(jnp.sum(t * v[None, :, :], axis=-1))      # (Tq, C)
    scores = parts[0] if len(parts) == 1 else jnp.concatenate(parts, axis=-1)

    kidx = jax.lax.broadcasted_iota(jnp.int32, (Tq, Tk), 1)
    scores = jnp.where(kidx < length, scores, -1e30)           # masked_fill_
    m = jnp.max(scores, axis=-1, keepdims=True)
    e = jnp.exp(scores - m)
    p = e / jnp.sum(e, axis=-1, keepdims=True)                 # softmax over keys

    o_ref[0] = jnp.dot(p.astype(jnp.bfloat16), keys.astype(jnp.bfloat16),
                       preferred_element_type=jnp.float32)     # (Tq, H)


def attention_pallas(q_tm, k_tm, lens, wq_bf16, wk_bf16, watt, nbias, nscal):
    """q_tm: (Tq, B, H) time-major query; k_tm: (Tk, B, H) time-major keys;
    lens: (B,) int32.  Returns time-major context (Tq, B, H)."""
    Tq, B, H = q_tm.shape
    Tk = k_tm.shape[0]
    U = wq_bf16.shape[1]

    # Layout plumbing done by XLA: the per-batch kernel works batch-first
    # (time-major per-batch blocks would violate the (8,128) block constraint).
    q_bf = jnp.transpose(q_tm, (1, 0, 2))                      # (B, Tq, H)
    k_bf = jnp.transpose(k_tm, (1, 0, 2))                      # (B, Tk, H)

    # Hoisted projections: one near-roofline matmul each, nbias folded into pk.
    zero_b = jnp.zeros((1, U), jnp.float32)
    pq = linear_pallas(q_bf.reshape(B * Tq, H), wq_bf16, zero_b).reshape(B, Tq, U)
    pk = linear_pallas(k_bf.reshape(B * Tk, H), wk_bf16, nbias).reshape(B, Tk, U)

    # Hoisted, batch-invariant normalization of the attention vector.
    v = watt * (nscal[0, 0] * jax.lax.rsqrt(jnp.sum(watt * watt)))   # (1, U)

    tk_chunk = _largest_divisor(Tk, 128)
    kern = functools.partial(_attn_kernel, tk_chunk=tk_chunk)
    vmem = _vmem_limit(((1, Tq, U), jnp.float32), ((1, Tk, U), jnp.float32),
                       ((1, Tk, H), jnp.float32), ((1, U), jnp.float32),
                       ((1, Tq, H), jnp.float32),
                       ((Tq, tk_chunk, U), jnp.float32))
    ctx_bf = pl.pallas_call(
        kern,
        out_shape=jax.ShapeDtypeStruct((B, Tq, H), jnp.float32),
        grid_spec=pltpu.PrefetchScalarGridSpec(
            num_scalar_prefetch=1,                 # lens -> SMEM
            grid=(B,),
            in_specs=[
                pl.BlockSpec((1, Tq, U), lambda b, lens: (b, 0, 0)),
                pl.BlockSpec((1, Tk, U), lambda b, lens: (b, 0, 0)),
                pl.BlockSpec((1, Tk, H), lambda b, lens: (b, 0, 0)),
                pl.BlockSpec((1, U), lambda b, lens: (0, 0)),
            ],
            out_specs=pl.BlockSpec((1, Tq, H), lambda b, lens: (b, 0, 0)),
        ),
        compiler_params=pltpu.CompilerParams(
            dimension_semantics=("parallel",),
            vmem_limit_bytes=vmem),
    )(lens, pq, pk, k_bf, v)
    return jnp.transpose(ctx_bf, (1, 0, 2))                    # (Tq, B, H)


# --------------------------------------------------------------------------
# Parameter init (deterministic, synthetic; shapes follow the module with a
# scaled-down hidden size / vocab).  MXU weights stored in bf16.
# --------------------------------------------------------------------------
def init_params(key, H, V):
    ks = jax.random.split(key, 13)

    def u(k, shape, scale=0.08, dtype=jnp.float32):
        return jax.random.uniform(k, shape, jnp.float32, -scale, scale).astype(dtype)

    bf = jnp.bfloat16
    params = {
        # layer6: LSTM(H, H)
        "l6_wih": u(ks[0], (H, 4 * H), dtype=bf), "l6_whh": u(ks[1], (H, 4 * H), dtype=bf),
        "l6_b": u(ks[2], (1, 4 * H)),
        # layer12: LSTM(H, H)
        "l12_wih": u(ks[3], (H, 4 * H), dtype=bf), "l12_whh": u(ks[4], (H, 4 * H), dtype=bf),
        "l12_b": u(ks[5], (1, 4 * H)),
        # layer15.rnn: LSTM(H, H)
        "l15_wih": u(ks[6], (H, 4 * H), dtype=bf), "l15_whh": u(ks[7], (H, 4 * H), dtype=bf),
        "l15_b": u(ks[8], (1, 4 * H)),
        # layer15.attn: BahdanauAttention(H, H, H, normalize=True)
        "att_wq": u(ks[9], (H, H), 0.1, dtype=bf),
        "att_wk": u(ks[10], (H, H), 0.1, dtype=bf),
        "att_v": u(ks[11], (1, H), 0.1),                       # linear_att (f32: VPU math)
        "att_nbias": jnp.zeros((1, H), jnp.float32),           # normalize_bias
        "att_nscal": jnp.full((1, 1), float(1.0 / (H ** 0.5)), jnp.float32),
    }
    # layer9: Embedding(V, H, padding_idx=0) -> row 0 is zero
    emb = u(ks[12], (V, H), 0.1)
    params["l9_emb"] = emb.at[0].set(0.0)
    return params


# --------------------------------------------------------------------------
# Stage1 forward (mirrors the PyTorch graph).
# --------------------------------------------------------------------------
def stage1_forward(params, input0, input2, input3, input1):
    # input0: (T_enc, B, H) encoder features
    # input1: (T_enc, B, H) residual features
    # input2: (B,) int32 encoder lengths
    # input3: (T_dec, B) int32 decoder token ids
    # out6/out7 = layer6 LSTM + residual
    out7 = lstm_pallas(input0, params["l6_wih"], params["l6_whh"],
                       params["l6_b"], residual=input1)
    # layer11 Dropout(p=0.2): identity in eval mode
    out11 = out7
    # out12/out13 = layer12 LSTM + residual
    out13 = lstm_pallas(out11, params["l12_wih"], params["l12_whh"],
                        params["l12_b"], residual=out7)
    # out9 = layer9 embedding (DMA gather)
    out9 = embedding_pallas(input3, params["l9_emb"])          # (T_dec, B, H)

    # layer15 RecurrentAttention: decoder LSTM (hidden=None -> zeros)
    rnn_out = lstm_pallas(out9, params["l15_wih"], params["l15_whh"],
                          params["l15_b"])
    # Bahdanau attention over encoder keys, masked by context lengths
    attn_out = attention_pallas(rnn_out, out13, input2,
                                params["att_wq"], params["att_wk"],
                                params["att_v"], params["att_nbias"],
                                params["att_nscal"])
    # RecurrentAttention's dropout: identity in eval mode
    # Stage1 returns (out15[2], out15[0]) = (attn_outputs, rnn_outputs)
    return attn_out, rnn_out


if __name__ == "__main__":
    # Small stand-ins for (hidden=1024, vocab=32320)
    H = 128
    V = 512
    B = 8
    T_ENC = 12
    T_DEC = 8

    key = jax.random.PRNGKey(0)
    kp, k0, k1, k3, k2 = jax.random.split(key, 5)
    params = init_params(kp, H, V)

    input0 = jax.random.normal(k0, (T_ENC, B, H), jnp.float32)
    input1 = jax.random.normal(k1, (T_ENC, B, H), jnp.float32)
    input3 = jax.random.randint(k3, (T_DEC, B), 1, V, dtype=jnp.int32)
    input2 = jax.random.randint(k2, (B,), 1, T_ENC + 1, dtype=jnp.int32)  # lens >= 1

    fwd = jax.jit(functools.partial(stage1_forward, params))
    attn_out, rnn_out = fwd(input0, input2, input3, input1)
    jax.block_until_ready((attn_out, rnn_out))

    assert attn_out.shape == (T_DEC, B, H) and attn_out.dtype == jnp.float32
    assert rnn_out.shape == (T_DEC, B, H) and rnn_out.dtype == jnp.float32
    print("KERNEL_OK")
</pallas_src>

<mosaic_0001>
module attributes {stable_mosaic.version = 11 : i64} {
  func.func @_linear_kernel(%arg0: i32, %arg1: memref<96x128xf32, #tpu.memory_space<vmem>>, %arg2: memref<128x512xbf16, #tpu.memory_space<vmem>>, %arg3: memref<1x512xf32, #tpu.memory_space<vmem>>, %arg4: memref<96x512xf32, #tpu.memory_space<vmem>>) attributes {dimension_semantics = [#tpu.dimension_semantics<parallel>], iteration_bounds = array<i64: 1>, scalar_prefetch = 0 : i64, scratch_operands = 0 : i64, tpu.core_type = #tpu.core_type<tc>, window_params = [{transform_indices = @transform_0, window_bounds = array<i64: 96, 128>}, {pipeline_mode = #tpu.pipeline_mode<synchronous>, transform_indices = @transform_1, window_bounds = array<i64: 128, 512>}, {pipeline_mode = #tpu.pipeline_mode<synchronous>, transform_indices = @transform_2, window_bounds = array<i64: 1, 512>}, {transform_indices = @transform_3, window_bounds = array<i64: 96, 512>}]} {
    %c0 = arith.constant 0 : index
    %c0_0 = arith.constant 0 : index
    %0 = vector.load %arg1[%c0, %c0_0] : memref<96x128xf32, #tpu.memory_space<vmem>>, vector<96x128xf32>
    %1 = arith.truncf %0 : vector<96x128xf32> to vector<96x128xbf16>
    %c0_1 = arith.constant 0 : index
    %c0_2 = arith.constant 0 : index
    %2 = vector.load %arg2[%c0_1, %c0_2] : memref<128x512xbf16, #tpu.memory_space<vmem>>, vector<128x512xbf16>
    %cst = arith.constant dense<0.000000e+00> : vector<96x512xf32>
    %3 = tpu.matmul %1, %2, %cst {dimension_numbers = #tpu.dot_dimension_numbers<[1], [0], [0], [1], [0, 0, 1, 1], [], []>} : vector<96x128xbf16>, vector<128x512xbf16>, vector<96x512xf32> -> vector<96x512xf32>
    %c0_3 = arith.constant 0 : index
    %c0_4 = arith.constant 0 : index
    %4 = vector.load %arg3[%c0_3, %c0_4] : memref<1x512xf32, #tpu.memory_space<vmem>>, vector<1x512xf32>
    %5 = vector.broadcast %4 : vector<1x512xf32> to vector<96x512xf32>
    %6 = arith.addf %3, %5 : vector<96x512xf32>
    %c0_5 = arith.constant 0 : index
    %c0_6 = arith.constant 0 : index
    %7 = vector.load %arg4[%c0_5, %c0_6] : memref<96x512xf32, #tpu.memory_space<vmem>>, vector<96x512xf32>
    tpu.vector_store %arg4[%c0_5, %c0_6], %6 {strides = array<i32>} : memref<96x512xf32, #tpu.memory_space<vmem>>, vector<96x512xf32>,
    return
  }
  func.func @transform_0(%arg0: i32) -> (i32, i32) {
    %c0_i32 = arith.constant 0 : i32
    %c0_i32_0 = arith.constant 0 : i32
    return %arg0, %c0_i32 : i32, i32
  }
  func.func @transform_1(%arg0: i32) -> (i32, i32) {
    %c0_i32 = arith.constant 0 : i32
    %c0_i32_0 = arith.constant 0 : i32
    %c0_i32_1 = arith.constant 0 : i32
    return %c0_i32, %c0_i32_0 : i32, i32
  }
  func.func @transform_2(%arg0: i32) -> (i32, i32) {
    %c0_i32 = arith.constant 0 : i32
    %c0_i32_0 = arith.constant 0 : i32
    %c0_i32_1 = arith.constant 0 : i32
    return %c0_i32, %c0_i32_0 : i32, i32
  }
  func.func @transform_3(%arg0: i32) -> (i32, i32) {
    %c0_i32 = arith.constant 0 : i32
    %c0_i32_0 = arith.constant 0 : i32
    return %arg0, %c0_i32 : i32, i32
  }
}

module attributes {stable_mosaic.version = 11 : i64} {
  func.func @_lstm_recur_kernel(%arg0: i32, %arg1: memref<6x8x512xf32, #tpu.memory_space<vmem>>, %arg2: memref<128x512xbf16, #tpu.memory_space<vmem>>, %arg3: memref<6x8x128xf32, #tpu.memory_space<vmem>>, %arg4: memref<6x8x128xf32, #tpu.memory_space<vmem>>, %arg5: memref<8x128xf32, #tpu.memory_space<vmem>>, %arg6: memref<8x128xf32, #tpu.memory_space<vmem>>) attributes {dimension_semantics = [#tpu.dimension_semantics<arbitrary>], iteration_bounds = array<i64: 2>, scalar_prefetch = 0 : i64, scratch_operands = 2 : i64, tpu.core_type = #tpu.core_type<tc>, window_params = [{transform_indices = @transform_0, window_bounds = array<i64: 6, 8, 512>}, {pipeline_mode = #tpu.pipeline_mode<synchronous>, transform_indices = @transform_1, window_bounds = array<i64: 128, 512>}, {transform_indices = @transform_2, window_bounds = array<i64: 6, 8, 128>}, {transform_indices = @transform_3, window_bounds = array<i64: 6, 8, 128>}]} {
    %c0_i32 = arith.constant 0 : i32
    %0 = arith.cmpi eq, %arg0, %c0_i32 : i32
    %1 = arith.extui %0 : i1 to i32
    %c0_i32_0 = arith.constant 0 : i32
    %2 = arith.cmpi ne, %1, %c0_i32_0 : i32
    scf.if %2 {
      %cst_82 = arith.constant 0.000000e+00 : f32
      %224 = vector.broadcast %cst_82 : f32 to vector<8x128xf32>
      %c0_83 = arith.constant 0 : index
      %c0_84 = arith.constant 0 : index
      %225 = vector.load %arg5[%c0_83, %c0_84] : memref<8x128xf32, #tpu.memory_space<vmem>>, vector<8x128xf32>
      tpu.vector_store %arg5[%c0_83, %c0_84], %224 {strides = array<i32>} : memref<8x128xf32, #tpu.memory_space<vmem>>, vector<8x128xf32>,
      %cst_85 = arith.constant 0.000000e+00 : f32
      %226 = vector.broadcast %cst_85 : f32 to vector<8x128xf32>
      %c0_86 = arith.constant 0 : index
      %c0_87 = arith.constant 0 : index
      %227 = vector.load %arg6[%c0_86, %c0_87] : memref<8x128xf32, #tpu.memory_space<vmem>>, vector<8x128xf32>
      tpu.vector_store %arg6[%c0_86, %c0_87], %226 {strides = array<i32>} : memref<8x128xf32, #tpu.memory_space<vmem>>, vector<8x128xf32>,
    } else {
    }
    %c0 = arith.constant 0 : index
    %c0_1 = arith.constant 0 : index
    %3 = vector.load %arg2[%c0, %c0_1] : memref<128x512xbf16, #tpu.memory_space<vmem>>, vector<128x512xbf16>
    %c0_2 = arith.constant 0 : index
    %c0_3 = arith.constant 0 : index
    %4 = vector.load %arg5[%c0_2, %c0_3] : memref<8x128xf32, #tpu.memory_space<vmem>>, vector<8x128xf32>
    %c0_4 = arith.constant 0 : index
    %c0_5 = arith.constant 0 : index
    %5 = vector.load %arg6[%c0_4, %c0_5] : memref<8x128xf32, #tpu.memory_space<vmem>>, vector<8x128xf32>
    %c0_6 = arith.constant 0 : index
    %c0_7 = arith.constant 0 : index
    %c0_8 = arith.constant 0 : index
    %6 = vector.load %arg1[%c0_6, %c0_7, %c0_8] : memref<6x8x512xf32, #tpu.memory_space<vmem>>, vector<1x8x512xf32>
    %7 = vector.shape_cast %6 : vector<1x8x512xf32> to vector<8x512xf32>
    %8 = arith.truncf %4 : vector<8x128xf32> to vector<8x128xbf16>
    %cst = arith.constant dense<0.000000e+00> : vector<8x512xf32>
    %9 = tpu.matmul %8, %3, %cst {dimension_numbers = #tpu.dot_dimension_numbers<[1], [0], [0], [1], [0, 0, 1, 1], [], []>} : vector<8x128xbf16>, vector<128x512xbf16>, vector<8x512xf32> -> vector<8x512xf32>
    %10 = arith.addf %7, %9 : vector<8x512xf32>
    %11 = vector.extract_strided_slice %10 {offsets = [0, 0], sizes = [8, 128], strides = [1, 1]} : vector<8x512xf32> to vector<8x128xf32>
    %12 = arith.negf %11 : vector<8x128xf32>
    %13 = math.exp %12 : vector<8x128xf32>
    %cst_9 = arith.constant 1.000000e+00 : f32
    %14 = vector.broadcast %cst_9 : f32 to vector<8x128xf32>
    %15 = arith.addf %14, %13 : vector<8x128xf32>
    %16 = arith.divf %14, %15 : vector<8x128xf32>
    %17 = vector.extract_strided_slice %10 {offsets = [0, 128], sizes = [8, 128], strides = [1, 1]} : vector<8x512xf32> to vector<8x128xf32>
    %18 = arith.negf %17 : vector<8x128xf32>
    %19 = math.exp %18 : vector<8x128xf32>
    %cst_10 = arith.constant 1.000000e+00 : f32
    %20 = vector.broadcast %cst_10 : f32 to vector<8x128xf32>
    %21 = arith.addf %20, %19 : vector<8x128xf32>
    %22 = arith.divf %20, %21 : vector<8x128xf32>
    %23 = vector.extract_strided_slice %10 {offsets = [0, 256], sizes = [8, 128], strides = [1, 1]} : vector<8x512xf32> to vector<8x128xf32>
    %24 = math.tanh %23 : vector<8x128xf32>
    %25 = vector.extract_strided_slice %10 {offsets = [0, 384], sizes = [8, 128], strides = [1, 1]} : vector<8x512xf32> to vector<8x128xf32>
    %26 = arith.negf %25 : vector<8x128xf32>
    %27 = math.exp %26 : vector<8x128xf32>
    %cst_11 = arith.constant 1.000000e+00 : f32
    %28 = vector.broadcast %cst_11 : f32 to vector<8x128xf32>
    %29 = arith.addf %28, %27 : vector<8x128xf32>
    %30 = arith.divf %28, %29 : vector<8x128xf32>
    %31 = arith.mulf %22, %5 : vector<8x128xf32>
    %32 = arith.mulf %16, %24 : vector<8x128xf32>
    %33 = arith.addf %31, %32 : vector<8x128xf32>
    %34 = math.tanh %33 : vector<8x128xf32>
    %35 = arith.mulf %30, %34 : vector<8x128xf32>
    %c0_12 = arith.constant 0 : index
    %c0_13 = arith.constant 0 : index
    %c0_14 = arith.constant 0 : index
    %36 = vector.load %arg3[%c0_12, %c0_13, %c0_14] : memref<6x8x128xf32, #tpu.memory_space<vmem>>, vector<1x8x128xf32>
    %37 = vector.shape_cast %36 : vector<1x8x128xf32> to vector<8x128xf32>
    %38 = arith.addf %35, %37 : vector<8x128xf32>
    %c0_15 = arith.constant 0 : index
    %c0_16 = arith.constant 0 : index
    %c0_17 = arith.constant 0 : index
    %39 = vector.load %arg4[%c0_15, %c0_16, %c0_17] : memref<6x8x128xf32, #tpu.memory_space<vmem>>, vector<1x8x128xf32>
    %40 = vector.shape_cast %39 : vector<1x8x128xf32> to vector<8x128xf32>
    %41 = vector.shape_cast %38 : vector<8x128xf32> to vector<1x8x128xf32>
    tpu.vector_store %arg4[%c0_15, %c0_16, %c0_17], %41 {strides = array<i32>} : memref<6x8x128xf32, #tpu.memory_space<vmem>>, vector<1x8x128xf32>,
    %c1 = arith.constant 1 : index
    %c0_18 = arith.constant 0 : index
    %c0_19 = arith.constant 0 : index
    %42 = vector.load %arg1[%c1, %c0_18, %c0_19] : memref<6x8x512xf32, #tpu.memory_space<vmem>>, vector<1x8x512xf32>
    %43 = vector.shape_cast %42 : vector<1x8x512xf32> to vector<8x512xf32>
    %44 = arith.truncf %35 : vector<8x128xf32> to vector<8x128xbf16>
    %cst_20 = arith.constant dense<0.000000e+00> : vector<8x512xf32>
    %45 = tpu.matmul %44, %3, %cst_20 {dimension_numbers = #tpu.dot_dimension_numbers<[1], [0], [0], [1], [0, 0, 1, 1], [], []>} : vector<8x128xbf16>, vector<128x512xbf16>, vector<8x512xf32> -> vector<8x512xf32>
    %46 = arith.addf %43, %45 : vector<8x512xf32>
    %47 = vector.extract_strided_slice %46 {offsets = [0, 0], sizes = [8, 128], strides = [1, 1]} : vector<8x512xf32> to vector<8x128xf32>
    %48 = arith.negf %47 : vector<8x128xf32>
    %49 = math.exp %48 : vector<8x128xf32>
    %cst_21 = arith.constant 1.000000e+00 : f32
    %50 = vector.broadcast %cst_21 : f32 to vector<8x128xf32>
    %51 = arith.addf %50, %49 : vector<8x128xf32>
    %52 = arith.divf %50, %51 : vector<8x128xf32>
    %53 = vector.extract_strided_slice %46 {offsets = [0, 128], sizes = [8, 128], strides = [1, 1]} : vector<8x512xf32> to vector<8x128xf32>
    %54 = arith.negf %53 : vector<8x128xf32>
    %55 = math.exp %54 : vector<8x128xf32>
    %cst_22 = arith.constant 1.000000e+00 : f32
    %56 = vector.broadcast %cst_22 : f32 to vector<8x128xf32>
    %57 = arith.addf %56, %55 : vector<8x128xf32>
    %58 = arith.divf %56, %57 : vector<8x128xf32>
    %59 = vector.extract_strided_slice %46 {offsets = [0, 256], sizes = [8, 128], strides = [1, 1]} : vector<8x512xf32> to vector<8x128xf32>
    %60 = math.tanh %59 : vector<8x128xf32>
    %61 = vector.extract_strided_slice %46 {offsets = [0, 384], sizes = [8, 128], strides = [1, 1]} : vector<8x512xf32> to vector<8x128xf32>
    %62 = arith.negf %61 : vector<8x128xf32>
    %63 = math.exp %62 : vector<8x128xf32>
    %cst_23 = arith.constant 1.000000e+00 : f32
    %64 = vector.broadcast %cst_23 : f32 to vector<8x128xf32>
    %65 = arith.addf %64, %63 : vector<8x128xf32>
    %66 = arith.divf %64, %65 : vector<8x128xf32>
    %67 = arith.mulf %58, %33 : vector<8x128xf32>
    %68 = arith.mulf %52, %60 : vector<8x128xf32>
    %69 = arith.addf %67, %68 : vector<8x128xf32>
    %70 = math.tanh %69 : vector<8x128xf32>
    %71 = arith.mulf %66, %70 : vector<8x128xf32>
    %c1_24 = arith.constant 1 : index
    %c0_25 = arith.constant 0 : index
    %c0_26 = arith.constant 0 : index
    %72 = vector.load %arg3[%c1_24, %c0_25, %c0_26] : memref<6x8x128xf32, #tpu.memory_space<vmem>>, vector<1x8x128xf32>
    %73 = vector.shape_cast %72 : vector<1x8x128xf32> to vector<8x128xf32>
    %74 = arith.addf %71, %73 : vector<8x128xf32>
    %c1_27 = arith.constant 1 : index
    %c0_28 = arith.constant 0 : index
    %c0_29 = arith.constant 0 : index
    %75 = vector.load %arg4[%c1_27, %c0_28, %c0_29] : memref<6x8x128xf32, #tpu.memory_space<vmem>>, vector<1x8x128xf32>
    %76 = vector.shape_cast %75 : vector<1x8x128xf32> to vector<8x128xf32>
    %77 = vector.shape_cast %74 : vector<8x128xf32> to vector<1x8x128xf32>
    tpu.vector_store %arg4[%c1_27, %c0_28, %c0_29], %77 {strides = array<i32>} : memref<6x8x128xf32, #tpu.memory_space<vmem>>, vector<1x8x128xf32>,
    %c2 = arith.constant 2 : index
    %c0_30 = arith.constant 0 : index
    %c0_31 = arith.constant 0 : index
    %78 = vector.load %arg1[%c2, %c0_30, %c0_31] : memref<6x8x512xf32, #tpu.memory_space<vmem>>, vector<1x8x512xf32>
    %79 = vector.shape_cast %78 : vector<1x8x512xf32> to vector<8x512xf32>
    %80 = arith.truncf %71 : vector<8x128xf32> to vector<8x128xbf16>
    %cst_32 = arith.constant dense<0.000000e+00> : vector<8x512xf32>
    %81 = tpu.matmul %80, %3, %cst_32 {dimension_numbers = #tpu.dot_dimension_numbers<[1], [0], [0], [1], [0, 0, 1, 1], [], []>} : vector<8x128xbf16>, vector<128x512xbf16>, vector<8x512xf32> -> vector<8x512xf32>
    %82 = arith.addf %79, %81 : vector<8x512xf32>
    %83 = vector.extract_strided_slice %82 {offsets = [0, 0], sizes = [8, 128], strides = [1, 1]} : vector<8x512xf32> to vector<8x128xf32>
    %84 = arith.negf %83 : vector<8x128xf32>
    %85 = math.exp %84 : vector<8x128xf32>
    %cst_33 = arith.constant 1.000000e+00 : f32
    %86 = vector.broadcast %cst_33 : f32 to vector<8x128xf32>
    %87 = arith.addf %86, %85 : vector<8x128xf32>
    %88 = arith.divf %86, %87 : vector<8x128xf32>
    %89 = vector.extract_strided_slice %82 {offsets = [0, 128], sizes = [8, 128], strides = [1, 1]} : vector<8x512xf32> to vector<8x128xf32>
    %90 = arith.negf %89 : vector<8x128xf32>
    %91 = math.exp %90 : vector<8x128xf32>
    %cst_34 = arith.constant 1.000000e+00 : f32
    %92 = vector.broadcast %cst_34 : f32 to vector<8x128xf32>
    %93 = arith.addf %92, %91 : vector<8x128xf32>
    %94 = arith.divf %92, %93 : vector<8x128xf32>
    %95 = vector.extract_strided_slice %82 {offsets = [0, 256], sizes = [8, 128], strides = [1, 1]} : vector<8x512xf32> to vector<8x128xf32>
    %96 = math.tanh %95 : vector<8x128xf32>
    %97 = vector.extract_strided_slice %82 {offsets = [0, 384], sizes = [8, 128], strides = [1, 1]} : vector<8x512xf32> to vector<8x128xf32>
    %98 = arith.negf %97 : vector<8x128xf32>
    %99 = math.exp %98 : vector<8x128xf32>
    %cst_35 = arith.constant 1.000000e+00 : f32
    %100 = vector.broadcast %cst_35 : f32 to vector<8x128xf32>
    %101 = arith.addf %100, %99 : vector<8x128xf32>
    %102 = arith.divf %100, %101 : vector<8x128xf32>
    %103 = arith.mulf %94, %69 : vector<8x128xf32>
    %104 = arith.mulf %88, %96 : vector<8x128xf32>
    %105 = arith.addf %103, %104 : vector<8x128xf32>
    %106 = math.tanh %105 : vector<8x128xf32>
    %107 = arith.mulf %102, %106 : vector<8x128xf32>
    %c2_36 = arith.constant 2 : index
    %c0_37 = arith.constant 0 : index
    %c0_38 = arith.constant 0 : index
    %108 = vector.load %arg3[%c2_36, %c0_37, %c0_38] : memref<6x8x128xf32, #tpu.memory_space<vmem>>, vector<1x8x128xf32>
    %109 = vector.shape_cast %108 : vector<1x8x128xf32> to vector<8x128xf32>
    %110 = arith.addf %107, %109 : vector<8x128xf32>
    %c2_39 = arith.constant 2 : index
    %c0_40 = arith.constant 0 : index
    %c0_41 = arith.constant 0 : index
    %111 = vector.load %arg4[%c2_39, %c0_40, %c0_41] : memref<6x8x128xf32, #tpu.memory_space<vmem>>, vector<1x8x128xf32>
    %112 = vector.shape_cast %111 : vector<1x8x128xf32> to vector<8x128xf32>
    %113 = vector.shape_cast %110 : vector<8x128xf32> to vector<1x8x128xf32>
    tpu.vector_store %arg4[%c2_39, %c0_40, %c0_41], %113 {strides = array<i32>} : memref<6x8x128xf32, #tpu.memory_space<vmem>>, vector<1x8x128xf32>,
    %c3 = arith.constant 3 : index
    %c0_42 = arith.constant 0 : index
    %c0_43 = arith.constant 0 : index
    %114 = vector.load %arg1[%c3, %c0_42, %c0_43] : memref<6x8x512xf32, #tpu.memory_space<vmem>>, vector<1x8x512xf32>
    %115 = vector.shape_cast %114 : vector<1x8x512xf32> to vector<8x512xf32>
    %116 = arith.truncf %107 : vector<8x128xf32> to vector<8x128xbf16>
    %cst_44 = arith.constant dense<0.000000e+00> : vector<8x512xf32>
    %117 = tpu.matmul %116, %3, %cst_44 {dimension_numbers = #tpu.dot_dimension_numbers<[1], [0], [0], [1], [0, 0, 1, 1], [], []>} : vector<8x128xbf16>, vector<128x512xbf16>, vector<8x512xf32> -> vector<8x512xf32>
    %118 = arith.addf %115, %117 : vector<8x512xf32>
    %119 = vector.extract_strided_slice %118 {offsets = [0, 0], sizes = [8, 128], strides = [1, 1]} : vector<8x512xf32> to vector<8x128xf32>
    %120 = arith.negf %119 : vector<8x128xf32>
    %121 = math.exp %120 : vector<8x128xf32>
    %cst_45 = arith.constant 1.000000e+00 : f32
    %122 = vector.broadcast %cst_45 : f32 to vector<8x128xf32>
    %123 = arith.addf %122, %121 : vector<8x128xf32>
    %124 = arith.divf %122, %123 : vector<8x128xf32>
    %125 = vector.extract_strided_slice %118 {offsets = [0, 128], sizes = [8, 128], strides = [1, 1]} : vector<8x512xf32> to vector<8x128xf32>
    %126 = arith.negf %125 : vector<8x128xf32>
    %127 = math.exp %126 : vector<8x128xf32>
    %cst_46 = arith.constant 1.000000e+00 : f32
    %128 = vector.broadcast %cst_46 : f32 to vector<8x128xf32>
    %129 = arith.addf %128, %127 : vector<8x128xf32>
    %130 = arith.divf %128, %129 : vector<8x128xf32>
    %131 = vector.extract_strided_slice %118 {offsets = [0, 256], sizes = [8, 128], strides = [1, 1]} : vector<8x512xf32> to vector<8x128xf32>
    %132 = math.tanh %131 : vector<8x128xf32>
    %133 = vector.extract_strided_slice %118 {offsets = [0, 384], sizes = [8, 128], strides = [1, 1]} : vector<8x512xf32> to vector<8x128xf32>
    %134 = arith.negf %133 : vector<8x128xf32>
    %135 = math.exp %134 : vector<8x128xf32>
    %cst_47 = arith.constant 1.000000e+00 : f32
    %136 = vector.broadcast %cst_47 : f32 to vector<8x128xf32>
    %137 = arith.addf %136, %135 : vector<8x128xf32>
    %138 = arith.divf %136, %137 : vector<8x128xf32>
    %139 = arith.mulf %130, %105 : vector<8x128xf32>
    %140 = arith.mulf %124, %132 : vector<8x128xf32>
    %141 = arith.addf %139, %140 : vector<8x128xf32>
    %142 = math.tanh %141 : vector<8x128xf32>
    %143 = arith.mulf %138, %142 : vector<8x128xf32>
    %c3_48 = arith.constant 3 : index
    %c0_49 = arith.constant 0 : index
    %c0_50 = arith.constant 0 : index
    %144 = vector.load %arg3[%c3_48, %c0_49, %c0_50] : memref<6x8x128xf32, #tpu.memory_space<vmem>>, vector<1x8x128xf32>
    %145 = vector.shape_cast %144 : vector<1x8x128xf32> to vector<8x128xf32>
    %146 = arith.addf %143, %145 : vector<8x128xf32>
    %c3_51 = arith.constant 3 : index
    %c0_52 = arith.constant 0 : index
    %c0_53 = arith.constant 0 : index
    %147 = vector.load %arg4[%c3_51, %c0_52, %c0_53] : memref<6x8x128xf32, #tpu.memory_space<vmem>>, vector<1x8x128xf32>
    %148 = vector.shape_cast %147 : vector<1x8x128xf32> to vector<8x128xf32>
    %149 = vector.shape_cast %146 : vector<8x128xf32> to vector<1x8x128xf32>
    tpu.vector_store %arg4[%c3_51, %c0_52, %c0_53], %149 {strides = array<i32>} : memref<6x8x128xf32, #tpu.memory_space<vmem>>, vector<1x8x128xf32>,
    %c4 = arith.constant 4 : index
    %c0_54 = arith.constant 0 : index
    %c0_55 = arith.constant 0 : index
    %150 = vector.load %arg1[%c4, %c0_54, %c0_55] : memref<6x8x512xf32, #tpu.memory_space<vmem>>, vector<1x8x512xf32>
    %151 = vector.shape_cast %150 : vector<1x8x512xf32> to vector<8x512xf32>
    %152 = arith.truncf %143 : vector<8x128xf32> to vector<8x128xbf16>
    %cst_56 = arith.constant dense<0.000000e+00> : vector<8x512xf32>
    %153 = tpu.matmul %152, %3, %cst_56 {dimension_numbers = #tpu.dot_dimension_numbers<[1], [0], [0], [1], [0, 0, 1, 1], [], []>} : vector<8x128xbf16>, vector<128x512xbf16>, vector<8x512xf32> -> vector<8x512xf32>
    %154 = arith.addf %151, %153 : vector<8x512xf32>
    %155 = vector.extract_strided_slice %154 {offsets = [0, 0], sizes = [8, 128], strides = [1, 1]} : vector<8x512xf32> to vector<8x128xf32>
    %156 = arith.negf %155 : vector<8x128xf32>
    %157 = math.exp %156 : vector<8x128xf32>
    %cst_57 = arith.constant 1.000000e+00 : f32
    %158 = vector.broadcast %cst_57 : f32 to vector<8x128xf32>
    %159 = arith.addf %158, %157 : vector<8x128xf32>
    %160 = arith.divf %158, %159 : vector<8x128xf32>
    %161 = vector.extract_strided_slice %154 {offsets = [0, 128], sizes = [8, 128], strides = [1, 1]} : vector<8x512xf32> to vector<8x128xf32>
    %162 = arith.negf %161 : vector<8x128xf32>
    %163 = math.exp %162 : vector<8x128xf32>
    %cst_58 = arith.constant 1.000000e+00 : f32
    %164 = vector.broadcast %cst_58 : f32 to vector<8x128xf32>
    %165 = arith.addf %164, %163 : vector<8x128xf32>
    %166 = arith.divf %164, %165 : vector<8x128xf32>
    %167 = vector.extract_strided_slice %154 {offsets = [0, 256], sizes = [8, 128], strides = [1, 1]} : vector<8x512xf32> to vector<8x128xf32>
    %168 = math.tanh %167 : vector<8x128xf32>
    %169 = vector.extract_strided_slice %154 {offsets = [0, 384], sizes = [8, 128], strides = [1, 1]} : vector<8x512xf32> to vector<8x128xf32>
    %170 = arith.negf %169 : vector<8x128xf32>
    %171 = math.exp %170 : vector<8x128xf32>
    %cst_59 = arith.constant 1.000000e+00 : f32
    %172 = vector.broadcast %cst_59 : f32 to vector<8x128xf32>
    %173 = arith.addf %172, %171 : vector<8x128xf32>
    %174 = arith.divf %172, %173 : vector<8x128xf32>
    %175 = arith.mulf %166, %141 : vector<8x128xf32>
    %176 = arith.mulf %160, %168 : vector<8x128xf32>
    %177 = arith.addf %175, %176 : vector<8x128xf32>
    %178 = math.tanh %177 : vector<8x128xf32>
    %179 = arith.mulf %174, %178 : vector<8x128xf32>
    %c4_60 = arith.constant 4 : index
    %c0_61 = arith.constant 0 : index
    %c0_62 = arith.constant 0 : index
    %180 = vector.load %arg3[%c4_60, %c0_61, %c0_62] : memref<6x8x128xf32, #tpu.memory_space<vmem>>, vector<1x8x128xf32>
    %181 = vector.shape_cast %180 : vector<1x8x128xf32> to vector<8x128xf32>
    %182 = arith.addf %179, %181 : vector<8x128xf32>
    %c4_63 = arith.constant 4 : index
    %c0_64 = arith.constant 0 : index
    %c0_65 = arith.constant 0 : index
    %183 = vector.load %arg4[%c4_63, %c0_64, %c0_65] : memref<6x8x128xf32, #tpu.memory_space<vmem>>, vector<1x8x128xf32>
    %184 = vector.shape_cast %183 : vector<1x8x128xf32> to vector<8x128xf32>
    %185 = vector.shape_cast %182 : vector<8x128xf32> to vector<1x8x128xf32>
    tpu.vector_store %arg4[%c4_63, %c0_64, %c0_65], %185 {strides = array<i32>} : memref<6x8x128xf32, #tpu.memory_space<vmem>>, vector<1x8x128xf32>,
    %c5 = arith.constant 5 : index
    %c0_66 = arith.constant 0 : index
    %c0_67 = arith.constant 0 : index
    %186 = vector.load %arg1[%c5, %c0_66, %c0_67] : memref<6x8x512xf32, #tpu.memory_space<vmem>>, vector<1x8x512xf32>
    %187 = vector.shape_cast %186 : vector<1x8x512xf32> to vector<8x512xf32>
    %188 = arith.truncf %179 : vector<8x128xf32> to vector<8x128xbf16>
    %cst_68 = arith.constant dense<0.000000e+00> : vector<8x512xf32>
    %189 = tpu.matmul %188, %3, %cst_68 {dimension_numbers = #tpu.dot_dimension_numbers<[1], [0], [0], [1], [0, 0, 1, 1], [], []>} : vector<8x128xbf16>, vector<128x512xbf16>, vector<8x512xf32> -> vector<8x512xf32>
    %190 = arith.addf %187, %189 : vector<8x512xf32>
    %191 = vector.extract_strided_slice %190 {offsets = [0, 0], sizes = [8, 128], strides = [1, 1]} : vector<8x512xf32> to vector<8x128xf32>
    %192 = arith.negf %191 : vector<8x128xf32>
    %193 = math.exp %192 : vector<8x128xf32>
    %cst_69 = arith.constant 1.000000e+00 : f32
    %194 = vector.broadcast %cst_69 : f32 to vector<8x128xf32>
    %195 = arith.addf %194, %193 : vector<8x128xf32>
    %196 = arith.divf %194, %195 : vector<8x128xf32>
    %197 = vector.extract_strided_slice %190 {offsets = [0, 128], sizes = [8, 128], strides = [1, 1]} : vector<8x512xf32> to vector<8x128xf32>
    %198 = arith.negf %197 : vector<8x128xf32>
    %199 = math.exp %198 : vector<8x128xf32>
    %cst_70 = arith.constant 1.000000e+00 : f32
    %200 = vector.broadcast %cst_70 : f32 to vector<8x128xf32>
    %201 = arith.addf %200, %199 : vector<8x128xf32>
    %202 = arith.divf %200, %201 : vector<8x128xf32>
    %203 = vector.extract_strided_slice %190 {offsets = [0, 256], sizes = [8, 128], strides = [1, 1]} : vector<8x512xf32> to vector<8x128xf32>
    %204 = math.tanh %203 : vector<8x128xf32>
    %205 = vector.extract_strided_slice %190 {offsets = [0, 384], sizes = [8, 128], strides = [1, 1]} : vector<8x512xf32> to vector<8x128xf32>
    %206 = arith.negf %205 : vector<8x128xf32>
    %207 = math.exp %206 : vector<8x128xf32>
    %cst_71 = arith.constant 1.000000e+00 : f32
    %208 = vector.broadcast %cst_71 : f32 to vector<8x128xf32>
    %209 = arith.addf %208, %207 : vector<8x128xf32>
    %210 = arith.divf %208, %209 : vector<8x128xf32>
    %211 = arith.mulf %202, %177 : vector<8x128xf32>
    %212 = arith.mulf %196, %204 : vector<8x128xf32>
    %213 = arith.addf %211, %212 : vector<8x128xf32>
    %214 = math.tanh %213 : vector<8x128xf32>
    %215 = arith.mulf %210, %214 : vector<8x128xf32>
    %c5_72 = arith.constant 5 : index
    %c0_73 = arith.constant 0 : index
    %c0_74 = arith.constant 0 : index
    %216 = vector.load %arg3[%c5_72, %c0_73, %c0_74] : memref<6x8x128xf32, #tpu.memory_space<vmem>>, vector<1x8x128xf32>
    %217 = vector.shape_cast %216 : vector<1x8x128xf32> to vector<8x128xf32>
    %218 = arith.addf %215, %217 : vector<8x128xf32>
    %c5_75 = arith.constant 5 : index
    %c0_76 = arith.constant 0 : index
    %c0_77 = arith.constant 0 : index
    %219 = vector.load %arg4[%c5_75, %c0_76, %c0_77] : memref<6x8x128xf32, #tpu.memory_space<vmem>>, vector<1x8x128xf32>
    %220 = vector.shape_cast %219 : vector<1x8x128xf32> to vector<8x128xf32>
    %221 = vector.shape_cast %218 : vector<8x128xf32> to vector<1x8x128xf32>
    tpu.vector_store %arg4[%c5_75, %c0_76, %c0_77], %221 {strides = array<i32>} : memref<6x8x128xf32, #tpu.memory_space<vmem>>, vector<1x8x128xf32>,
    %c0_78 = arith.constant 0 : index
    %c0_79 = arith.constant 0 : index
    %222 = vector.load %arg5[%c0_78, %c0_79] : memref<8x128xf32, #tpu.memory_space<vmem>>, vector<8x128xf32>
    tpu.vector_store %arg5[%c0_78, %c0_79], %215 {strides = array<i32>} : memref<8x128xf32, #tpu.memory_space<vmem>>, vector<8x128xf32>,
    %c0_80 = arith.constant 0 : index
    %c0_81 = arith.constant 0 : index
    %223 = vector.load %arg6[%c0_80, %c0_81] : memref<8x128xf32, #tpu.memory_space<vmem>>, vector<8x128xf32>
    tpu.vector_store %arg6[%c0_80, %c0_81], %213 {strides = array<i32>} : memref<8x128xf32, #tpu.memory_space<vmem>>, vector<8x128xf32>,
    return
  }
  func.func @transform_0(%arg0: i32) -> (i32, i32, i32) {
    %c0_i32 = arith.constant 0 : i32
    %c0_i32_0 = arith.constant 0 : i32
    %c0_i32_1 = arith.constant 0 : i32
    return %arg0, %c0_i32, %c0_i32_0 : i32, i32, i32
  }
  func.func @transform_1(%arg0: i32) -> (i32, i32) {
    %c0_i32 = arith.constant 0 : i32
    %c0_i32_0 = arith.constant 0 : i32
    %c0_i32_1 = arith.constant 0 : i32
    return %c0_i32, %c0_i32_0 : i32, i32
  }
  func.func @transform_2(%arg0: i32) -> (i32, i32, i32) {
    %c0_i32 = arith.constant 0 : i32
    %c0_i32_0 = arith.constant 0 : i32
    %c0_i32_1 = arith.constant 0 : i32
    return %arg0, %c0_i32, %c0_i32_0 : i32, i32, i32
  }
  func.func @transform_3(%arg0: i32) -> (i32, i32, i32) {
    %c0_i32 = arith.constant 0 : i32
    %c0_i32_0 = arith.constant 0 : i32
    %c0_i32_1 = arith.constant 0 : i32
    return %arg0, %c0_i32, %c0_i32_0 : i32, i32, i32
  }
}

module attributes {stable_mosaic.version = 11 : i64} {
  func.func @_linear_kernel(%arg0: i32, %arg1: memref<96x128xf32, #tpu.memory_space<vmem>>, %arg2: memref<128x128xbf16, #tpu.memory_space<vmem>>, %arg3: memref<1x128xf32, #tpu.memory_space<vmem>>, %arg4: memref<96x128xf32, #tpu.memory_space<vmem>>) attributes {dimension_semantics = [#tpu.dimension_semantics<parallel>], iteration_bounds = array<i64: 1>, scalar_prefetch = 0 : i64, scratch_operands = 0 : i64, tpu.core_type = #tpu.core_type<tc>, window_params = [{transform_indices = @transform_0, window_bounds = array<i64: 96, 128>}, {pipeline_mode = #tpu.pipeline_mode<synchronous>, transform_indices = @transform_1, window_bounds = array<i64: 128, 128>}, {pipeline_mode = #tpu.pipeline_mode<synchronous>, transform_indices = @transform_2, window_bounds = array<i64: 1, 128>}, {transform_indices = @transform_3, window_bounds = array<i64: 96, 128>}]} {
    %c0 = arith.constant 0 : index
    %c0_0 = arith.constant 0 : index
    %0 = vector.load %arg1[%c0, %c0_0] : memref<96x128xf32, #tpu.memory_space<vmem>>, vector<96x128xf32>
    %1 = arith.truncf %0 : vector<96x128xf32> to vector<96x128xbf16>
    %c0_1 = arith.constant 0 : index
    %c0_2 = arith.constant 0 : index
    %2 = vector.load %arg2[%c0_1, %c0_2] : memref<128x128xbf16, #tpu.memory_space<vmem>>, vector<128x128xbf16>
    %cst = arith.constant dense<0.000000e+00> : vector<96x128xf32>
    %3 = tpu.matmul %1, %2, %cst {dimension_numbers = #tpu.dot_dimension_numbers<[1], [0], [0], [1], [0, 0, 1, 1], [], []>} : vector<96x128xbf16>, vector<128x128xbf16>, vector<96x128xf32> -> vector<96x128xf32>
    %c0_3 = arith.constant 0 : index
    %c0_4 = arith.constant 0 : index
    %4 = vector.load %arg3[%c0_3, %c0_4] : memref<1x128xf32, #tpu.memory_space<vmem>>, vector<1x128xf32>
    %5 = vector.broadcast %4 : vector<1x128xf32> to vector<96x128xf32>
    %6 = arith.addf %3, %5 : vector<96x128xf32>
    %c0_5 = arith.constant 0 : index
    %c0_6 = arith.constant 0 : index
    %7 = vector.load %arg4[%c0_5, %c0_6] : memref<96x128xf32, #tpu.memory_space<vmem>>, vector<96x128xf32>
    tpu.vector_store %arg4[%c0_5, %c0_6], %6 {strides = array<i32>} : memref<96x128xf32, #tpu.memory_space<vmem>>, vector<96x128xf32>,
    return
  }
  func.func @transform_0(%arg0: i32) -> (i32, i32) {
    %c0_i32 = arith.constant 0 : i32
    %c0_i32_0 = arith.constant 0 : i32
    return %arg0, %c0_i32 : i32, i32
  }
  func.func @transform_1(%arg0: i32) -> (i32, i32) {
    %c0_i32 = arith.constant 0 : i32
    %c0_i32_0 = arith.constant 0 : i32
    %c0_i32_1 = arith.constant 0 : i32
    return %c0_i32, %c0_i32_0 : i32, i32
  }
  func.func @transform_2(%arg0: i32) -> (i32, i32) {
    %c0_i32 = arith.constant 0 : i32
    %c0_i32_0 = arith.constant 0 : i32
    %c0_i32_1 = arith.constant 0 : i32
    return %c0_i32, %c0_i32_0 : i32, i32
  }
  func.func @transform_3(%arg0: i32) -> (i32, i32) {
    %c0_i32 = arith.constant 0 : i32
    %c0_i32_0 = arith.constant 0 : i32
    return %arg0, %c0_i32 : i32, i32
  }
}

module attributes {stable_mosaic.version = 11 : i64} {
  func.func @_embed_gather_kernel(%arg0: i32, %arg1: memref<64xi32, #tpu.memory_space<smem>>, %arg2: memref<512x128xf32, #tpu.memory_space<any>>, %arg3: memref<8x128xf32, #tpu.memory_space<vmem>>, %arg4: memref<8x128xf32, #tpu.memory_space<vmem>>, %arg5: memref<8x!tpu.dma_semaphore, #tpu.memory_space<semaphore_mem>>) attributes {dimension_semantics = [#tpu.dimension_semantics<arbitrary>], iteration_bounds = array<i64: 8>, scalar_prefetch = 1 : i64, scratch_operands = 2 : i64, tpu.core_type = #tpu.core_type<tc>, window_params = [{}, {transform_indices = @transform_1, window_bounds = array<i64: 8, 128>}]} {
    %c8_i32 = arith.constant 8 : i32
    %0 = arith.muli %arg0, %c8_i32 : i32
    %c0_i32 = arith.constant 0 : i32
    %1 = arith.addi %0, %c0_i32 : i32
    %2 = arith.index_cast %1 : i32 to index
    %3 = memref.load %arg1[%2] : memref<64xi32, #tpu.memory_space<smem>>
    %c0_i32_0 = arith.constant 0 : i32
    %c0_i32_1 = arith.constant 0 : i32
    %4 = tpu.memref_slice %arg2[%3, %c0_i32_1] : memref<512x128xf32, #tpu.memory_space<any>> -> memref<1x128xf32, #tpu.memory_space<any>>
    %c0_i32_2 = arith.constant 0 : i32
    %c0_i32_3 = arith.constant 0 : i32
    %5 = tpu.memref_slice %arg4[%c0_i32_2, %c0_i32_3] : memref<8x128xf32, #tpu.memory_space<vmem>> -> memref<1x128xf32, #tpu.memory_space<vmem>>
    %6 = tpu.memref_slice %arg5[%c0_i32_0] : memref<8x!tpu.dma_semaphore, #tpu.memory_space<semaphore_mem>> -> memref<1x!tpu.dma_semaphore, #tpu.memory_space<semaphore_mem>>
    %7 = tpu.memref_squeeze %6 : memref<1x!tpu.dma_semaphore, #tpu.memory_space<semaphore_mem>> -> memref<!tpu.dma_semaphore, #tpu.memory_space<semaphore_mem>>
    tpu.enqueue_dma source(%4 : memref<1x128xf32, #tpu.memory_space<any>>) target(%5 : memref<1x128xf32, #tpu.memory_space<vmem>>) target_semaphore(%7 : memref<!tpu.dma_semaphore, #tpu.memory_space<semaphore_mem>>)
    %c1_i32 = arith.constant 1 : i32
    %8 = arith.addi %0, %c1_i32 : i32
    %9 = arith.index_cast %8 : i32 to index
    %10 = memref.load %arg1[%9] : memref<64xi32, #tpu.memory_space<smem>>
    %c1_i32_4 = arith.constant 1 : i32
    %c0_i32_5 = arith.constant 0 : i32
    %11 = tpu.memref_slice %arg2[%10, %c0_i32_5] : memref<512x128xf32, #tpu.memory_space<any>> -> memref<1x128xf32, #tpu.memory_space<any>>
    %c1_i32_6 = arith.constant 1 : i32
    %c0_i32_7 = arith.constant 0 : i32
    %12 = tpu.memref_slice %arg4[%c1_i32_6, %c0_i32_7] : memref<8x128xf32, #tpu.memory_space<vmem>> -> memref<1x128xf32, #tpu.memory_space<vmem>>
    %13 = tpu.memref_slice %arg5[%c1_i32_4] : memref<8x!tpu.dma_semaphore, #tpu.memory_space<semaphore_mem>> -> memref<1x!tpu.dma_semaphore, #tpu.memory_space<semaphore_mem>>
    %14 = tpu.memref_squeeze %13 : memref<1x!tpu.dma_semaphore, #tpu.memory_space<semaphore_mem>> -> memref<!tpu.dma_semaphore, #tpu.memory_space<semaphore_mem>>
    tpu.enqueue_dma source(%11 : memref<1x128xf32, #tpu.memory_space<any>>) target(%12 : memref<1x128xf32, #tpu.memory_space<vmem>>) target_semaphore(%14 : memref<!tpu.dma_semaphore, #tpu.memory_space<semaphore_mem>>)
    %c2_i32 = arith.constant 2 : i32
    %15 = arith.addi %0, %c2_i32 : i32
    %16 = arith.index_cast %15 : i32 to index
    %17 = memref.load %arg1[%16] : memref<64xi32, #tpu.memory_space<smem>>
    %c2_i32_8 = arith.constant 2 : i32
    %c0_i32_9 = arith.constant 0 : i32
    %18 = tpu.memref_slice %arg2[%17, %c0_i32_9] : memref<512x128xf32, #tpu.memory_space<any>> -> memref<1x128xf32, #tpu.memory_space<any>>
    %c2_i32_10 = arith.constant 2 : i32
    %c0_i32_11 = arith.constant 0 : i32
    %19 = tpu.memref_slice %arg4[%c2_i32_10, %c0_i32_11] : memref<8x128xf32, #tpu.memory_space<vmem>> -> memref<1x128xf32, #tpu.memory_space<vmem>>
    %20 = tpu.memref_slice %arg5[%c2_i32_8] : memref<8x!tpu.dma_semaphore, #tpu.memory_space<semaphore_mem>> -> memref<1x!tpu.dma_semaphore, #tpu.memory_space<semaphore_mem>>
    %21 = tpu.memref_squeeze %20 : memref<1x!tpu.dma_semaphore, #tpu.memory_space<semaphore_mem>> -> memref<!tpu.dma_semaphore, #tpu.memory_space<semaphore_mem>>
    tpu.enqueue_dma source(%18 : memref<1x128xf32, #tpu.memory_space<any>>) target(%19 : memref<1x128xf32, #tpu.memory_space<vmem>>) target_semaphore(%21 : memref<!tpu.dma_semaphore, #tpu.memory_space<semaphore_mem>>)
    %c3_i32 = arith.constant 3 : i32
    %22 = arith.addi %0, %c3_i32 : i32
    %23 = arith.index_cast %22 : i32 to index
    %24 = memref.load %arg1[%23] : memref<64xi32, #tpu.memory_space<smem>>
    %c3_i32_12 = arith.constant 3 : i32
    %c0_i32_13 = arith.constant 0 : i32
    %25 = tpu.memref_slice %arg2[%24, %c0_i32_13] : memref<512x128xf32, #tpu.memory_space<any>> -> memref<1x128xf32, #tpu.memory_space<any>>
    %c3_i32_14 = arith.constant 3 : i32
    %c0_i32_15 = arith.constant 0 : i32
    %26 = tpu.memref_slice %arg4[%c3_i32_14, %c0_i32_15] : memref<8x128xf32, #tpu.memory_space<vmem>> -> memref<1x128xf32, #tpu.memory_space<vmem>>
    %27 = tpu.memref_slice %arg5[%c3_i32_12] : memref<8x!tpu.dma_semaphore, #tpu.memory_space<semaphore_mem>> -> memref<1x!tpu.dma_semaphore, #tpu.memory_space<semaphore_mem>>
    %28 = tpu.memref_squeeze %27 : memref<1x!tpu.dma_semaphore, #tpu.memory_space<semaphore_mem>> -> memref<!tpu.dma_semaphore, #tpu.memory_space<semaphore_mem>>
    tpu.enqueue_dma source(%25 : memref<1x128xf32, #tpu.memory_space<any>>) target(%26 : memref<1x128xf32, #tpu.memory_space<vmem>>) target_semaphore(%28 : memref<!tpu.dma_semaphore, #tpu.memory_space<semaphore_mem>>)
    %c4_i32 = arith.constant 4 : i32
    %29 = arith.addi %0, %c4_i32 : i32
    %30 = arith.index_cast %29 : i32 to index
    %31 = memref.load %arg1[%30] : memref<64xi32, #tpu.memory_space<smem>>
    %c4_i32_16 = arith.constant 4 : i32
    %c0_i32_17 = arith.constant 0 : i32
    %32 = tpu.memref_slice %arg2[%31, %c0_i32_17] : memref<512x128xf32, #tpu.memory_space<any>> -> memref<1x128xf32, #tpu.memory_space<any>>
    %c4_i32_18 = arith.constant 4 : i32
    %c0_i32_19 = arith.constant 0 : i32
    %33 = tpu.memref_slice %arg4[%c4_i32_18, %c0_i32_19] : memref<8x128xf32, #tpu.memory_space<vmem>> -> memref<1x128xf32, #tpu.memory_space<vmem>>
    %34 = tpu.memref_slice %arg5[%c4_i32_16] : memref<8x!tpu.dma_semaphore, #tpu.memory_space<semaphore_mem>> -> memref<1x!tpu.dma_semaphore, #tpu.memory_space<semaphore_mem>>
    %35 = tpu.memref_squeeze %34 : memref<1x!tpu.dma_semaphore, #tpu.memory_space<semaphore_mem>> -> memref<!tpu.dma_semaphore, #tpu.memory_space<semaphore_mem>>
    tpu.enqueue_dma source(%32 : memref<1x128xf32, #tpu.memory_space<any>>) target(%33 : memref<1x128xf32, #tpu.memory_space<vmem>>) target_semaphore(%35 : memref<!tpu.dma_semaphore, #tpu.memory_space<semaphore_mem>>)
    %c5_i32 = arith.constant 5 : i32
    %36 = arith.addi %0, %c5_i32 : i32
    %37 = arith.index_cast %36 : i32 to index
    %38 = memref.load %arg1[%37] : memref<64xi32, #tpu.memory_space<smem>>
    %c5_i32_20 = arith.constant 5 : i32
    %c0_i32_21 = arith.constant 0 : i32
    %39 = tpu.memref_slice %arg2[%38, %c0_i32_21] : memref<512x128xf32, #tpu.memory_space<any>> -> memref<1x128xf32, #tpu.memory_space<any>>
    %c5_i32_22 = arith.constant 5 : i32
    %c0_i32_23 = arith.constant 0 : i32
    %40 = tpu.memref_slice %arg4[%c5_i32_22, %c0_i32_23] : memref<8x128xf32, #tpu.memory_space<vmem>> -> memref<1x128xf32, #tpu.memory_space<vmem>>
    %41 = tpu.memref_slice %arg5[%c5_i32_20] : memref<8x!tpu.dma_semaphore, #tpu.memory_space<semaphore_mem>> -> memref<1x!tpu.dma_semaphore, #tpu.memory_space<semaphore_mem>>
    %42 = tpu.memref_squeeze %41 : memref<1x!tpu.dma_semaphore, #tpu.memory_space<semaphore_mem>> -> memref<!tpu.dma_semaphore, #tpu.memory_space<semaphore_mem>>
    tpu.enqueue_dma source(%39 : memref<1x128xf32, #tpu.memory_space<any>>) target(%40 : memref<1x128xf32, #tpu.memory_space<vmem>>) target_semaphore(%42 : memref<!tpu.dma_semaphore, #tpu.memory_space<semaphore_mem>>)
    %c6_i32 = arith.constant 6 : i32
    %43 = arith.addi %0, %c6_i32 : i32
    %44 = arith.index_cast %43 : i32 to index
    %45 = memref.load %arg1[%44] : memref<64xi32, #tpu.memory_space<smem>>
    %c6_i32_24 = arith.constant 6 : i32
    %c0_i32_25 = arith.constant 0 : i32
    %46 = tpu.memref_slice %arg2[%45, %c0_i32_25] : memref<512x128xf32, #tpu.memory_space<any>> -> memref<1x128xf32, #tpu.memory_space<any>>
    %c6_i32_26 = arith.constant 6 : i32
    %c0_i32_27 = arith.constant 0 : i32
    %47 = tpu.memref_slice %arg4[%c6_i32_26, %c0_i32_27] : memref<8x128xf32, #tpu.memory_space<vmem>> -> memref<1x128xf32, #tpu.memory_space<vmem>>
    %48 = tpu.memref_slice %arg5[%c6_i32_24] : memref<8x!tpu.dma_semaphore, #tpu.memory_space<semaphore_mem>> -> memref<1x!tpu.dma_semaphore, #tpu.memory_space<semaphore_mem>>
    %49 = tpu.memref_squeeze %48 : memref<1x!tpu.dma_semaphore, #tpu.memory_space<semaphore_mem>> -> memref<!tpu.dma_semaphore, #tpu.memory_space<semaphore_mem>>
    tpu.enqueue_dma source(%46 : memref<1x128xf32, #tpu.memory_space<any>>) target(%47 : memref<1x128xf32, #tpu.memory_space<vmem>>) target_semaphore(%49 : memref<!tpu.dma_semaphore, #tpu.memory_space<semaphore_mem>>)
    %c7_i32 = arith.constant 7 : i32
    %50 = arith.addi %0, %c7_i32 : i32
    %51 = arith.index_cast %50 : i32 to index
    %52 = memref.load %arg1[%51] : memref<64xi32, #tpu.memory_space<smem>>
    %c7_i32_28 = arith.constant 7 : i32
    %c0_i32_29 = arith.constant 0 : i32
    %53 = tpu.memref_slice %arg2[%52, %c0_i32_29] : memref<512x128xf32, #tpu.memory_space<any>> -> memref<1x128xf32, #tpu.memory_space<any>>
    %c7_i32_30 = arith.constant 7 : i32
    %c0_i32_31 = arith.constant 0 : i32
    %54 = tpu.memref_slice %arg4[%c7_i32_30, %c0_i32_31] : memref<8x128xf32, #tpu.memory_space<vmem>> -> memref<1x128xf32, #tpu.memory_space<vmem>>
    %55 = tpu.memref_slice %arg5[%c7_i32_28] : memref<8x!tpu.dma_semaphore, #tpu.memory_space<semaphore_mem>> -> memref<1x!tpu.dma_semaphore, #tpu.memory_space<semaphore_mem>>
    %56 = tpu.memref_squeeze %55 : memref<1x!tpu.dma_semaphore, #tpu.memory_space<semaphore_mem>> -> memref<!tpu.dma_semaphore, #tpu.memory_space<semaphore_mem>>
    tpu.enqueue_dma source(%53 : memref<1x128xf32, #tpu.memory_space<any>>) target(%54 : memref<1x128xf32, #tpu.memory_space<vmem>>) target_semaphore(%56 : memref<!tpu.dma_semaphore, #tpu.memory_space<semaphore_mem>>)
    %c0_i32_32 = arith.constant 0 : i32
    %c0_i32_33 = arith.constant 0 : i32
    %57 = tpu.memref_slice %arg2[%3, %c0_i32_33] : memref<512x128xf32, #tpu.memory_space<any>> -> memref<1x128xf32, #tpu.memory_space<any>>
    %c0_i32_34 = arith.constant 0 : i32
    %c0_i32_35 = arith.constant 0 : i32
    %58 = tpu.memref_slice %arg4[%c0_i32_34, %c0_i32_35] : memref<8x128xf32, #tpu.memory_space<vmem>> -> memref<1x128xf32, #tpu.memory_space<vmem>>
    %59 = tpu.memref_slice %arg5[%c0_i32_32] : memref<8x!tpu.dma_semaphore, #tpu.memory_space<semaphore_mem>> -> memref<1x!tpu.dma_semaphore, #tpu.memory_space<semaphore_mem>>
    %60 = tpu.memref_squeeze %59 : memref<1x!tpu.dma_semaphore, #tpu.memory_space<semaphore_mem>> -> memref<!tpu.dma_semaphore, #tpu.memory_space<semaphore_mem>>
    tpu.wait_dma2 semaphore(%60 : memref<!tpu.dma_semaphore, #tpu.memory_space<semaphore_mem>>) src(%57 : memref<1x128xf32, #tpu.memory_space<any>>) dst(%58 : memref<1x128xf32, #tpu.memory_space<vmem>>)
    %c1_i32_36 = arith.constant 1 : i32
    %c0_i32_37 = arith.constant 0 : i32
    %61 = tpu.memref_slice %arg2[%10, %c0_i32_37] : memref<512x128xf32, #tpu.memory_space<any>> -> memref<1x128xf32, #tpu.memory_space<any>>
    %c1_i32_38 = arith.constant 1 : i32
    %c0_i32_39 = arith.constant 0 : i32
    %62 = tpu.memref_slice %arg4[%c1_i32_38, %c0_i32_39] : memref<8x128xf32, #tpu.memory_space<vmem>> -> memref<1x128xf32, #tpu.memory_space<vmem>>
    %63 = tpu.memref_slice %arg5[%c1_i32_36] : memref<8x!tpu.dma_semaphore, #tpu.memory_space<semaphore_mem>> -> memref<1x!tpu.dma_semaphore, #tpu.memory_space<semaphore_mem>>
    %64 = tpu.memref_squeeze %63 : memref<1x!tpu.dma_semaphore, #tpu.memory_space<semaphore_mem>> -> memref<!tpu.dma_semaphore, #tpu.memory_space<semaphore_mem>>
    tpu.wait_dma2 semaphore(%64 : memref<!tpu.dma_semaphore, #tpu.memory_space<semaphore_mem>>) src(%61 : memref<1x128xf32, #tpu.memory_space<any>>) dst(%62 : memref<1x128xf32, #tpu.memory_space<vmem>>)
    %c2_i32_40 = arith.constant 2 : i32
    %c0_i32_41 = arith.constant 0 : i32
    %65 = tpu.memref_slice %arg2[%17, %c0_i32_41] : memref<512x128xf32, #tpu.memory_space<any>> -> memref<1x128xf32, #tpu.memory_space<any>>
    %c2_i32_42 = arith.constant 2 : i32
    %c0_i32_43 = arith.constant 0 : i32
    %66 = tpu.memref_slice %arg4[%c2_i32_42, %c0_i32_43] : memref<8x128xf32, #tpu.memory_space<vmem>> -> memref<1x128xf32, #tpu.memory_space<vmem>>
    %67 = tpu.memref_slice %arg5[%c2_i32_40] : memref<8x!tpu.dma_semaphore, #tpu.memory_space<semaphore_mem>> -> memref<1x!tpu.dma_semaphore, #tpu.memory_space<semaphore_mem>>
    %68 = tpu.memref_squeeze %67 : memref<1x!tpu.dma_semaphore, #tpu.memory_space<semaphore_mem>> -> memref<!tpu.dma_semaphore, #tpu.memory_space<semaphore_mem>>
    tpu.wait_dma2 semaphore(%68 : memref<!tpu.dma_semaphore, #tpu.memory_space<semaphore_mem>>) src(%65 : memref<1x128xf32, #tpu.memory_space<any>>) dst(%66 : memref<1x128xf32, #tpu.memory_space<vmem>>)
    %c3_i32_44 = arith.constant 3 : i32
    %c0_i32_45 = arith.constant 0 : i32
    %69 = tpu.memref_slice %arg2[%24, %c0_i32_45] : memref<512x128xf32, #tpu.memory_space<any>> -> memref<1x128xf32, #tpu.memory_space<any>>
    %c3_i32_46 = arith.constant 3 : i32
    %c0_i32_47 = arith.constant 0 : i32
    %70 = tpu.memref_slice %arg4[%c3_i32_46, %c0_i32_47] : memref<8x128xf32, #tpu.memory_space<vmem>> -> memref<1x128xf32, #tpu.memory_space<vmem>>
    %71 = tpu.memref_slice %arg5[%c3_i32_44] : memref<8x!tpu.dma_semaphore, #tpu.memory_space<semaphore_mem>> -> memref<1x!tpu.dma_semaphore, #tpu.memory_space<semaphore_mem>>
    %72 = tpu.memref_squeeze %71 : memref<1x!tpu.dma_semaphore, #tpu.memory_space<semaphore_mem>> -> memref<!tpu.dma_semaphore, #tpu.memory_space<semaphore_mem>>
    tpu.wait_dma2 semaphore(%72 : memref<!tpu.dma_semaphore, #tpu.memory_space<semaphore_mem>>) src(%69 : memref<1x128xf32, #tpu.memory_space<any>>) dst(%70 : memref<1x128xf32, #tpu.memory_space<vmem>>)
    %c4_i32_48 = arith.constant 4 : i32
    %c0_i32_49 = arith.constant 0 : i32
    %73 = tpu.memref_slice %arg2[%31, %c0_i32_49] : memref<512x128xf32, #tpu.memory_space<any>> -> memref<1x128xf32, #tpu.memory_space<any>>
    %c4_i32_50 = arith.constant 4 : i32
    %c0_i32_51 = arith.constant 0 : i32
    %74 = tpu.memref_slice %arg4[%c4_i32_50, %c0_i32_51] : memref<8x128xf32, #tpu.memory_space<vmem>> -> memref<1x128xf32, #tpu.memory_space<vmem>>
    %75 = tpu.memref_slice %arg5[%c4_i32_48] : memref<8x!tpu.dma_semaphore, #tpu.memory_space<semaphore_mem>> -> memref<1x!tpu.dma_semaphore, #tpu.memory_space<semaphore_mem>>
    %76 = tpu.memref_squeeze %75 : memref<1x!tpu.dma_semaphore, #tpu.memory_space<semaphore_mem>> -> memref<!tpu.dma_semaphore, #tpu.memory_space<semaphore_mem>>
    tpu.wait_dma2 semaphore(%76 : memref<!tpu.dma_semaphore, #tpu.memory_space<semaphore_mem>>) src(%73 : memref<1x128xf32, #tpu.memory_space<any>>) dst(%74 : memref<1x128xf32, #tpu.memory_space<vmem>>)
    %c5_i32_52 = arith.constant 5 : i32
    %c0_i32_53 = arith.constant 0 : i32
    %77 = tpu.memref_slice %arg2[%38, %c0_i32_53] : memref<512x128xf32, #tpu.memory_space<any>> -> memref<1x128xf32, #tpu.memory_space<any>>
    %c5_i32_54 = arith.constant 5 : i32
    %c0_i32_55 = arith.constant 0 : i32
    %78 = tpu.memref_slice %arg4[%c5_i32_54, %c0_i32_55] : memref<8x128xf32, #tpu.memory_space<vmem>> -> memref<1x128xf32, #tpu.memory_space<vmem>>
    %79 = tpu.memref_slice %arg5[%c5_i32_52] : memref<8x!tpu.dma_semaphore, #tpu.memory_space<semaphore_mem>> -> memref<1x!tpu.dma_semaphore, #tpu.memory_space<semaphore_mem>>
    %80 = tpu.memref_squeeze %79 : memref<1x!tpu.dma_semaphore, #tpu.memory_space<semaphore_mem>> -> memref<!tpu.dma_semaphore, #tpu.memory_space<semaphore_mem>>
    tpu.wait_dma2 semaphore(%80 : memref<!tpu.dma_semaphore, #tpu.memory_space<semaphore_mem>>) src(%77 : memref<1x128xf32, #tpu.memory_space<any>>) dst(%78 : memref<1x128xf32, #tpu.memory_space<vmem>>)
    %c6_i32_56 = arith.constant 6 : i32
    %c0_i32_57 = arith.constant 0 : i32
    %81 = tpu.memref_slice %arg2[%45, %c0_i32_57] : memref<512x128xf32, #tpu.memory_space<any>> -> memref<1x128xf32, #tpu.memory_space<any>>
    %c6_i32_58 = arith.constant 6 : i32
    %c0_i32_59 = arith.constant 0 : i32
    %82 = tpu.memref_slice %arg4[%c6_i32_58, %c0_i32_59] : memref<8x128xf32, #tpu.memory_space<vmem>> -> memref<1x128xf32, #tpu.memory_space<vmem>>
    %83 = tpu.memref_slice %arg5[%c6_i32_56] : memref<8x!tpu.dma_semaphore, #tpu.memory_space<semaphore_mem>> -> memref<1x!tpu.dma_semaphore, #tpu.memory_space<semaphore_mem>>
    %84 = tpu.memref_squeeze %83 : memref<1x!tpu.dma_semaphore, #tpu.memory_space<semaphore_mem>> -> memref<!tpu.dma_semaphore, #tpu.memory_space<semaphore_mem>>
    tpu.wait_dma2 semaphore(%84 : memref<!tpu.dma_semaphore, #tpu.memory_space<semaphore_mem>>) src(%81 : memref<1x128xf32, #tpu.memory_space<any>>) dst(%82 : memref<1x128xf32, #tpu.memory_space<vmem>>)
    %c7_i32_60 = arith.constant 7 : i32
    %c0_i32_61 = arith.constant 0 : i32
    %85 = tpu.memref_slice %arg2[%52, %c0_i32_61] : memref<512x128xf32, #tpu.memory_space<any>> -> memref<1x128xf32, #tpu.memory_space<any>>
    %c7_i32_62 = arith.constant 7 : i32
    %c0_i32_63 = arith.constant 0 : i32
    %86 = tpu.memref_slice %arg4[%c7_i32_62, %c0_i32_63] : memref<8x128xf32, #tpu.memory_space<vmem>> -> memref<1x128xf32, #tpu.memory_space<vmem>>
    %87 = tpu.memref_slice %arg5[%c7_i32_60] : memref<8x!tpu.dma_semaphore, #tpu.memory_space<semaphore_mem>> -> memref<1x!tpu.dma_semaphore, #tpu.memory_space<semaphore_mem>>
    %88 = tpu.memref_squeeze %87 : memref<1x!tpu.dma_semaphore, #tpu.memory_space<semaphore_mem>> -> memref<!tpu.dma_semaphore, #tpu.memory_space<semaphore_mem>>
    tpu.wait_dma2 semaphore(%88 : memref<!tpu.dma_semaphore, #tpu.memory_space<semaphore_mem>>) src(%85 : memref<1x128xf32, #tpu.memory_space<any>>) dst(%86 : memref<1x128xf32, #tpu.memory_space<vmem>>)
    %c0 = arith.constant 0 : index
    %c0_64 = arith.constant 0 : index
    %89 = vector.load %arg4[%c0, %c0_64] : memref<8x128xf32, #tpu.memory_space<vmem>>, vector<8x128xf32>
    %c0_65 = arith.constant 0 : index
    %c0_66 = arith.constant 0 : index
    %90 = vector.load %arg3[%c0_65, %c0_66] : memref<8x128xf32, #tpu.memory_space<vmem>>, vector<8x128xf32>
    tpu.vector_store %arg3[%c0_65, %c0_66], %89 {strides = array<i32>} : memref<8x128xf32, #tpu.memory_space<vmem>>, vector<8x128xf32>,
    return
  }
  func.func @transform_1(%arg0: i32, %arg1: memref<64xi32, #tpu.memory_space<smem>>) -> (i32, i32) {
    %c0_i32 = arith.constant 0 : i32
    %c0_i32_0 = arith.constant 0 : i32
    return %arg0, %c0_i32 : i32, i32
  }
}

module attributes {stable_mosaic.version = 11 : i64} {
  func.func @_linear_kernel(%arg0: i32, %arg1: memref<64x128xf32, #tpu.memory_space<vmem>>, %arg2: memref<128x512xbf16, #tpu.memory_space<vmem>>, %arg3: memref<1x512xf32, #tpu.memory_space<vmem>>, %arg4: memref<64x512xf32, #tpu.memory_space<vmem>>) attributes {dimension_semantics = [#tpu.dimension_semantics<parallel>], iteration_bounds = array<i64: 1>, scalar_prefetch = 0 : i64, scratch_operands = 0 : i64, tpu.core_type = #tpu.core_type<tc>, window_params = [{transform_indices = @transform_0, window_bounds = array<i64: 64, 128>}, {pipeline_mode = #tpu.pipeline_mode<synchronous>, transform_indices = @transform_1, window_bounds = array<i64: 128, 512>}, {pipeline_mode = #tpu.pipeline_mode<synchronous>, transform_indices = @transform_2, window_bounds = array<i64: 1, 512>}, {transform_indices = @transform_3, window_bounds = array<i64: 64, 512>}]} {
    %c0 = arith.constant 0 : index
    %c0_0 = arith.constant 0 : index
    %0 = vector.load %arg1[%c0, %c0_0] : memref<64x128xf32, #tpu.memory_space<vmem>>, vector<64x128xf32>
    %1 = arith.truncf %0 : vector<64x128xf32> to vector<64x128xbf16>
    %c0_1 = arith.constant 0 : index
    %c0_2 = arith.constant 0 : index
    %2 = vector.load %arg2[%c0_1, %c0_2] : memref<128x512xbf16, #tpu.memory_space<vmem>>, vector<128x512xbf16>
    %cst = arith.constant dense<0.000000e+00> : vector<64x512xf32>
    %3 = tpu.matmul %1, %2, %cst {dimension_numbers = #tpu.dot_dimension_numbers<[1], [0], [0], [1], [0, 0, 1, 1], [], []>} : vector<64x128xbf16>, vector<128x512xbf16>, vector<64x512xf32> -> vector<64x512xf32>
    %c0_3 = arith.constant 0 : index
    %c0_4 = arith.constant 0 : index
    %4 = vector.load %arg3[%c0_3, %c0_4] : memref<1x512xf32, #tpu.memory_space<vmem>>, vector<1x512xf32>
    %5 = vector.broadcast %4 : vector<1x512xf32> to vector<64x512xf32>
    %6 = arith.addf %3, %5 : vector<64x512xf32>
    %c0_5 = arith.constant 0 : index
    %c0_6 = arith.constant 0 : index
    %7 = vector.load %arg4[%c0_5, %c0_6] : memref<64x512xf32, #tpu.memory_space<vmem>>, vector<64x512xf32>
    tpu.vector_store %arg4[%c0_5, %c0_6], %6 {strides = array<i32>} : memref<64x512xf32, #tpu.memory_space<vmem>>, vector<64x512xf32>,
    return
  }
  func.func @transform_0(%arg0: i32) -> (i32, i32) {
    %c0_i32 = arith.constant 0 : i32
    %c0_i32_0 = arith.constant 0 : i32
    return %arg0, %c0_i32 : i32, i32
  }
  func.func @transform_1(%arg0: i32) -> (i32, i32) {
    %c0_i32 = arith.constant 0 : i32
    %c0_i32_0 = arith.constant 0 : i32
    %c0_i32_1 = arith.constant 0 : i32
    return %c0_i32, %c0_i32_0 : i32, i32
  }
  func.func @transform_2(%arg0: i32) -> (i32, i32) {
    %c0_i32 = arith.constant 0 : i32
    %c0_i32_0 = arith.constant 0 : i32
    %c0_i32_1 = arith.constant 0 : i32
    return %c0_i32, %c0_i32_0 : i32, i32
  }
  func.func @transform_3(%arg0: i32) -> (i32, i32) {
    %c0_i32 = arith.constant 0 : i32
    %c0_i32_0 = arith.constant 0 : i32
    return %arg0, %c0_i32 : i32, i32
  }
}

module attributes {stable_mosaic.version = 11 : i64} {
  func.func @_lstm_recur_kernel(%arg0: i32, %arg1: memref<8x8x512xf32, #tpu.memory_space<vmem>>, %arg2: memref<128x512xbf16, #tpu.memory_space<vmem>>, %arg3: memref<8x8x128xf32, #tpu.memory_space<vmem>>, %arg4: memref<8x128xf32, #tpu.memory_space<vmem>>, %arg5: memref<8x128xf32, #tpu.memory_space<vmem>>) attributes {dimension_semantics = [#tpu.dimension_semantics<arbitrary>], iteration_bounds = array<i64: 1>, scalar_prefetch = 0 : i64, scratch_operands = 2 : i64, tpu.core_type = #tpu.core_type<tc>, window_params = [{transform_indices = @transform_0, window_bounds = array<i64: 8, 8, 512>}, {pipeline_mode = #tpu.pipeline_mode<synchronous>, transform_indices = @transform_1, window_bounds = array<i64: 128, 512>}, {transform_indices = @transform_2, window_bounds = array<i64: 8, 8, 128>}]} {
    %c0_i32 = arith.constant 0 : i32
    %0 = arith.cmpi eq, %arg0, %c0_i32 : i32
    %1 = arith.extui %0 : i1 to i32
    %c0_i32_0 = arith.constant 0 : i32
    %2 = arith.cmpi ne, %1, %c0_i32_0 : i32
    scf.if %2 {
      %cst_82 = arith.constant 0.000000e+00 : f32
      %272 = vector.broadcast %cst_82 : f32 to vector<8x128xf32>
      %c0_83 = arith.constant 0 : index
      %c0_84 = arith.constant 0 : index
      %273 = vector.load %arg4[%c0_83, %c0_84] : memref<8x128xf32, #tpu.memory_space<vmem>>, vector<8x128xf32>
      tpu.vector_store %arg4[%c0_83, %c0_84], %272 {strides = array<i32>} : memref<8x128xf32, #tpu.memory_space<vmem>>, vector<8x128xf32>,
      %cst_85 = arith.constant 0.000000e+00 : f32
      %274 = vector.broadcast %cst_85 : f32 to vector<8x128xf32>
      %c0_86 = arith.constant 0 : index
      %c0_87 = arith.constant 0 : index
      %275 = vector.load %arg5[%c0_86, %c0_87] : memref<8x128xf32, #tpu.memory_space<vmem>>, vector<8x128xf32>
      tpu.vector_store %arg5[%c0_86, %c0_87], %274 {strides = array<i32>} : memref<8x128xf32, #tpu.memory_space<vmem>>, vector<8x128xf32>,
    } else {
    }
    %c0 = arith.constant 0 : index
    %c0_1 = arith.constant 0 : index
    %3 = vector.load %arg2[%c0, %c0_1] : memref<128x512xbf16, #tpu.memory_space<vmem>>, vector<128x512xbf16>
    %c0_2 = arith.constant 0 : index
    %c0_3 = arith.constant 0 : index
    %4 = vector.load %arg4[%c0_2, %c0_3] : memref<8x128xf32, #tpu.memory_space<vmem>>, vector<8x128xf32>
    %c0_4 = arith.constant 0 : index
    %c0_5 = arith.constant 0 : index
    %5 = vector.load %arg5[%c0_4, %c0_5] : memref<8x128xf32, #tpu.memory_space<vmem>>, vector<8x128xf32>
    %c0_6 = arith.constant 0 : index
    %c0_7 = arith.constant 0 : index
    %c0_8 = arith.constant 0 : index
    %6 = vector.load %arg1[%c0_6, %c0_7, %c0_8] : memref<8x8x512xf32, #tpu.memory_space<vmem>>, vector<1x8x512xf32>
    %7 = vector.shape_cast %6 : vector<1x8x512xf32> to vector<8x512xf32>
    %8 = arith.truncf %4 : vector<8x128xf32> to vector<8x128xbf16>
    %cst = arith.constant dense<0.000000e+00> : vector<8x512xf32>
    %9 = tpu.matmul %8, %3, %cst {dimension_numbers = #tpu.dot_dimension_numbers<[1], [0], [0], [1], [0, 0, 1, 1], [], []>} : vector<8x128xbf16>, vector<128x512xbf16>, vector<8x512xf32> -> vector<8x512xf32>
    %10 = arith.addf %7, %9 : vector<8x512xf32>
    %11 = vector.extract_strided_slice %10 {offsets = [0, 0], sizes = [8, 128], strides = [1, 1]} : vector<8x512xf32> to vector<8x128xf32>
    %12 = arith.negf %11 : vector<8x128xf32>
    %13 = math.exp %12 : vector<8x128xf32>
    %cst_9 = arith.constant 1.000000e+00 : f32
    %14 = vector.broadcast %cst_9 : f32 to vector<8x128xf32>
    %15 = arith.addf %14, %13 : vector<8x128xf32>
    %16 = arith.divf %14, %15 : vector<8x128xf32>
    %17 = vector.extract_strided_slice %10 {offsets = [0, 128], sizes = [8, 128], strides = [1, 1]} : vector<8x512xf32> to vector<8x128xf32>
    %18 = arith.negf %17 : vector<8x128xf32>
    %19 = math.exp %18 : vector<8x128xf32>
    %cst_10 = arith.constant 1.000000e+00 : f32
    %20 = vector.broadcast %cst_10 : f32 to vector<8x128xf32>
    %21 = arith.addf %20, %19 : vector<8x128xf32>
    %22 = arith.divf %20, %21 : vector<8x128xf32>
    %23 = vector.extract_strided_slice %10 {offsets = [0, 256], sizes = [8, 128], strides = [1, 1]} : vector<8x512xf32> to vector<8x128xf32>
    %24 = math.tanh %23 : vector<8x128xf32>
    %25 = vector.extract_strided_slice %10 {offsets = [0, 384], sizes = [8, 128], strides = [1, 1]} : vector<8x512xf32> to vector<8x128xf32>
    %26 = arith.negf %25 : vector<8x128xf32>
    %27 = math.exp %26 : vector<8x128xf32>
    %cst_11 = arith.constant 1.000000e+00 : f32
    %28 = vector.broadcast %cst_11 : f32 to vector<8x128xf32>
    %29 = arith.addf %28, %27 : vector<8x128xf32>
    %30 = arith.divf %28, %29 : vector<8x128xf32>
    %31 = arith.mulf %22, %5 : vector<8x128xf32>
    %32 = arith.mulf %16, %24 : vector<8x128xf32>
    %33 = arith.addf %31, %32 : vector<8x128xf32>
    %34 = math.tanh %33 : vector<8x128xf32>
    %35 = arith.mulf %30, %34 : vector<8x128xf32>
    %c0_12 = arith.constant 0 : index
    %c0_13 = arith.constant 0 : index
    %c0_14 = arith.constant 0 : index
    %36 = vector.load %arg3[%c0_12, %c0_13, %c0_14] : memref<8x8x128xf32, #tpu.memory_space<vmem>>, vector<1x8x128xf32>
    %37 = vector.shape_cast %36 : vector<1x8x128xf32> to vector<8x128xf32>
    %38 = vector.shape_cast %35 : vector<8x128xf32> to vector<1x8x128xf32>
    tpu.vector_store %arg3[%c0_12, %c0_13, %c0_14], %38 {strides = array<i32>} : memref<8x8x128xf32, #tpu.memory_space<vmem>>, vector<1x8x128xf32>,
    %c1 = arith.constant 1 : index
    %c0_15 = arith.constant 0 : index
    %c0_16 = arith.constant 0 : index
    %39 = vector.load %arg1[%c1, %c0_15, %c0_16] : memref<8x8x512xf32, #tpu.memory_space<vmem>>, vector<1x8x512xf32>
    %40 = vector.shape_cast %39 : vector<1x8x512xf32> to vector<8x512xf32>
    %41 = arith.truncf %35 : vector<8x128xf32> to vector<8x128xbf16>
    %cst_17 = arith.constant dense<0.000000e+00> : vector<8x512xf32>
    %42 = tpu.matmul %41, %3, %cst_17 {dimension_numbers = #tpu.dot_dimension_numbers<[1], [0], [0], [1], [0, 0, 1, 1], [], []>} : vector<8x128xbf16>, vector<128x512xbf16>, vector<8x512xf32> -> vector<8x512xf32>
    %43 = arith.addf %40, %42 : vector<8x512xf32>
    %44 = vector.extract_strided_slice %43 {offsets = [0, 0], sizes = [8, 128], strides = [1, 1]} : vector<8x512xf32> to vector<8x128xf32>
    %45 = arith.negf %44 : vector<8x128xf32>
    %46 = math.exp %45 : vector<8x128xf32>
    %cst_18 = arith.constant 1.000000e+00 : f32
    %47 = vector.broadcast %cst_18 : f32 to vector<8x128xf32>
    %48 = arith.addf %47, %46 : vector<8x128xf32>
    %49 = arith.divf %47, %48 : vector<8x128xf32>
    %50 = vector.extract_strided_slice %43 {offsets = [0, 128], sizes = [8, 128], strides = [1, 1]} : vector<8x512xf32> to vector<8x128xf32>
    %51 = arith.negf %50 : vector<8x128xf32>
    %52 = math.exp %51 : vector<8x128xf32>
    %cst_19 = arith.constant 1.000000e+00 : f32
    %53 = vector.broadcast %cst_19 : f32 to vector<8x128xf32>
    %54 = arith.addf %53, %52 : vector<8x128xf32>
    %55 = arith.divf %53, %54 : vector<8x128xf32>
    %56 = vector.extract_strided_slice %43 {offsets = [0, 256], sizes = [8, 128], strides = [1, 1]} : vector<8x512xf32> to vector<8x128xf32>
    %57 = math.tanh %56 : vector<8x128xf32>
    %58 = vector.extract_strided_slice %43 {offsets = [0, 384], sizes = [8, 128], strides = [1, 1]} : vector<8x512xf32> to vector<8x128xf32>
    %59 = arith.negf %58 : vector<8x128xf32>
    %60 = math.exp %59 : vector<8x128xf32>
    %cst_20 = arith.constant 1.000000e+00 : f32
    %61 = vector.broadcast %cst_20 : f32 to vector<8x128xf32>
    %62 = arith.addf %61, %60 : vector<8x128xf32>
    %63 = arith.divf %61, %62 : vector<8x128xf32>
    %64 = arith.mulf %55, %33 : vector<8x128xf32>
    %65 = arith.mulf %49, %57 : vector<8x128xf32>
    %66 = arith.addf %64, %65 : vector<8x128xf32>
    %67 = math.tanh %66 : vector<8x128xf32>
    %68 = arith.mulf %63, %67 : vector<8x128xf32>
    %c1_21 = arith.constant 1 : index
    %c0_22 = arith.constant 0 : index
    %c0_23 = arith.constant 0 : index
    %69 = vector.load %arg3[%c1_21, %c0_22, %c0_23] : memref<8x8x128xf32, #tpu.memory_space<vmem>>, vector<1x8x128xf32>
    %70 = vector.shape_cast %69 : vector<1x8x128xf32> to vector<8x128xf32>
    %71 = vector.shape_cast %68 : vector<8x128xf32> to vector<1x8x128xf32>
    tpu.vector_store %arg3[%c1_21, %c0_22, %c0_23], %71 {strides = array<i32>} : memref<8x8x128xf32, #tpu.memory_space<vmem>>, vector<1x8x128xf32>,
    %c2 = arith.constant 2 : index
    %c0_24 = arith.constant 0 : index
    %c0_25 = arith.constant 0 : index
    %72 = vector.load %arg1[%c2, %c0_24, %c0_25] : memref<8x8x512xf32, #tpu.memory_space<vmem>>, vector<1x8x512xf32>
    %73 = vector.shape_cast %72 : vector<1x8x512xf32> to vector<8x512xf32>
    %74 = arith.truncf %68 : vector<8x128xf32> to vector<8x128xbf16>
    %cst_26 = arith.constant dense<0.000000e+00> : vector<8x512xf32>
    %75 = tpu.matmul %74, %3, %cst_26 {dimension_numbers = #tpu.dot_dimension_numbers<[1], [0], [0], [1], [0, 0, 1, 1], [], []>} : vector<8x128xbf16>, vector<128x512xbf16>, vector<8x512xf32> -> vector<8x512xf32>
    %76 = arith.addf %73, %75 : vector<8x512xf32>
    %77 = vector.extract_strided_slice %76 {offsets = [0, 0], sizes = [8, 128], strides = [1, 1]} : vector<8x512xf32> to vector<8x128xf32>
    %78 = arith.negf %77 : vector<8x128xf32>
    %79 = math.exp %78 : vector<8x128xf32>
    %cst_27 = arith.constant 1.000000e+00 : f32
    %80 = vector.broadcast %cst_27 : f32 to vector<8x128xf32>
    %81 = arith.addf %80, %79 : vector<8x128xf32>
    %82 = arith.divf %80, %81 : vector<8x128xf32>
    %83 = vector.extract_strided_slice %76 {offsets = [0, 128], sizes = [8, 128], strides = [1, 1]} : vector<8x512xf32> to vector<8x128xf32>
    %84 = arith.negf %83 : vector<8x128xf32>
    %85 = math.exp %84 : vector<8x128xf32>
    %cst_28 = arith.constant 1.000000e+00 : f32
    %86 = vector.broadcast %cst_28 : f32 to vector<8x128xf32>
    %87 = arith.addf %86, %85 : vector<8x128xf32>
    %88 = arith.divf %86, %87 : vector<8x128xf32>
    %89 = vector.extract_strided_slice %76 {offsets = [0, 256], sizes = [8, 128], strides = [1, 1]} : vector<8x512xf32> to vector<8x128xf32>
    %90 = math.tanh %89 : vector<8x128xf32>
    %91 = vector.extract_strided_slice %76 {offsets = [0, 384], sizes = [8, 128], strides = [1, 1]} : vector<8x512xf32> to vector<8x128xf32>
    %92 = arith.negf %91 : vector<8x128xf32>
    %93 = math.exp %92 : vector<8x128xf32>
    %cst_29 = arith.constant 1.000000e+00 : f32
    %94 = vector.broadcast %cst_29 : f32 to vector<8x128xf32>
    %95 = arith.addf %94, %93 : vector<8x128xf32>
    %96 = arith.divf %94, %95 : vector<8x128xf32>
    %97 = arith.mulf %88, %66 : vector<8x128xf32>
    %98 = arith.mulf %82, %90 : vector<8x128xf32>
    %99 = arith.addf %97, %98 : vector<8x128xf32>
    %100 = math.tanh %99 : vector<8x128xf32>
    %101 = arith.mulf %96, %100 : vector<8x128xf32>
    %c2_30 = arith.constant 2 : index
    %c0_31 = arith.constant 0 : index
    %c0_32 = arith.constant 0 : index
    %102 = vector.load %arg3[%c2_30, %c0_31, %c0_32] : memref<8x8x128xf32, #tpu.memory_space<vmem>>, vector<1x8x128xf32>
    %103 = vector.shape_cast %102 : vector<1x8x128xf32> to vector<8x128xf32>
    %104 = vector.shape_cast %101 : vector<8x128xf32> to vector<1x8x128xf32>
    tpu.vector_store %arg3[%c2_30, %c0_31, %c0_32], %104 {strides = array<i32>} : memref<8x8x128xf32, #tpu.memory_space<vmem>>, vector<1x8x128xf32>,
    %c3 = arith.constant 3 : index
    %c0_33 = arith.constant 0 : index
    %c0_34 = arith.constant 0 : index
    %105 = vector.load %arg1[%c3, %c0_33, %c0_34] : memref<8x8x512xf32, #tpu.memory_space<vmem>>, vector<1x8x512xf32>
    %106 = vector.shape_cast %105 : vector<1x8x512xf32> to vector<8x512xf32>
    %107 = arith.truncf %101 : vector<8x128xf32> to vector<8x128xbf16>
    %cst_35 = arith.constant dense<0.000000e+00> : vector<8x512xf32>
    %108 = tpu.matmul %107, %3, %cst_35 {dimension_numbers = #tpu.dot_dimension_numbers<[1], [0], [0], [1], [0, 0, 1, 1], [], []>} : vector<8x128xbf16>, vector<128x512xbf16>, vector<8x512xf32> -> vector<8x512xf32>
    %109 = arith.addf %106, %108 : vector<8x512xf32>
    %110 = vector.extract_strided_slice %109 {offsets = [0, 0], sizes = [8, 128], strides = [1, 1]} : vector<8x512xf32> to vector<8x128xf32>
    %111 = arith.negf %110 : vector<8x128xf32>
    %112 = math.exp %111 : vector<8x128xf32>
    %cst_36 = arith.constant 1.000000e+00 : f32
    %113 = vector.broadcast %cst_36 : f32 to vector<8x128xf32>
    %114 = arith.addf %113, %112 : vector<8x128xf32>
    %115 = arith.divf %113, %114 : vector<8x128xf32>
    %116 = vector.extract_strided_slice %109 {offsets = [0, 128], sizes = [8, 128], strides = [1, 1]} : vector<8x512xf32> to vector<8x128xf32>
    %117 = arith.negf %116 : vector<8x128xf32>
    %118 = math.exp %117 : vector<8x128xf32>
    %cst_37 = arith.constant 1.000000e+00 : f32
    %119 = vector.broadcast %cst_37 : f32 to vector<8x128xf32>
    %120 = arith.addf %119, %118 : vector<8x128xf32>
    %121 = arith.divf %119, %120 : vector<8x128xf32>
    %122 = vector.extract_strided_slice %109 {offsets = [0, 256], sizes = [8, 128], strides = [1, 1]} : vector<8x512xf32> to vector<8x128xf32>
    %123 = math.tanh %122 : vector<8x128xf32>
    %124 = vector.extract_strided_slice %109 {offsets = [0, 384], sizes = [8, 128], strides = [1, 1]} : vector<8x512xf32> to vector<8x128xf32>
    %125 = arith.negf %124 : vector<8x128xf32>
    %126 = math.exp %125 : vector<8x128xf32>
    %cst_38 = arith.constant 1.000000e+00 : f32
    %127 = vector.broadcast %cst_38 : f32 to vector<8x128xf32>
    %128 = arith.addf %127, %126 : vector<8x128xf32>
    %129 = arith.divf %127, %128 : vector<8x128xf32>
    %130 = arith.mulf %121, %99 : vector<8x128xf32>
    %131 = arith.mulf %115, %123 : vector<8x128xf32>
    %132 = arith.addf %130, %131 : vector<8x128xf32>
    %133 = math.tanh %132 : vector<8x128xf32>
    %134 = arith.mulf %129, %133 : vector<8x128xf32>
    %c3_39 = arith.constant 3 : index
    %c0_40 = arith.constant 0 : index
    %c0_41 = arith.constant 0 : index
    %135 = vector.load %arg3[%c3_39, %c0_40, %c0_41] : memref<8x8x128xf32, #tpu.memory_space<vmem>>, vector<1x8x128xf32>
    %136 = vector.shape_cast %135 : vector<1x8x128xf32> to vector<8x128xf32>
    %137 = vector.shape_cast %134 : vector<8x128xf32> to vector<1x8x128xf32>
    tpu.vector_store %arg3[%c3_39, %c0_40, %c0_41], %137 {strides = array<i32>} : memref<8x8x128xf32, #tpu.memory_space<vmem>>, vector<1x8x128xf32>,
    %c4 = arith.constant 4 : index
    %c0_42 = arith.constant 0 : index
    %c0_43 = arith.constant 0 : index
    %138 = vector.load %arg1[%c4, %c0_42, %c0_43] : memref<8x8x512xf32, #tpu.memory_space<vmem>>, vector<1x8x512xf32>
    %139 = vector.shape_cast %138 : vector<1x8x512xf32> to vector<8x512xf32>
    %140 = arith.truncf %134 : vector<8x128xf32> to vector<8x128xbf16>
    %cst_44 = arith.constant dense<0.000000e+00> : vector<8x512xf32>
    %141 = tpu.matmul %140, %3, %cst_44 {dimension_numbers = #tpu.dot_dimension_numbers<[1], [0], [0], [1], [0, 0, 1, 1], [], []>} : vector<8x128xbf16>, vector<128x512xbf16>, vector<8x512xf32> -> vector<8x512xf32>
    %142 = arith.addf %139, %141 : vector<8x512xf32>
    %143 = vector.extract_strided_slice %142 {offsets = [0, 0], sizes = [8, 128], strides = [1, 1]} : vector<8x512xf32> to vector<8x128xf32>
    %144 = arith.negf %143 : vector<8x128xf32>
    %145 = math.exp %144 : vector<8x128xf32>
    %cst_45 = arith.constant 1.000000e+00 : f32
    %146 = vector.broadcast %cst_45 : f32 to vector<8x128xf32>
    %147 = arith.addf %146, %145 : vector<8x128xf32>
    %148 = arith.divf %146, %147 : vector<8x128xf32>
    %149 = vector.extract_strided_slice %142 {offsets = [0, 128], sizes = [8, 128], strides = [1, 1]} : vector<8x512xf32> to vector<8x128xf32>
    %150 = arith.negf %149 : vector<8x128xf32>
    %151 = math.exp %150 : vector<8x128xf32>
    %cst_46 = arith.constant 1.000000e+00 : f32
    %152 = vector.broadcast %cst_46 : f32 to vector<8x128xf32>
    %153 = arith.addf %152, %151 : vector<8x128xf32>
    %154 = arith.divf %152, %153 : vector<8x128xf32>
    %155 = vector.extract_strided_slice %142 {offsets = [0, 256], sizes = [8, 128], strides = [1, 1]} : vector<8x512xf32> to vector<8x128xf32>
    %156 = math.tanh %155 : vector<8x128xf32>
    %157 = vector.extract_strided_slice %142 {offsets = [0, 384], sizes = [8, 128], strides = [1, 1]} : vector<8x512xf32> to vector<8x128xf32>
    %158 = arith.negf %157 : vector<8x128xf32>
    %159 = math.exp %158 : vector<8x128xf32>
    %cst_47 = arith.constant 1.000000e+00 : f32
    %160 = vector.broadcast %cst_47 : f32 to vector<8x128xf32>
    %161 = arith.addf %160, %159 : vector<8x128xf32>
    %162 = arith.divf %160, %161 : vector<8x128xf32>
    %163 = arith.mulf %154, %132 : vector<8x128xf32>
    %164 = arith.mulf %148, %156 : vector<8x128xf32>
    %165 = arith.addf %163, %164 : vector<8x128xf32>
    %166 = math.tanh %165 : vector<8x128xf32>
    %167 = arith.mulf %162, %166 : vector<8x128xf32>
    %c4_48 = arith.constant 4 : index
    %c0_49 = arith.constant 0 : index
    %c0_50 = arith.constant 0 : index
    %168 = vector.load %arg3[%c4_48, %c0_49, %c0_50] : memref<8x8x128xf32, #tpu.memory_space<vmem>>, vector<1x8x128xf32>
    %169 = vector.shape_cast %168 : vector<1x8x128xf32> to vector<8x128xf32>
    %170 = vector.shape_cast %167 : vector<8x128xf32> to vector<1x8x128xf32>
    tpu.vector_store %arg3[%c4_48, %c0_49, %c0_50], %170 {strides = array<i32>} : memref<8x8x128xf32, #tpu.memory_space<vmem>>, vector<1x8x128xf32>,
    %c5 = arith.constant 5 : index
    %c0_51 = arith.constant 0 : index
    %c0_52 = arith.constant 0 : index
    %171 = vector.load %arg1[%c5, %c0_51, %c0_52] : memref<8x8x512xf32, #tpu.memory_space<vmem>>, vector<1x8x512xf32>
    %172 = vector.shape_cast %171 : vector<1x8x512xf32> to vector<8x512xf32>
    %173 = arith.truncf %167 : vector<8x128xf32> to vector<8x128xbf16>
    %cst_53 = arith.constant dense<0.000000e+00> : vector<8x512xf32>
    %174 = tpu.matmul %173, %3, %cst_53 {dimension_numbers = #tpu.dot_dimension_numbers<[1], [0], [0], [1], [0, 0, 1, 1], [], []>} : vector<8x128xbf16>, vector<128x512xbf16>, vector<8x512xf32> -> vector<8x512xf32>
    %175 = arith.addf %172, %174 : vector<8x512xf32>
    %176 = vector.extract_strided_slice %175 {offsets = [0, 0], sizes = [8, 128], strides = [1, 1]} : vector<8x512xf32> to vector<8x128xf32>
    %177 = arith.negf %176 : vector<8x128xf32>
    %178 = math.exp %177 : vector<8x128xf32>
    %cst_54 = arith.constant 1.000000e+00 : f32
    %179 = vector.broadcast %cst_54 : f32 to vector<8x128xf32>
    %180 = arith.addf %179, %178 : vector<8x128xf32>
    %181 = arith.divf %179, %180 : vector<8x128xf32>
    %182 = vector.extract_strided_slice %175 {offsets = [0, 128], sizes = [8, 128], strides = [1, 1]} : vector<8x512xf32> to vector<8x128xf32>
    %183 = arith.negf %182 : vector<8x128xf32>
    %184 = math.exp %183 : vector<8x128xf32>
    %cst_55 = arith.constant 1.000000e+00 : f32
    %185 = vector.broadcast %cst_55 : f32 to vector<8x128xf32>
    %186 = arith.addf %185, %184 : vector<8x128xf32>
    %187 = arith.divf %185, %186 : vector<8x128xf32>
    %188 = vector.extract_strided_slice %175 {offsets = [0, 256], sizes = [8, 128], strides = [1, 1]} : vector<8x512xf32> to vector<8x128xf32>
    %189 = math.tanh %188 : vector<8x128xf32>
    %190 = vector.extract_strided_slice %175 {offsets = [0, 384], sizes = [8, 128], strides = [1, 1]} : vector<8x512xf32> to vector<8x128xf32>
    %191 = arith.negf %190 : vector<8x128xf32>
    %192 = math.exp %191 : vector<8x128xf32>
    %cst_56 = arith.constant 1.000000e+00 : f32
    %193 = vector.broadcast %cst_56 : f32 to vector<8x128xf32>
    %194 = arith.addf %193, %192 : vector<8x128xf32>
    %195 = arith.divf %193, %194 : vector<8x128xf32>
    %196 = arith.mulf %187, %165 : vector<8x128xf32>
    %197 = arith.mulf %181, %189 : vector<8x128xf32>
    %198 = arith.addf %196, %197 : vector<8x128xf32>
    %199 = math.tanh %198 : vector<8x128xf32>
    %200 = arith.mulf %195, %199 : vector<8x128xf32>
    %c5_57 = arith.constant 5 : index
    %c0_58 = arith.constant 0 : index
    %c0_59 = arith.constant 0 : index
    %201 = vector.load %arg3[%c5_57, %c0_58, %c0_59] : memref<8x8x128xf32, #tpu.memory_space<vmem>>, vector<1x8x128xf32>
    %202 = vector.shape_cast %201 : vector<1x8x128xf32> to vector<8x128xf32>
    %203 = vector.shape_cast %200 : vector<8x128xf32> to vector<1x8x128xf32>
    tpu.vector_store %arg3[%c5_57, %c0_58, %c0_59], %203 {strides = array<i32>} : memref<8x8x128xf32, #tpu.memory_space<vmem>>, vector<1x8x128xf32>,
    %c6 = arith.constant 6 : index
    %c0_60 = arith.constant 0 : index
    %c0_61 = arith.constant 0 : index
    %204 = vector.load %arg1[%c6, %c0_60, %c0_61] : memref<8x8x512xf32, #tpu.memory_space<vmem>>, vector<1x8x512xf32>
    %205 = vector.shape_cast %204 : vector<1x8x512xf32> to vector<8x512xf32>
    %206 = arith.truncf %200 : vector<8x128xf32> to vector<8x128xbf16>
    %cst_62 = arith.constant dense<0.000000e+00> : vector<8x512xf32>
    %207 = tpu.matmul %206, %3, %cst_62 {dimension_numbers = #tpu.dot_dimension_numbers<[1], [0], [0], [1], [0, 0, 1, 1], [], []>} : vector<8x128xbf16>, vector<128x512xbf16>, vector<8x512xf32> -> vector<8x512xf32>
    %208 = arith.addf %205, %207 : vector<8x512xf32>
    %209 = vector.extract_strided_slice %208 {offsets = [0, 0], sizes = [8, 128], strides = [1, 1]} : vector<8x512xf32> to vector<8x128xf32>
    %210 = arith.negf %209 : vector<8x128xf32>
    %211 = math.exp %210 : vector<8x128xf32>
    %cst_63 = arith.constant 1.000000e+00 : f32
    %212 = vector.broadcast %cst_63 : f32 to vector<8x128xf32>
    %213 = arith.addf %212, %211 : vector<8x128xf32>
    %214 = arith.divf %212, %213 : vector<8x128xf32>
    %215 = vector.extract_strided_slice %208 {offsets = [0, 128], sizes = [8, 128], strides = [1, 1]} : vector<8x512xf32> to vector<8x128xf32>
    %216 = arith.negf %215 : vector<8x128xf32>
    %217 = math.exp %216 : vector<8x128xf32>
    %cst_64 = arith.constant 1.000000e+00 : f32
    %218 = vector.broadcast %cst_64 : f32 to vector<8x128xf32>
    %219 = arith.addf %218, %217 : vector<8x128xf32>
    %220 = arith.divf %218, %219 : vector<8x128xf32>
    %221 = vector.extract_strided_slice %208 {offsets = [0, 256], sizes = [8, 128], strides = [1, 1]} : vector<8x512xf32> to vector<8x128xf32>
    %222 = math.tanh %221 : vector<8x128xf32>
    %223 = vector.extract_strided_slice %208 {offsets = [0, 384], sizes = [8, 128], strides = [1, 1]} : vector<8x512xf32> to vector<8x128xf32>
    %224 = arith.negf %223 : vector<8x128xf32>
    %225 = math.exp %224 : vector<8x128xf32>
    %cst_65 = arith.constant 1.000000e+00 : f32
    %226 = vector.broadcast %cst_65 : f32 to vector<8x128xf32>
    %227 = arith.addf %226, %225 : vector<8x128xf32>
    %228 = arith.divf %226, %227 : vector<8x128xf32>
    %229 = arith.mulf %220, %198 : vector<8x128xf32>
    %230 = arith.mulf %214, %222 : vector<8x128xf32>
    %231 = arith.addf %229, %230 : vector<8x128xf32>
    %232 = math.tanh %231 : vector<8x128xf32>
    %233 = arith.mulf %228, %232 : vector<8x128xf32>
    %c6_66 = arith.constant 6 : index
    %c0_67 = arith.constant 0 : index
    %c0_68 = arith.constant 0 : index
    %234 = vector.load %arg3[%c6_66, %c0_67, %c0_68] : memref<8x8x128xf32, #tpu.memory_space<vmem>>, vector<1x8x128xf32>
    %235 = vector.shape_cast %234 : vector<1x8x128xf32> to vector<8x128xf32>
    %236 = vector.shape_cast %233 : vector<8x128xf32> to vector<1x8x128xf32>
    tpu.vector_store %arg3[%c6_66, %c0_67, %c0_68], %236 {strides = array<i32>} : memref<8x8x128xf32, #tpu.memory_space<vmem>>, vector<1x8x128xf32>,
    %c7 = arith.constant 7 : index
    %c0_69 = arith.constant 0 : index
    %c0_70 = arith.constant 0 : index
    %237 = vector.load %arg1[%c7, %c0_69, %c0_70] : memref<8x8x512xf32, #tpu.memory_space<vmem>>, vector<1x8x512xf32>
    %238 = vector.shape_cast %237 : vector<1x8x512xf32> to vector<8x512xf32>
    %239 = arith.truncf %233 : vector<8x128xf32> to vector<8x128xbf16>
    %cst_71 = arith.constant dense<0.000000e+00> : vector<8x512xf32>
    %240 = tpu.matmul %239, %3, %cst_71 {dimension_numbers = #tpu.dot_dimension_numbers<[1], [0], [0], [1], [0, 0, 1, 1], [], []>} : vector<8x128xbf16>, vector<128x512xbf16>, vector<8x512xf32> -> vector<8x512xf32>
    %241 = arith.addf %238, %240 : vector<8x512xf32>
    %242 = vector.extract_strided_slice %241 {offsets = [0, 0], sizes = [8, 128], strides = [1, 1]} : vector<8x512xf32> to vector<8x128xf32>
    %243 = arith.negf %242 : vector<8x128xf32>
    %244 = math.exp %243 : vector<8x128xf32>
    %cst_72 = arith.constant 1.000000e+00 : f32
    %245 = vector.broadcast %cst_72 : f32 to vector<8x128xf32>
    %246 = arith.addf %245, %244 : vector<8x128xf32>
    %247 = arith.divf %245, %246 : vector<8x128xf32>
    %248 = vector.extract_strided_slice %241 {offsets = [0, 128], sizes = [8, 128], strides = [1, 1]} : vector<8x512xf32> to vector<8x128xf32>
    %249 = arith.negf %248 : vector<8x128xf32>
    %250 = math.exp %249 : vector<8x128xf32>
    %cst_73 = arith.constant 1.000000e+00 : f32
    %251 = vector.broadcast %cst_73 : f32 to vector<8x128xf32>
    %252 = arith.addf %251, %250 : vector<8x128xf32>
    %253 = arith.divf %251, %252 : vector<8x128xf32>
    %254 = vector.extract_strided_slice %241 {offsets = [0, 256], sizes = [8, 128], strides = [1, 1]} : vector<8x512xf32> to vector<8x128xf32>
    %255 = math.tanh %254 : vector<8x128xf32>
    %256 = vector.extract_strided_slice %241 {offsets = [0, 384], sizes = [8, 128], strides = [1, 1]} : vector<8x512xf32> to vector<8x128xf32>
    %257 = arith.negf %256 : vector<8x128xf32>
    %258 = math.exp %257 : vector<8x128xf32>
    %cst_74 = arith.constant 1.000000e+00 : f32
    %259 = vector.broadcast %cst_74 : f32 to vector<8x128xf32>
    %260 = arith.addf %259, %258 : vector<8x128xf32>
    %261 = arith.divf %259, %260 : vector<8x128xf32>
    %262 = arith.mulf %253, %231 : vector<8x128xf32>
    %263 = arith.mulf %247, %255 : vector<8x128xf32>
    %264 = arith.addf %262, %263 : vector<8x128xf32>
    %265 = math.tanh %264 : vector<8x128xf32>
    %266 = arith.mulf %261, %265 : vector<8x128xf32>
    %c7_75 = arith.constant 7 : index
    %c0_76 = arith.constant 0 : index
    %c0_77 = arith.constant 0 : index
    %267 = vector.load %arg3[%c7_75, %c0_76, %c0_77] : memref<8x8x128xf32, #tpu.memory_space<vmem>>, vector<1x8x128xf32>
    %268 = vector.shape_cast %267 : vector<1x8x128xf32> to vector<8x128xf32>
    %269 = vector.shape_cast %266 : vector<8x128xf32> to vector<1x8x128xf32>
    tpu.vector_store %arg3[%c7_75, %c0_76, %c0_77], %269 {strides = array<i32>} : memref<8x8x128xf32, #tpu.memory_space<vmem>>, vector<1x8x128xf32>,
    %c0_78 = arith.constant 0 : index
    %c0_79 = arith.constant 0 : index
    %270 = vector.load %arg4[%c0_78, %c0_79] : memref<8x128xf32, #tpu.memory_space<vmem>>, vector<8x128xf32>
    tpu.vector_store %arg4[%c0_78, %c0_79], %266 {strides = array<i32>} : memref<8x128xf32, #tpu.memory_space<vmem>>, vector<8x128xf32>,
    %c0_80 = arith.constant 0 : index
    %c0_81 = arith.constant 0 : index
    %271 = vector.load %arg5[%c0_80, %c0_81] : memref<8x128xf32, #tpu.memory_space<vmem>>, vector<8x128xf32>
    tpu.vector_store %arg5[%c0_80, %c0_81], %264 {strides = array<i32>} : memref<8x128xf32, #tpu.memory_space<vmem>>, vector<8x128xf32>,
    return
  }
  func.func @transform_0(%arg0: i32) -> (i32, i32, i32) {
    %c0_i32 = arith.constant 0 : i32
    %c0_i32_0 = arith.constant 0 : i32
    %c0_i32_1 = arith.constant 0 : i32
    return %arg0, %c0_i32, %c0_i32_0 : i32, i32, i32
  }
  func.func @transform_1(%arg0: i32) -> (i32, i32) {
    %c0_i32 = arith.constant 0 : i32
    %c0_i32_0 = arith.constant 0 : i32
    %c0_i32_1 = arith.constant 0 : i32
    return %c0_i32, %c0_i32_0 : i32, i32
  }
  func.func @transform_2(%arg0: i32) -> (i32, i32, i32) {
    %c0_i32 = arith.constant 0 : i32
    %c0_i32_0 = arith.constant 0 : i32
    %c0_i32_1 = arith.constant 0 : i32
    return %arg0, %c0_i32, %c0_i32_0 : i32, i32, i32
  }
}

module attributes {stable_mosaic.version = 11 : i64} {
  func.func @_linear_kernel(%arg0: i32, %arg1: memref<64x128xf32, #tpu.memory_space<vmem>>, %arg2: memref<128x128xbf16, #tpu.memory_space<vmem>>, %arg3: memref<1x128xf32, #tpu.memory_space<vmem>>, %arg4: memref<64x128xf32, #tpu.memory_space<vmem>>) attributes {dimension_semantics = [#tpu.dimension_semantics<parallel>], iteration_bounds = array<i64: 1>, scalar_prefetch = 0 : i64, scratch_operands = 0 : i64, tpu.core_type = #tpu.core_type<tc>, window_params = [{transform_indices = @transform_0, window_bounds = array<i64: 64, 128>}, {pipeline_mode = #tpu.pipeline_mode<synchronous>, transform_indices = @transform_1, window_bounds = array<i64: 128, 128>}, {pipeline_mode = #tpu.pipeline_mode<synchronous>, transform_indices = @transform_2, window_bounds = array<i64: 1, 128>}, {transform_indices = @transform_3, window_bounds = array<i64: 64, 128>}]} {
    %c0 = arith.constant 0 : index
    %c0_0 = arith.constant 0 : index
    %0 = vector.load %arg1[%c0, %c0_0] : memref<64x128xf32, #tpu.memory_space<vmem>>, vector<64x128xf32>
    %1 = arith.truncf %0 : vector<64x128xf32> to vector<64x128xbf16>
    %c0_1 = arith.constant 0 : index
    %c0_2 = arith.constant 0 : index
    %2 = vector.load %arg2[%c0_1, %c0_2] : memref<128x128xbf16, #tpu.memory_space<vmem>>, vector<128x128xbf16>
    %cst = arith.constant dense<0.000000e+00> : vector<64x128xf32>
    %3 = tpu.matmul %1, %2, %cst {dimension_numbers = #tpu.dot_dimension_numbers<[1], [0], [0], [1], [0, 0, 1, 1], [], []>} : vector<64x128xbf16>, vector<128x128xbf16>, vector<64x128xf32> -> vector<64x128xf32>
    %c0_3 = arith.constant 0 : index
    %c0_4 = arith.constant 0 : index
    %4 = vector.load %arg3[%c0_3, %c0_4] : memref<1x128xf32, #tpu.memory_space<vmem>>, vector<1x128xf32>
    %5 = vector.broadcast %4 : vector<1x128xf32> to vector<64x128xf32>
    %6 = arith.addf %3, %5 : vector<64x128xf32>
    %c0_5 = arith.constant 0 : index
    %c0_6 = arith.constant 0 : index
    %7 = vector.load %arg4[%c0_5, %c0_6] : memref<64x128xf32, #tpu.memory_space<vmem>>, vector<64x128xf32>
    tpu.vector_store %arg4[%c0_5, %c0_6], %6 {strides = array<i32>} : memref<64x128xf32, #tpu.memory_space<vmem>>, vector<64x128xf32>,
    return
  }
  func.func @transform_0(%arg0: i32) -> (i32, i32) {
    %c0_i32 = arith.constant 0 : i32
    %c0_i32_0 = arith.constant 0 : i32
    return %arg0, %c0_i32 : i32, i32
  }
  func.func @transform_1(%arg0: i32) -> (i32, i32) {
    %c0_i32 = arith.constant 0 : i32
    %c0_i32_0 = arith.constant 0 : i32
    %c0_i32_1 = arith.constant 0 : i32
    return %c0_i32, %c0_i32_0 : i32, i32
  }
  func.func @transform_2(%arg0: i32) -> (i32, i32) {
    %c0_i32 = arith.constant 0 : i32
    %c0_i32_0 = arith.constant 0 : i32
    %c0_i32_1 = arith.constant 0 : i32
    return %c0_i32, %c0_i32_0 : i32, i32
  }
  func.func @transform_3(%arg0: i32) -> (i32, i32) {
    %c0_i32 = arith.constant 0 : i32
    %c0_i32_0 = arith.constant 0 : i32
    return %arg0, %c0_i32 : i32, i32
  }
}

module attributes {stable_mosaic.version = 11 : i64} {
  func.func @_attn_kernel(%arg0: i32, %arg1: memref<8xi32, #tpu.memory_space<smem>>, %arg2: memref<1x8x128xf32, #tpu.memory_space<vmem>>, %arg3: memref<1x12x128xf32, #tpu.memory_space<vmem>>, %arg4: memref<1x12x128xf32, #tpu.memory_space<vmem>>, %arg5: memref<1x128xf32, #tpu.memory_space<vmem>>, %arg6: memref<1x8x128xf32, #tpu.memory_space<vmem>>) attributes {dimension_semantics = [#tpu.dimension_semantics<parallel>], iteration_bounds = array<i64: 8>, scalar_prefetch = 1 : i64, scratch_operands = 0 : i64, tpu.core_type = #tpu.core_type<tc>, window_params = [{transform_indices = @transform_0, window_bounds = array<i64: 1, 8, 128>}, {transform_indices = @transform_1, window_bounds = array<i64: 1, 12, 128>}, {transform_indices = @transform_2, window_bounds = array<i64: 1, 12, 128>}, {pipeline_mode = #tpu.pipeline_mode<synchronous>, transform_indices = @transform_3, window_bounds = array<i64: 1, 128>}, {transform_indices = @transform_4, window_bounds = array<i64: 1, 8, 128>}]} {
    %0 = arith.index_cast %arg0 : i32 to index
    %1 = memref.load %arg1[%0] : memref<8xi32, #tpu.memory_space<smem>>
    %c0 = arith.constant 0 : index
    %c0_0 = arith.constant 0 : index
    %c0_1 = arith.constant 0 : index
    %2 = vector.load %arg2[%c0, %c0_0, %c0_1] : memref<1x8x128xf32, #tpu.memory_space<vmem>>, vector<1x8x128xf32>
    %3 = vector.shape_cast %2 : vector<1x8x128xf32> to vector<8x128xf32>
    %c0_2 = arith.constant 0 : index
    %c0_3 = arith.constant 0 : index
    %c0_4 = arith.constant 0 : index
    %4 = vector.load %arg3[%c0_2, %c0_3, %c0_4] : memref<1x12x128xf32, #tpu.memory_space<vmem>>, vector<1x12x128xf32>
    %5 = vector.shape_cast %4 : vector<1x12x128xf32> to vector<12x128xf32>
    %c0_5 = arith.constant 0 : index
    %c0_6 = arith.constant 0 : index
    %c0_7 = arith.constant 0 : index
    %6 = vector.load %arg4[%c0_5, %c0_6, %c0_7] : memref<1x12x128xf32, #tpu.memory_space<vmem>>, vector<1x12x128xf32>
    %7 = vector.shape_cast %6 : vector<1x12x128xf32> to vector<12x128xf32>
    %c0_8 = arith.constant 0 : index
    %c0_9 = arith.constant 0 : index
    %8 = vector.load %arg5[%c0_8, %c0_9] : memref<1x128xf32, #tpu.memory_space<vmem>>, vector<1x128xf32>
    %9 = vector.shape_cast %3 : vector<8x128xf32> to vector<8x1x128xf32>
    %10 = vector.shape_cast %5 : vector<12x128xf32> to vector<1x12x128xf32>
    %11 = vector.broadcast %9 : vector<8x1x128xf32> to vector<8x12x128xf32>
    %12 = vector.broadcast %10 : vector<1x12x128xf32> to vector<8x12x128xf32>
    %13 = arith.addf %11, %12 : vector<8x12x128xf32>
    %14 = math.tanh %13 : vector<8x12x128xf32>
    %15 = vector.shape_cast %8 : vector<1x128xf32> to vector<1x1x128xf32>
    %16 = vector.broadcast %15 : vector<1x1x128xf32> to vector<8x12x128xf32>
    %17 = arith.mulf %14, %16 : vector<8x12x128xf32>
    %cst = arith.constant dense<0.000000e+00> : vector<8x12xf32>
    %18 = vector.multi_reduction <add>, %17, %cst [2] : vector<8x12x128xf32> to vector<8x12xf32>
    %19 = tpu.iota {dimensions = array<i32: 1>} : vector<8x12xi32>
    %20 = vector.broadcast %1 : i32 to vector<8x12xi32>
    %21 = arith.cmpi slt, %19, %20 : vector<8x12xi32>
    %cst_10 = arith.constant -1.000000e+30 : f32
    %22 = vector.broadcast %cst_10 : f32 to vector<8x12xf32>
    %23 = arith.select %21, %18, %22 : vector<8x12xi1>, vector<8x12xf32>
    %cst_11 = arith.constant dense<0xFF800000> : vector<8xf32>
    %24 = vector.multi_reduction <maximumf>, %23, %cst_11 [1] : vector<8x12xf32> to vector<8xf32>
    %25 = vector.shape_cast %24 : vector<8xf32> to vector<8x1xf32>
    %26 = vector.broadcast %25 : vector<8x1xf32> to vector<8x12xf32>
    %27 = arith.subf %23, %26 : vector<8x12xf32>
    %28 = math.exp %27 : vector<8x12xf32>
    %cst_12 = arith.constant dense<0.000000e+00> : vector<8xf32>
    %29 = vector.multi_reduction <add>, %28, %cst_12 [1] : vector<8x12xf32> to vector<8xf32>
    %30 = vector.shape_cast %29 : vector<8xf32> to vector<8x1xf32>
    %31 = vector.broadcast %30 : vector<8x1xf32> to vector<8x12xf32>
    %32 = arith.divf %28, %31 : vector<8x12xf32>
    %33 = arith.truncf %32 : vector<8x12xf32> to vector<8x12xbf16>
    %34 = arith.truncf %7 : vector<12x128xf32> to vector<12x128xbf16>
    %cst_13 = arith.constant dense<0.000000e+00> : vector<8x128xf32>
    %35 = tpu.matmul %33, %34, %cst_13 {dimension_numbers = #tpu.dot_dimension_numbers<[1], [0], [0], [1], [0, 0, 1, 1], [], []>} : vector<8x12xbf16>, vector<12x128xbf16>, vector<8x128xf32> -> vector<8x128xf32>
    %c0_14 = arith.constant 0 : index
    %c0_15 = arith.constant 0 : index
    %c0_16 = arith.constant 0 : index
    %36 = vector.load %arg6[%c0_14, %c0_15, %c0_16] : memref<1x8x128xf32, #tpu.memory_space<vmem>>, vector<1x8x128xf32>
    %37 = vector.shape_cast %36 : vector<1x8x128xf32> to vector<8x128xf32>
    %38 = vector.shape_cast %35 : vector<8x128xf32> to vector<1x8x128xf32>
    tpu.vector_store %arg6[%c0_14, %c0_15, %c0_16], %38 {strides = array<i32>} : memref<1x8x128xf32, #tpu.memory_space<vmem>>, vector<1x8x128xf32>,
    return
  }
  func.func @transform_0(%arg0: i32, %arg1: memref<8xi32, #tpu.memory_space<smem>>) -> (i32, i32, i32) {
    %c0_i32 = arith.constant 0 : i32
    %c0_i32_0 = arith.constant 0 : i32
    %c0_i32_1 = arith.constant 0 : i32
    return %arg0, %c0_i32, %c0_i32_0 : i32, i32, i32
  }
  func.func @transform_1(%arg0: i32, %arg1: memref<8xi32, #tpu.memory_space<smem>>) -> (i32, i32, i32) {
    %c0_i32 = arith.constant 0 : i32
    %c0_i32_0 = arith.constant 0 : i32
    %c0_i32_1 = arith.constant 0 : i32
    return %arg0, %c0_i32, %c0_i32_0 : i32, i32, i32
  }
  func.func @transform_2(%arg0: i32, %arg1: memref<8xi32, #tpu.memory_space<smem>>) -> (i32, i32, i32) {
    %c0_i32 = arith.constant 0 : i32
    %c0_i32_0 = arith.constant 0 : i32
    %c0_i32_1 = arith.constant 0 : i32
    return %arg0, %c0_i32, %c0_i32_0 : i32, i32, i32
  }
  func.func @transform_3(%arg0: i32, %arg1: memref<8xi32, #tpu.memory_space<smem>>) -> (i32, i32) {
    %c0_i32 = arith.constant 0 : i32
    %c0_i32_0 = arith.constant 0 : i32
    %c0_i32_1 = arith.constant 0 : i32
    return %c0_i32, %c0_i32_0 : i32, i32
  }
  func.func @transform_4(%arg0: i32, %arg1: memref<8xi32, #tpu.memory_space<smem>>) -> (i32, i32, i32) {
    %c0_i32 = arith.constant 0 : i32
    %c0_i32_0 = arith.constant 0 : i32
    %c0_i32_1 = arith.constant 0 : i32
    return %arg0, %c0_i32, %c0_i32_0 : i32, i32, i32
  }
}

</mosaic_0001>

<bundles_post_ra>
// kernel: stage1_forward.10
= control target key start
LH: loop header
LB: loop body
LE: loop exit
PB: predicated region body
PF: predicated region fallthrough
CT: control target
= control target key end

     0   :  { %v566_v1 = vmov 0   ;;  %v67_v51 = vlaneseq  ;;  %s934_s1 = inlined_call_operand.vmem [shape: bf16[128,512], index: 1, kind: input, shape index: {}]   ;;  %s935_s0 = inlined_call_operand.vmem [shape: f32[96,128], index: 0, kind: input, shape index: {}]   ;;  %s936_s2 = inlined_call_operand.vmem [shape: f32[1,512], index: 2, kind: input, shape index: {}]   ;;  %s937_s3 = inlined_call_operand.vmem [shape: f32[96,512], index: 3, kind: output, shape index: {}]  }
   0x1   :  { %v518_v0 = vld [vmem:[%s934_s1 + $0x4] ss:$16 sps:$4 sm:$0xff]   ;;  %279 = vmatprep.mubr.bf16.mxu0 %v566_v1  ;;  %372 = vmatprep.mubr.bf16.mxu1 %v566_v1  ;;  %v520_v2 = vld [vmem:[%s934_s1 + $0xc] ss:$16 sps:$4 sm:$0xff]   ;;  %v522_v3 = vld [vmem:[%s934_s1] ss:$16 sps:$4 sm:$0xff]  }
   0x2   :  { %247 = vmatprep.subr.bf16.mxu0 %v518_v0  ;;  %v523_v4 = vld [vmem:[%s934_s1 + $0x8] ss:$16 sps:$4 sm:$0xff]   ;;  %340 = vmatprep.subr.bf16.mxu1 %v520_v2  ;;  %v524_v5 = vld [vmem:[%s934_s1 + $0x24] ss:$16 sps:$4 sm:$0xff]   ;;  %v526_v6 = vld [vmem:[%s934_s1 + $0x2c] ss:$16 sps:$4 sm:$0xff]  }
   0x3   :  { %248 = vmatpush1.bf16.msra.mxu0 %v522_v3  ;;  %341 = vmatpush1.bf16.msra.mxu1 %v523_v4  ;;  %v528_v7 = vld [vmem:[%s934_s1 + $0x20] ss:$16 sps:$4 sm:$0xff]   ;;  %v529_v8 = vld [vmem:[%s934_s1 + $0x28] ss:$16 sps:$4 sm:$0xff]   ;;  %v530_v9 = vld [vmem:[%s934_s1 + $0x44] ss:$16 sps:$4 sm:$0xff]  }
   0x4   :  { %249 = vmatprep.subr.bf16.mxu0 %v524_v5  ;;  %342 = vmatprep.subr.bf16.mxu1 %v526_v6  ;;  %v532_v10 = vld [vmem:[%s934_s1 + $0x4c] ss:$16 sps:$4 sm:$0xff]   ;;  %v534_v11 = vld [vmem:[%s934_s1 + $0x40] ss:$16 sps:$4 sm:$0xff]   ;;  %v535_v12 = vld [vmem:[%s934_s1 + $0x48] ss:$16 sps:$4 sm:$0xff]  }
   0x5   :  { %v536_v13 = vld [vmem:[%s934_s1 + $0x64] ss:$16 sps:$4 sm:$0xff]   ;;  %v538_v14 = vld [vmem:[%s934_s1 + $0x6c] ss:$16 sps:$4 sm:$0xff]   ;;  %v540_v15 = vld [vmem:[%s934_s1 + $0x60] ss:$16 sps:$4 sm:$0xff]  }
   0x6   :  { %v541_v16 = vld [vmem:[%s934_s1 + $0x68] ss:$16 sps:$4 sm:$0xff]   ;;  %v542_v17 = vld [vmem:[%s934_s1 + $0x84] ss:$16 sps:$4 sm:$0xff]   ;;  %v544_v18 = vld [vmem:[%s934_s1 + $0x8c] ss:$16 sps:$4 sm:$0xff]  }
   0x7   :  { %250 = vmatpush1.bf16.msra.mxu0 %v528_v7  ;;  %343 = vmatpush1.bf16.msra.mxu1 %v529_v8  ;;  %v546_v19 = vld [vmem:[%s934_s1 + $0x80] ss:$16 sps:$4 sm:$0xff]   ;;  %v547_v20 = vld [vmem:[%s934_s1 + $0x88] ss:$16 sps:$4 sm:$0xff]   ;;  %v548_v21 = vld [vmem:[%s934_s1 + $0xa4] ss:$16 sps:$4 sm:$0xff]  }
   0x8   :  { %251 = vmatprep.subr.bf16.mxu0 %v530_v9  ;;  %344 = vmatprep.subr.bf16.mxu1 %v532_v10  ;;  %v550_v22 = vld [vmem:[%s934_s1 + $0xac] ss:$16 sps:$4 sm:$0xff]   ;;  %v552_v23 = vld [vmem:[%s934_s1 + $0xa0] ss:$16 sps:$4 sm:$0xff]   ;;  %v553_v24 = vld [vmem:[%s934_s1 + $0xa8] ss:$16 sps:$4 sm:$0xff]  }
   0x9   :  { %v554_v25 = vld [vmem:[%s934_s1 + $0xc4] ss:$16 sps:$4 sm:$0xff]   ;;  %v556_v26 = vld [vmem:[%s934_s1 + $0xcc] ss:$16 sps:$4 sm:$0xff]   ;;  %v558_v27 = vld [vmem:[%s934_s1 + $0xc0] ss:$16 sps:$4 sm:$0xff]  }
   0xa   :  { %v559_v28 = vld [vmem:[%s934_s1 + $0xc8] ss:$16 sps:$4 sm:$0xff]   ;;  %v560_v29 = vld [vmem:[%s934_s1 + $0xe4] ss:$16 sps:$4 sm:$0xff]   ;;  %v562_v30 = vld [vmem:[%s934_s1 + $0xec] ss:$16 sps:$4 sm:$0xff]  }
   0xb   :  { %252 = vmatpush1.bf16.msra.mxu0 %v534_v11  ;;  %345 = vmatpush1.bf16.msra.mxu1 %v535_v12  ;;  %v564_v31 = vld [vmem:[%s934_s1 + $0xe0] ss:$16 sps:$4 sm:$0xff]   ;;  %v565_v32 = vld [vmem:[%s934_s1 + $0xe8] ss:$16 sps:$4 sm:$0xff]   ;;  %v68_v52 = vshrl.u32 %v67_v51, 7 }
   0xc   :  { %253 = vmatprep.subr.bf16.mxu0 %v536_v13  ;;  %346 = vmatprep.subr.bf16.mxu1 %v538_v14  ;;  %v15_v33 = vld [vmem:[%s935_s0] sm:$0xff]  ;;  %v16_v34 = vld [vmem:[%s935_s0 + $0x8] sm:$0xff]  ;;  %v17_v36 = vld [vmem:[%s935_s0 + $0x10] sm:$0xff] }
   0xd   :  { %v27_v35 = vpack.c.bf16 %v16_v34, %v15_v33  ;;  %v18_v37 = vld [vmem:[%s935_s0 + $0x18] sm:$0xff]  ;;  %v19_v39 = vld [vmem:[%s935_s0 + $0x20] sm:$0xff]  ;;  %v20_v40 = vld [vmem:[%s935_s0 + $0x28] sm:$0xff]  ;;  %v69_v53 = vsub.s32 0, %v68_v52  ;;  %v77_v54 = vsub.s32 2, %v68_v52  ;;  %v73_v56 = vsub.s32 1, %v68_v52 }
   0xe   :  { %v28_v38 = vpack.c.bf16 %v18_v37, %v17_v36  ;;  %v29_v41 = vpack.c.bf16 %v20_v40, %v19_v39  ;;  %v21_v42 = vld [vmem:[%s935_s0 + $0x30] sm:$0xff]  ;;  %v22_v43 = vld [vmem:[%s935_s0 + $0x38] sm:$0xff]  ;;  %v23_v45 = vld [vmem:[%s935_s0 + $0x40] sm:$0xff]  ;;  %v81_v57 = vsub.s32 3, %v68_v52 }
   0xf   :  { %254 = vmatpush1.bf16.msra.mxu0 %v540_v15  ;;  %347 = vmatpush1.bf16.msra.mxu1 %v541_v16  ;;  %v30_v44 = vpack.c.bf16 %v22_v43, %v21_v42  ;;  %v24_v46 = vld [vmem:[%s935_s0 + $0x48] sm:$0xff]  ;;  %v25_v48 = vld [vmem:[%s935_s0 + $0x50] sm:$0xff]  ;;  %v26_v49 = vld [vmem:[%s935_s0 + $0x58] sm:$0xff] }
  0x10   :  { %255 = vmatprep.subr.bf16.mxu0 %v542_v17  ;;  %348 = vmatprep.subr.bf16.mxu1 %v544_v18  ;;  %v31_v47 = vpack.c.bf16 %v24_v46, %v23_v45  ;;  %v32_v50 = vpack.c.bf16 %v26_v49, %v25_v48  ;;  %v65_v55 = vld [vmem:[%s936_s2] sm:$0xf] }
  0x11   :  { %v734_v58 = vrot.slane %v65_v55, %v69_v53  ;;  %v736_v59 = vrot.slane %v65_v55, %v77_v54  ;;  %v738_v60 = vrot.slane %v65_v55, %v73_v56  ;;  %v740_v61 = vrot.slane %v65_v55, %v81_v57 }
  0x13   :  { %256 = vmatpush1.bf16.msra.mxu0 %v546_v19  ;;  %349 = vmatpush1.bf16.msra.mxu1 %v547_v20 }
  0x14   :  { %257 = vmatprep.subr.bf16.mxu0 %v548_v21  ;;  %350 = vmatprep.subr.bf16.mxu1 %v550_v22 }
  0x17   :  { %258 = vmatpush1.bf16.msra.mxu0 %v552_v23  ;;  %351 = vmatpush1.bf16.msra.mxu1 %v553_v24 }
  0x18   :  { %259 = vmatprep.subr.bf16.mxu0 %v554_v25  ;;  %352 = vmatprep.subr.bf16.mxu1 %v556_v26 }
  0x1b   :  { %260 = vmatpush1.bf16.msra.mxu0 %v558_v27  ;;  %353 = vmatpush1.bf16.msra.mxu1 %v559_v28 }
  0x1c   :  { %261 = vmatprep.subr.bf16.mxu0 %v560_v29  ;;  %354 = vmatprep.subr.bf16.mxu1 %v562_v30 }
  0x1f   :  { %262 = vmatpush1.bf16.msra.mxu0 %v564_v31  ;;  %355 = vmatpush1.bf16.msra.mxu1 %v565_v32 }
  0x22   :  { %280 = vmatmul.mubr.bf16.vlgmr.msra.gmra.mrb[0].mxu0 %v27_v35  ;;  %373 = vmatmul.mubr.bf16.vlgmr.msra.gmra.mrb[0].mxu1 %v27_v35 }
  0x23   :  { %289 = vmatprep.mubr.bf16.mxu0 %v566_v1  ;;  %382 = vmatprep.mubr.bf16.mxu1 %v566_v1 }
  0x2a   :  { %290 = vmatmul.mubr.bf16.gmra.mrb[4].mxu0 %v28_v38  ;;  %383 = vmatmul.mubr.bf16.gmra.mrb[4].mxu1 %v28_v38 }
  0x2b   :  { %299 = vmatprep.mubr.bf16.mxu0 %v566_v1  ;;  %392 = vmatprep.mubr.bf16.mxu1 %v566_v1 }
  0x32   :  { %300 = vmatmul.mubr.bf16.gmra.mrb[8].mxu0 %v29_v41  ;;  %393 = vmatmul.mubr.bf16.gmra.mrb[8].mxu1 %v29_v41 }
  0x33   :  { %309 = vmatprep.mubr.bf16.mxu0 %v566_v1  ;;  %402 = vmatprep.mubr.bf16.mxu1 %v566_v1 }
  0x3a   :  { %310 = vmatmul.mubr.bf16.gmra.mrb[12].mxu0 %v30_v44  ;;  %403 = vmatmul.mubr.bf16.gmra.mrb[12].mxu1 %v30_v44 }
  0x3b   :  { %319 = vmatprep.mubr.bf16.mxu0 %v566_v1  ;;  %412 = vmatprep.mubr.bf16.mxu1 %v566_v1 }
  0x42   :  { %320 = vmatmul.mubr.bf16.gmra.mrb[16].mxu0 %v31_v47  ;;  %413 = vmatmul.mubr.bf16.gmra.mrb[16].mxu1 %v31_v47 }
  0x43   :  { %329 = vmatprep.mubr.bf16.mxu0 %v566_v1  ;;  %422 = vmatprep.mubr.bf16.mxu1 %v566_v1 }
  0x4a   :  { %330 = vmatmul.mubr.bf16.gmra.mrb[20].mxu0 %v32_v50  ;;  %423 = vmatmul.mubr.bf16.gmra.mrb[20].mxu1 %v32_v50 }
  0xf5   :  { %v281_v62 = vpop.f32.mrb[0].mxu0  ;;  %v374_v63 = vpop.f32.mrb[0].mxu1 }
  0xf6   :  { %v282_v0 = vadd.f32 %v281_v62, %v734_v58  ;;  %v375_v1 = vadd.f32 %v374_v63, %v736_v59  ;;  %v283_v2 = vpop.f32.mrb[1].mxu0  ;;  %v376_v3 = vpop.f32.mrb[1].mxu1 }
  0xf7   :  { %v284_v4 = vadd.f32 %v283_v2, %v738_v60  ;;  %v377_v5 = vadd.f32 %v376_v3, %v740_v61  ;;  %v285_v6 = vpop.f32.mrb[2].mxu0  ;;  %v378_v7 = vpop.f32.mrb[2].mxu1 }
  0xf8   :  { %433 = vst [vmem:[%s937_s3] sm:$0xff] %v282_v0  ;;  %435 = vst [vmem:[%s937_s3 + $0x10] sm:$0xff] %v375_v1  ;;  %v286_v8 = vadd.f32 %v285_v6, %v734_v58  ;;  %v379_v9 = vadd.f32 %v378_v7, %v736_v59  ;;  %v287_v10 = vpop.f32.mrb[3].mxu0  ;;  %v380_v11 = vpop.f32.mrb[3].mxu1 }
  0xf9   :  { %434 = vst [vmem:[%s937_s3 + $0x8] sm:$0xff] %v284_v4  ;;  %436 = vst [vmem:[%s937_s3 + $0x18] sm:$0xff] %v377_v5  ;;  %v288_v12 = vadd.f32 %v287_v10, %v738_v60  ;;  %v381_v13 = vadd.f32 %v380_v11, %v740_v61 }
  0xfa   :  { %437 = vst [vmem:[%s937_s3 + $0x20] sm:$0xff] %v286_v8  ;;  %439 = vst [vmem:[%s937_s3 + $0x30] sm:$0xff] %v379_v9 }
  0xfb   :  { %438 = vst [vmem:[%s937_s3 + $0x28] sm:$0xff] %v288_v12  ;;  %440 = vst [vmem:[%s937_s3 + $0x38] sm:$0xff] %v381_v13 }
  0xfd   :  { %v291_v14 = vpop.f32.mrb[4].mxu0  ;;  %v384_v15 = vpop.f32.mrb[4].mxu1 }
  0xfe   :  { %v292_v16 = vadd.f32 %v291_v14, %v734_v58  ;;  %v385_v17 = vadd.f32 %v384_v15, %v736_v59  ;;  %v293_v18 = vpop.f32.mrb[5].mxu0  ;;  %v386_v19 = vpop.f32.mrb[5].mxu1 }
  0xff   :  { %v294_v20 = vadd.f32 %v293_v18, %v738_v60  ;;  %v387_v21 = vadd.f32 %v386_v19, %v740_v61  ;;  %v295_v22 = vpop.f32.mrb[6].mxu0  ;;  %v388_v23 = vpop.f32.mrb[6].mxu1 }
 0x100   :  { %441 = vst [vmem:[%s937_s3 + $0x40] sm:$0xff] %v292_v16  ;;  %443 = vst [vmem:[%s937_s3 + $0x50] sm:$0xff] %v385_v17  ;;  %v296_v24 = vadd.f32 %v295_v22, %v734_v58  ;;  %v389_v25 = vadd.f32 %v388_v23, %v736_v59  ;;  %v297_v26 = vpop.f32.mrb[7].mxu0  ;;  %v390_v27 = vpop.f32.mrb[7].mxu1 }
 0x101   :  { %442 = vst [vmem:[%s937_s3 + $0x48] sm:$0xff] %v294_v20  ;;  %444 = vst [vmem:[%s937_s3 + $0x58] sm:$0xff] %v387_v21  ;;  %v298_v28 = vadd.f32 %v297_v26, %v738_v60  ;;  %v391_v29 = vadd.f32 %v390_v27, %v740_v61 }
 0x102   :  { %445 = vst [vmem:[%s937_s3 + $0x60] sm:$0xff] %v296_v24  ;;  %447 = vst [vmem:[%s937_s3 + $0x70] sm:$0xff] %v389_v25 }
 0x103   :  { %446 = vst [vmem:[%s937_s3 + $0x68] sm:$0xff] %v298_v28  ;;  %448 = vst [vmem:[%s937_s3 + $0x78] sm:$0xff] %v391_v29 }
 0x105   :  { %v301_v30 = vpop.f32.mrb[8].mxu0  ;;  %v394_v31 = vpop.f32.mrb[8].mxu1 }
 0x106   :  { %v302_v32 = vadd.f32 %v301_v30, %v734_v58  ;;  %v395_v33 = vadd.f32 %v394_v31, %v736_v59  ;;  %v303_v34 = vpop.f32.mrb[9].mxu0  ;;  %v396_v35 = vpop.f32.mrb[9].mxu1 }
 0x107   :  { %v304_v36 = vadd.f32 %v303_v34, %v738_v60  ;;  %v397_v37 = vadd.f32 %v396_v35, %v740_v61  ;;  %v305_v38 = vpop.f32.mrb[10].mxu0  ;;  %v398_v39 = vpop.f32.mrb[10].mxu1 }
 0x108   :  { %449 = vst [vmem:[%s937_s3 + $0x80] sm:$0xff] %v302_v32  ;;  %451 = vst [vmem:[%s937_s3 + $0x90] sm:$0xff] %v395_v33  ;;  %v306_v40 = vadd.f32 %v305_v38, %v734_v58  ;;  %v399_v41 = vadd.f32 %v398_v39, %v736_v59  ;;  %v307_v42 = vpop.f32.mrb[11].mxu0  ;;  %v400_v43 = vpop.f32.mrb[11].mxu1 }
 0x109   :  { %450 = vst [vmem:[%s937_s3 + $0x88] sm:$0xff] %v304_v36  ;;  %452 = vst [vmem:[%s937_s3 + $0x98] sm:$0xff] %v397_v37  ;;  %v308_v44 = vadd.f32 %v307_v42, %v738_v60  ;;  %v401_v45 = vadd.f32 %v400_v43, %v740_v61 }
 0x10a   :  { %453 = vst [vmem:[%s937_s3 + $0xa0] sm:$0xff] %v306_v40  ;;  %455 = vst [vmem:[%s937_s3 + $0xb0] sm:$0xff] %v399_v41 }
 0x10b   :  { %454 = vst [vmem:[%s937_s3 + $0xa8] sm:$0xff] %v308_v44  ;;  %456 = vst [vmem:[%s937_s3 + $0xb8] sm:$0xff] %v401_v45 }
 0x10d   :  { %v311_v46 = vpop.f32.mrb[12].mxu0  ;;  %v404_v47 = vpop.f32.mrb[12].mxu1 }
 0x10e   :  { %v312_v48 = vadd.f32 %v311_v46, %v734_v58  ;;  %v405_v49 = vadd.f32 %v404_v47, %v736_v59  ;;  %v313_v50 = vpop.f32.mrb[13].mxu0  ;;  %v406_v51 = vpop.f32.mrb[13].mxu1 }
 0x10f   :  { %v314_v52 = vadd.f32 %v313_v50, %v738_v60  ;;  %v407_v53 = vadd.f32 %v406_v51, %v740_v61  ;;  %v315_v54 = vpop.f32.mrb[14].mxu0  ;;  %v408_v55 = vpop.f32.mrb[14].mxu1 }
 0x110   :  { %457 = vst [vmem:[%s937_s3 + $0xc0] sm:$0xff] %v312_v48  ;;  %459 = vst [vmem:[%s937_s3 + $0xd0] sm:$0xff] %v405_v49  ;;  %v316_v56 = vadd.f32 %v315_v54, %v734_v58  ;;  %v409_v57 = vadd.f32 %v408_v55, %v736_v59  ;;  %v317_v62 = vpop.f32.mrb[15].mxu0  ;;  %v410_v63 = vpop.f32.mrb[15].mxu1 }
 0x111   :  { %458 = vst [vmem:[%s937_s3 + $0xc8] sm:$0xff] %v314_v52  ;;  %460 = vst [vmem:[%s937_s3 + $0xd8] sm:$0xff] %v407_v53  ;;  %v318_v0 = vadd.f32 %v317_v62, %v738_v60  ;;  %v411_v1 = vadd.f32 %v410_v63, %v740_v61 }
 0x112   :  { %461 = vst [vmem:[%s937_s3 + $0xe0] sm:$0xff] %v316_v56  ;;  %463 = vst [vmem:[%s937_s3 + $0xf0] sm:$0xff] %v409_v57 }
 0x113   :  { %462 = vst [vmem:[%s937_s3 + $0xe8] sm:$0xff] %v318_v0  ;;  %464 = vst [vmem:[%s937_s3 + $0xf8] sm:$0xff] %v411_v1 }
 0x115   :  { %v321_v2 = vpop.f32.mrb[16].mxu0  ;;  %v414_v3 = vpop.f32.mrb[16].mxu1 }
 0x116   :  { %v322_v4 = vadd.f32 %v321_v2, %v734_v58  ;;  %v415_v5 = vadd.f32 %v414_v3, %v736_v59  ;;  %v323_v6 = vpop.f32.mrb[17].mxu0  ;;  %v416_v7 = vpop.f32.mrb[17].mxu1 }
 0x117   :  { %v324_v8 = vadd.f32 %v323_v6, %v738_v60  ;;  %v417_v9 = vadd.f32 %v416_v7, %v740_v61  ;;  %v325_v10 = vpop.f32.mrb[18].mxu0  ;;  %v418_v11 = vpop.f32.mrb[18].mxu1 }
 0x118   :  { %465 = vst [vmem:[%s937_s3 + $0x100] sm:$0xff] %v322_v4  ;;  %467 = vst [vmem:[%s937_s3 + $0x110] sm:$0xff] %v415_v5  ;;  %v326_v12 = vadd.f32 %v325_v10, %v734_v58  ;;  %v419_v13 = vadd.f32 %v418_v11, %v736_v59  ;;  %v327_v14 = vpop.f32.mrb[19].mxu0  ;;  %v420_v15 = vpop.f32.mrb[19].mxu1 }
 0x119   :  { %466 = vst [vmem:[%s937_s3 + $0x108] sm:$0xff] %v324_v8  ;;  %468 = vst [vmem:[%s937_s3 + $0x118] sm:$0xff] %v417_v9  ;;  %v328_v16 = vadd.f32 %v327_v14, %v738_v60  ;;  %v421_v17 = vadd.f32 %v420_v15, %v740_v61 }
 0x11a   :  { %469 = vst [vmem:[%s937_s3 + $0x120] sm:$0xff] %v326_v12  ;;  %471 = vst [vmem:[%s937_s3 + $0x130] sm:$0xff] %v419_v13 }
 0x11b   :  { %470 = vst [vmem:[%s937_s3 + $0x128] sm:$0xff] %v328_v16  ;;  %472 = vst [vmem:[%s937_s3 + $0x138] sm:$0xff] %v421_v17 }
 0x11d   :  { %v331_v18 = vpop.f32.mrb[20].mxu0  ;;  %v424_v19 = vpop.f32.mrb[20].mxu1 }
 0x11e   :  { %v332_v20 = vadd.f32 %v331_v18, %v734_v58  ;;  %v425_v21 = vadd.f32 %v424_v19, %v736_v59  ;;  %v333_v22 = vpop.f32.mrb[21].mxu0  ;;  %v426_v23 = vpop.f32.mrb[21].mxu1 }
 0x11f   :  { %v334_v24 = vadd.f32 %v333_v22, %v738_v60  ;;  %v427_v25 = vadd.f32 %v426_v23, %v740_v61  ;;  %v335_v26 = vpop.f32.mrb[22].mxu0  ;;  %v428_v27 = vpop.f32.mrb[22].mxu1 }
 0x120   :  { %473 = vst [vmem:[%s937_s3 + $0x140] sm:$0xff] %v332_v20  ;;  %475 = vst [vmem:[%s937_s3 + $0x150] sm:$0xff] %v425_v21  ;;  %v336_v28 = vadd.f32 %v335_v26, %v734_v58  ;;  %v429_v29 = vadd.f32 %v428_v27, %v736_v59  ;;  %v337_v30 = vpop.f32.mrb[23].mxu0  ;;  %v430_v31 = vpop.f32.mrb[23].mxu1 }
 0x121   :  { %474 = vst [vmem:[%s937_s3 + $0x148] sm:$0xff] %v334_v24  ;;  %476 = vst [vmem:[%s937_s3 + $0x158] sm:$0xff] %v427_v25  ;;  %v338_v32 = vadd.f32 %v337_v30, %v738_v60  ;;  %v431_v33 = vadd.f32 %v430_v31, %v740_v61 }
 0x122   :  { %477 = vst [vmem:[%s937_s3 + $0x160] sm:$0xff] %v336_v28  ;;  %479 = vst [vmem:[%s937_s3 + $0x170] sm:$0xff] %v429_v29 }
 0x123   :  { %478 = vst [vmem:[%s937_s3 + $0x168] sm:$0xff] %v338_v32  ;;  %480 = vst [vmem:[%s937_s3 + $0x178] sm:$0xff] %v431_v33 }

// kernel: stage1_forward.18
= control target key start
LH: loop header
LB: loop body
LE: loop exit
PB: predicated region body
PF: predicated region fallthrough
CT: control target
= control target key end

     0   :  { %s395_s1 = inlined_call_operand.vmem [shape: bf16[128,128], index: 1, kind: input, shape index: {}]   ;;  %s396_s0 = inlined_call_operand.vmem [shape: f32[96,128], index: 0, kind: input, shape index: {}]   ;;  %s397_s2 = inlined_call_operand.vmem [shape: f32[1,128], index: 2, kind: input, shape index: {}]   ;;  %s398_s3 = inlined_call_operand.vmem [shape: f32[96,128], index: 3, kind: output, shape index: {}]  }
   0x1   :  { %v268_v0 = vld [vmem:[%s395_s1] sm:$0xff]   ;;  %v269_v1 = vld [vmem:[%s395_s1 + $0x8] sm:$0xff]   ;;  %v270_v2 = vld [vmem:[%s395_s1 + $0x10] sm:$0xff]  }
   0x2   :  { %252 = vmatprep.subr.bf16.mxu1 %v268_v0  ;;  %224 = vmatprep.subr.bf16.mxu0 %v268_v0  ;;  %v271_v3 = vld [vmem:[%s395_s1 + $0x18] sm:$0xff]   ;;  %v19_v4 = vld [vmem:[%s396_s0 + $0x20] sm:$0xff]  ;;  %v20_v5 = vld [vmem:[%s396_s0 + $0x28] sm:$0xff] }
   0x3   :  { %260 = vmatpush3.bf16.msra.mxu1 %v268_v0  ;;  %225 = vmatpush3.bf16.msra.mxu0 %v268_v0  ;;  %v29_v6 = vpack.c.bf16 %v20_v5, %v19_v4  ;;  %v15_v7 = vld [vmem:[%s396_s0] sm:$0xff]  ;;  %v16_v8 = vld [vmem:[%s396_s0 + $0x8] sm:$0xff]  ;;  %v274_v12 = vld [vmem:[%s395_s1 + $0x30] sm:$0xff]  }
   0x4   :  { %253 = vmatprep.subr.bf16.mxu1 %v269_v1  ;;  %226 = vmatprep.subr.bf16.mxu0 %v269_v1  ;;  %v27_v9 = vpack.c.bf16 %v16_v8, %v15_v7  ;;  %v272_v10 = vld [vmem:[%s395_s1 + $0x20] sm:$0xff]   ;;  %v273_v11 = vld [vmem:[%s395_s1 + $0x28] sm:$0xff]   ;;  %v275_v13 = vld [vmem:[%s395_s1 + $0x38] sm:$0xff]  }
   0x5   :  { %244 = vmatprep.mubr.bf16.mxu1 %v29_v6  ;;  %v21_v14 = vld [vmem:[%s396_s0 + $0x30] sm:$0xff]  ;;  %v22_v15 = vld [vmem:[%s396_s0 + $0x38] sm:$0xff]  ;;  %v23_v18 = vld [vmem:[%s396_s0 + $0x40] sm:$0xff] }
   0x6   :  { %240 = vmatprep.mubr.bf16.mxu0 %v27_v9  ;;  %v17_v16 = vld [vmem:[%s396_s0 + $0x10] sm:$0xff]  ;;  %v18_v17 = vld [vmem:[%s396_s0 + $0x18] sm:$0xff]  ;;  %v24_v19 = vld [vmem:[%s396_s0 + $0x48] sm:$0xff]  ;;  %v30_v20 = vpack.c.bf16 %v22_v15, %v21_v14 }
   0x7   :  { %261 = vmatpush3.bf16.msra.mxu1 %v269_v1  ;;  %227 = vmatpush3.bf16.msra.mxu0 %v269_v1  ;;  %v28_v21 = vpack.c.bf16 %v18_v17, %v17_v16  ;;  %v31_v22 = vpack.c.bf16 %v24_v19, %v23_v18  ;;  %v25_v23 = vld [vmem:[%s396_s0 + $0x50] sm:$0xff]  ;;  %v26_v24 = vld [vmem:[%s396_s0 + $0x58] sm:$0xff]  ;;  %v201_v26 = vld [vmem:[%s397_s2] ss:$0 sm:$0xff] }
   0x8   :  { %254 = vmatprep.subr.bf16.mxu1 %v270_v2  ;;  %228 = vmatprep.subr.bf16.mxu0 %v270_v2  ;;  %v32_v25 = vpack.c.bf16 %v26_v24, %v25_v23 }
   0xb   :  { %262 = vmatpush3.bf16.msra.mxu1 %v270_v2  ;;  %229 = vmatpush3.bf16.msra.mxu0 %v270_v2 }
   0xc   :  { %255 = vmatprep.subr.bf16.mxu1 %v271_v3  ;;  %230 = vmatprep.subr.bf16.mxu0 %v271_v3 }
   0xf   :  { %263 = vmatpush3.bf16.msra.mxu1 %v271_v3  ;;  %231 = vmatpush3.bf16.msra.mxu0 %v271_v3 }
  0x10   :  { %256 = vmatprep.subr.bf16.mxu1 %v272_v10  ;;  %232 = vmatprep.subr.bf16.mxu0 %v272_v10 }
  0x13   :  { %264 = vmatpush3.bf16.msra.mxu1 %v272_v10  ;;  %233 = vmatpush3.bf16.msra.mxu0 %v272_v10 }
  0x14   :  { %257 = vmatprep.subr.bf16.mxu1 %v273_v11  ;;  %234 = vmatprep.subr.bf16.mxu0 %v273_v11 }
  0x17   :  { %265 = vmatpush3.bf16.msra.mxu1 %v273_v11  ;;  %235 = vmatpush3.bf16.msra.mxu0 %v273_v11 }
  0x18   :  { %258 = vmatprep.subr.bf16.mxu1 %v274_v12  ;;  %236 = vmatprep.subr.bf16.mxu0 %v274_v12 }
  0x1b   :  { %266 = vmatpush3.bf16.msra.mxu1 %v274_v12  ;;  %237 = vmatpush3.bf16.msra.mxu0 %v274_v12 }
  0x1c   :  { %259 = vmatprep.subr.bf16.mxu1 %v275_v13  ;;  %238 = vmatprep.subr.bf16.mxu0 %v275_v13 }
  0x1f   :  { %267 = vmatpush3.bf16.msra.mxu1 %v275_v13  ;;  %239 = vmatpush3.bf16.msra.mxu0 %v275_v13 }
  0x22   :  { %245 = vmatmul.mubr.bf16.vlgmr.msra.gmra.mrb[0].mxu1 %v30_v20  ;;  %241 = vmatmul.mubr.bf16.vlgmr.msra.gmra.mrb[0].mxu0 %v28_v21 }
  0x23   :  { %248 = vmatprep.mubr.bf16.mxu1 %v31_v22 }
  0x2a   :  { %249 = vmatmul.mubr.bf16.gmra.mrb[4].mxu1 %v32_v25 }
  0xf5   :  { %v246_v27 = vpop.f32.mrb[0].mxu1  ;;  %v242_v28 = vpop.f32.mrb[0].mxu0 }
  0xf6   :  { %v163_v29 = vadd.f32 %v246_v27, %v201_v26  ;;  %v154_v30 = vpop.f32.mrb[1].mxu1  ;;  %v147_v31 = vadd.f32 %v242_v28, %v201_v26  ;;  %v138_v32 = vpop.f32.mrb[1].mxu0 }
  0xf7   :  { %v155_v33 = vadd.f32 %v201_v26, %v154_v30  ;;  %v247_v34 = vpop.f32.mrb[2].mxu1  ;;  %v139_v35 = vadd.f32 %v201_v26, %v138_v32  ;;  %v243_v36 = vpop.f32.mrb[2].mxu0 }
  0xf8   :  { %191 = vst [vmem:[%s398_s3 + $0x30] sm:$0xff] %v163_v29  ;;  %v166_v37 = vadd.f32 %v247_v34, %v201_v26  ;;  %v157_v38 = vpop.f32.mrb[3].mxu1  ;;  %187 = vst [vmem:[%s398_s3 + $0x10] sm:$0xff] %v147_v31  ;;  %v150_v39 = vadd.f32 %v243_v36, %v201_v26  ;;  %v141_v40 = vpop.f32.mrb[3].mxu0 }
  0xf9   :  { %189 = vst [vmem:[%s398_s3 + $0x20] sm:$0xff] %v155_v33  ;;  %v158_v41 = vadd.f32 %v201_v26, %v157_v38  ;;  %185 = vst [vmem:[%s398_s3] sm:$0xff] %v139_v35  ;;  %v142_v42 = vadd.f32 %v201_v26, %v141_v40 }
  0xfa   :  { %192 = vst [vmem:[%s398_s3 + $0x38] sm:$0xff] %v166_v37  ;;  %188 = vst [vmem:[%s398_s3 + $0x18] sm:$0xff] %v150_v39 }
  0xfb   :  { %190 = vst [vmem:[%s398_s3 + $0x28] sm:$0xff] %v158_v41  ;;  %186 = vst [vmem:[%s398_s3 + $0x8] sm:$0xff] %v142_v42 }
  0xfd   :  { %v250_v43 = vpop.f32.mrb[4].mxu1 }
  0xfe   :  { %v179_v44 = vadd.f32 %v250_v43, %v201_v26  ;;  %v170_v45 = vpop.f32.mrb[5].mxu1 }
  0xff   :  { %v171_v46 = vadd.f32 %v201_v26, %v170_v45  ;;  %v251_v47 = vpop.f32.mrb[6].mxu1 }
 0x100   :  { %195 = vst [vmem:[%s398_s3 + $0x50] sm:$0xff] %v179_v44  ;;  %v182_v48 = vadd.f32 %v251_v47, %v201_v26  ;;  %v173_v49 = vpop.f32.mrb[7].mxu1 }
 0x101   :  { %193 = vst [vmem:[%s398_s3 + $0x40] sm:$0xff] %v171_v46  ;;  %v174_v50 = vadd.f32 %v201_v26, %v173_v49 }
 0x102   :  { %196 = vst [vmem:[%s398_s3 + $0x58] sm:$0xff] %v182_v48 }
 0x103   :  { %194 = vst [vmem:[%s398_s3 + $0x48] sm:$0xff] %v174_v50 }

// kernel: stage1_forward.14
= control target key start
LH: loop header
LB: loop body
LE: loop exit
PB: predicated region body
PF: predicated region fallthrough
CT: control target
= control target key end

     0   :  { %s783_s0 = inlined_call_operand.vmem [shape: s32[64], index: 0, kind: input, shape index: {}]   ;;  %s784_s1 = inlined_call_operand.vmem [shape: f32[512,128], index: 1, kind: input, shape index: {}]   ;;  %s785_s2 = inlined_call_operand.vmem [shape: f32[64,128], index: 2, kind: output, shape index: {}]  }
   0x1   :  { %s7_s11 = sshll.u32 %s783_s0, 4  ;;  %s8_s11 = int_to_ptr.vmem [resolvable:$true] %s7_s11 }
   0x2   :  { %s674_s12 = scalar_lea.vmem %s8_s11, 16  ;;  %p679_p1 = scmp.lt.s32.totalorder %s8_s11, %s8_s11 }
   0x3   :  { %p675_p0 = scmp.ne.s32.totalorder %s8_s11, %s674_s12  ;;  %p680_p2 = scmp.lt.s32.totalorder %s674_s12, %s674_s12 }
   0x5   :  { %p681_p3 = por %p680_p2, %p679_p1 }
   0x7   :  { %p682_p4 = pnand %p681_p3, %p675_p0 }
   0x9   :  { %685 = shalt.err (!%p682_p4)  }
   0xa   :  { %s712_s13 = smov [#allocation5]  }
   0xb   :  { %10 = dma.vmem_to_smem %s8_s11, 16, %s712_s13, [#allocation4] }
   0xc   :  { %690 = dma.done.wait [#allocation4], 16 }
   0xd   :  { %691 = vsyncadd [#allocation4], 4294967280 }
   0xe   :  { %12 = sfence }
   0xf   :  { %s731_s14 = smov 0  }
  0x10 LB: > { %p652_p5 = scmp.ge.s32.totalorder %s710_s14, 8  ;;  %s710_s14 = sphi %s731_s14, %s18_s14  }
  0x11   : > { %p50_p6 = scmp.lt.s32.totalorder (!%p652_p5), %s710_s14, 7  ;;  %s739_s0 = sshll.u32 (!%p652_p5), %s710_s14, 3 }
  0x12   : > { %43 = sbr.rel (%p652_p5) target bundleno = 117 (0x75), region = 12  ;;  %s55_s15 = sld [smem:[#allocation5 + %s739_s0]] (!%p652_p5) }
  0x18   : > { %s56_s23 = scalar_lea.vmem (!%p652_p5), %s784_s1, %s55_s15 }
  0x19   : > { %s51_s16 = scalar_select %p50_p6, %s710_s14, 7  ;;  %v74_v0 = vld [vmem:[%s56_s23] sm:$0x1] }
  0x1a   : > { %75 = vst [vmem:[#allocation2] sm:$0x1] %v74_v0 }
  0x1b   : > { %s653_s17 = sshll.u32 %s51_s16, 3 }
  0x1c   : > { %s746_s20 = scalar_lea.vmem %s785_s2, %s653_s17 }
  0x1d   : > { %100 = vsyncadd [#allocation3], 16  ;;  %s101_s24 = sadd.s32 1, %s739_s0 }
  0x1e   : > { %s102_s25 = sld [smem:[#allocation5 + %s101_s24]] }
  0x24   : > { %s103_s28 = scalar_lea.vmem %s784_s1, %s102_s25 }
  0x25   : > { %v123_v1 = vld [vmem:[%s103_s28] sm:$0x1] }
  0x26   : > { %124 = vst [vmem:[#allocation2 + $0x1] sm:$0x1] %v123_v1 }
  0x27   : > { %149 = vsyncadd [#allocation3 + $0x1], 16  ;;  %s150_s29 = sadd.s32 2, %s739_s0 }
  0x28   : > { %s151_s30 = sld [smem:[#allocation5 + %s150_s29]] }
  0x2e   : > { %s152_s5 = scalar_lea.vmem %s784_s1, %s151_s30 }
  0x2f   : > { %v172_v2 = vld [vmem:[%s152_s5] sm:$0x1] }
  0x30   : > { %173 = vst [vmem:[#allocation2 + $0x2] sm:$0x1] %v172_v2 }
  0x31   : > { %198 = vsyncadd [#allocation3 + $0x2], 16  ;;  %s199_s6 = sadd.s32 3, %s739_s0 }
  0x32   : > { %s200_s7 = sld [smem:[#allocation5 + %s199_s6]] }
  0x38   : > { %s201_s10 = scalar_lea.vmem %s784_s1, %s200_s7 }
  0x39   : > { %v221_v3 = vld [vmem:[%s201_s10] sm:$0x1] }
  0x3a   : > { %222 = vst [vmem:[#allocation2 + $0x3] sm:$0x1] %v221_v3 }
  0x3b   : > { %247 = vsyncadd [#allocation3 + $0x3], 16  ;;  %s248_s11 = sadd.s32 4, %s739_s0 }
  0x3c   : > { %s249_s12 = sld [smem:[#allocation5 + %s248_s11]] }
  0x42   : > { %s250_s16 = scalar_lea.vmem %s784_s1, %s249_s12 }
  0x43   : > { %v270_v4 = vld [vmem:[%s250_s16] sm:$0x1] }
  0x44   : > { %271 = vst [vmem:[#allocation2 + $0x4] sm:$0x1] %v270_v4 }
  0x45   : > { %296 = vsyncadd [#allocation3 + $0x4], 16  ;;  %s297_s17 = sadd.s32 5, %s739_s0 }
  0x46   : > { %s298_s18 = sld [smem:[#allocation5 + %s297_s17]] }
  0x4c   : > { %s299_s22 = scalar_lea.vmem %s784_s1, %s298_s18 }
  0x4d   : > { %v319_v5 = vld [vmem:[%s299_s22] sm:$0x1] }
  0x4e   : > { %320 = vst [vmem:[#allocation2 + $0x5] sm:$0x1] %v319_v5 }
  0x4f   : > { %345 = vsyncadd [#allocation3 + $0x5], 16  ;;  %s346_s23 = sadd.s32 6, %s739_s0 }
  0x50   : > { %s347_s24 = sld [smem:[#allocation5 + %s346_s23]] }
  0x56   : > { %s348_s27 = scalar_lea.vmem %s784_s1, %s347_s24 }
  0x57   : > { %v368_v6 = vld [vmem:[%s348_s27] sm:$0x1] }
  0x58   : > { %369 = vst [vmem:[#allocation2 + $0x6] sm:$0x1] %v368_v6 }
  0x59   : > { %394 = vsyncadd [#allocation3 + $0x6], 16  ;;  %s395_s28 = sadd.s32 7, %s739_s0 }
  0x5a   : > { %s396_s29 = sld [smem:[#allocation5 + %s395_s28]] }
  0x60   : > { %s397_s4 = scalar_lea.vmem %s784_s1, %s396_s29 }
  0x61   : > { %v417_v7 = vld [vmem:[%s397_s4] sm:$0x1] }
  0x62   : > { %418 = vst [vmem:[#allocation2 + $0x7] sm:$0x1] %v417_v7 }
  0x63   : > { %443 = vsyncadd [#allocation3 + $0x7], 16 }
  0x64   : > { %692 = dma.done.wait [#allocation3], 16 }
  0x65   : > { %693 = vsyncadd [#allocation3], 4294967280 }
  0x66   : > { %694 = dma.done.wait [#allocation3 + $0x1], 16 }
  0x67   : > { %695 = vsyncadd [#allocation3 + $0x1], 4294967280 }
  0x68   : > { %696 = dma.done.wait [#allocation3 + $0x2], 16 }
  0x69   : > { %697 = vsyncadd [#allocation3 + $0x2], 4294967280 }
  0x6a   : > { %698 = dma.done.wait [#allocation3 + $0x3], 16 }
  0x6b   : > { %699 = vsyncadd [#allocation3 + $0x3], 4294967280 }
  0x6c   : > { %700 = dma.done.wait [#allocation3 + $0x4], 16 }
  0x6d   : > { %701 = vsyncadd [#allocation3 + $0x4], 4294967280 }
  0x6e   : > { %702 = dma.done.wait [#allocation3 + $0x5], 16 }
  0x6f   : > { %703 = vsyncadd [#allocation3 + $0x5], 4294967280 }
  0x70   : > { %704 = dma.done.wait [#allocation3 + $0x6], 16 }
  0x71   : > { %705 = vsyncadd [#allocation3 + $0x6], 4294967280 }
  0x72   : > { %706 = dma.done.wait [#allocation3 + $0x7], 16 }
  0x73   : > { %707 = vsyncadd [#allocation3 + $0x7], 4294967280  ;;  %v461_v8 = vld [vmem:[#allocation2] sm:$0xff] }
  0x74   : > { %462 = vst [vmem:[%s746_s20] sm:$0xff] %v461_v8 }
  0x75 PF: > { %s18_s14 = sadd.s32 1, %s710_s14  }
  0x76   : > { %p15_p7 = scmp.ge.s32.totalorder %s18_s14, 9  }
  0x78   :  { %17 = sbr.rel (!%p15_p7) target bundleno = 16 (0x10), region = 388 }
  0x7f   :  { %482 = vsyncmov [#allocation3] }
  0x82   :  { %s483_s0 = vpop.sfrf %482 }
  0x83   :  { %p657_p8 = scmp.ne.s32.totalorder %s483_s0, 0 }
  0x85   :  { %487 = shalt.err (%p657_p8)  }
  0x86   :  { %489 = vsyncmov [#allocation3 + $0x1] }
  0x89   :  { %s490_s5 = vpop.sfrf %489 }
  0x8a   :  { %p658_p9 = scmp.ne.s32.totalorder %s490_s5, 0 }
  0x8c   :  { %494 = shalt.err (%p658_p9)  }
  0x8d   :  { %496 = vsyncmov [#allocation3 + $0x2] }
  0x90   :  { %s497_s6 = vpop.sfrf %496 }
  0x91   :  { %p659_p10 = scmp.ne.s32.totalorder %s497_s6, 0 }
  0x93   :  { %501 = shalt.err (%p659_p10)  }
  0x94   :  { %503 = vsyncmov [#allocation3 + $0x3] }
  0x97   :  { %s504_s20 = vpop.sfrf %503 }
  0x98   :  { %p660_p11 = scmp.ne.s32.totalorder %s504_s20, 0 }
  0x9a   :  { %508 = shalt.err (%p660_p11)  }
  0x9b   :  { %510 = vsyncmov [#allocation3 + $0x4] }
  0x9e   :  { %s511_s7 = vpop.sfrf %510 }
  0x9f   :  { %p661_p12 = scmp.ne.s32.totalorder %s511_s7, 0 }
  0xa1   :  { %515 = shalt.err (%p661_p12)  }
  0xa2   :  { %517 = vsyncmov [#allocation3 + $0x5] }
  0xa5   :  { %s518_s1 = vpop.sfrf %517 }
  0xa6   :  { %p662_p13 = scmp.ne.s32.totalorder %s518_s1, 0 }
  0xa8   :  { %522 = shalt.err (%p662_p13)  }
  0xa9   :  { %524 = vsyncmov [#allocation3 + $0x6] }
  0xac   :  { %s525_s2 = vpop.sfrf %524 }
  0xad   :  { %p663_p0 = scmp.ne.s32.totalorder %s525_s2, 0 }
  0xaf   :  { %529 = shalt.err (%p663_p0)  }
  0xb0   :  { %531 = vsyncmov [#allocation3 + $0x7] }
  0xb3   :  { %s532_s14 = vpop.sfrf %531 }
  0xb4   :  { %p664_p1 = scmp.ne.s32.totalorder %s532_s14, 0 }
  0xb6   :  { %536 = shalt.err (%p664_p1)  }

// kernel: stage1_forward.11
= control target key start
LH: loop header
LB: loop body
LE: loop exit
PB: predicated region body
PF: predicated region fallthrough
CT: control target
= control target key end

     0   :  { %s1470_s12 = smov 0   ;;  %s1912_s0 = inlined_call_operand.vmem [shape: f32[12,8,512], index: 0, kind: input, shape index: {}]   ;;  %s1913_s1 = inlined_call_operand.vmem [shape: bf16[128,512], index: 1, kind: input, shape index: {}]   ;;  %s1914_s2 = inlined_call_operand.vmem [shape: f32[12,8,128], index: 2, kind: input, shape index: {}]   ;;  %s1915_s3 = inlined_call_operand.vmem [shape: f32[12,8,128], index: 3, kind: output, shape index: {}]  }
   0x1 LB: > { %s1193_s13 = sadd.s32 4294967295, %s1446_s12   ;;  %p1197_p0 = scmp.ge.s32.totalorder %s1446_s12, 1  ;;  %s1446_s12 = sphi %s1470_s12, %s13_s12  }
   0x2   : > { %p150_p1 = scmp.lt.s32.totalorder %s1446_s12, 3 }
   0x4   : > { %p151_p2 = pnand %p1197_p0, %p150_p1 }
   0x5   : > { %s180_s14 = smul.u32 (!%p151_p2), 6, %s1193_s13  ;;  %p1202_p4 = scmp.ne.s32.totalorder (!%p151_p2), %s1193_s13, 0 }
   0x6   : > { %154 = sbr.rel (%p151_p2) target bundleno = 1615 (0x64f), region = 32 }
   0x7   : > { %p181_p3 = scmp.lt.s32.totalorder (!%p151_p2), %s180_s14, 11 }
   0xd   : > { %s1917_s14 = smov (!%p181_p3, %s180_s14), 11  ;;  %203 = sbr.rel (%p1202_p4) target bundleno = 20 (0x14), region = 36 }
   0xe   : > { %s1285_s15 = sshll.u32 %s1917_s14, 5  ;;  %s1200_s16 = sshll.u32 %s1917_s14, 3  ;;  %v1448_v0 = vmov (!%p1202_p4), 0.0  }
   0xf   : > { %s1481_s19 = scalar_lea.vmem %s1912_s0, %s1285_s15  ;;  %s1486_s22 = scalar_lea.vmem %s1914_s2, %s1200_s16  ;;  %204 = vst [vmem:[#allocation2] sm:$0xff] (!%p1202_p4), %v1448_v0  ;;  %205 = vst [vmem:[#allocation3] sm:$0xff] (!%p1202_p4), %v1448_v0 }
  0x10   : > { %s1491_s25 = scalar_lea.vmem %s1915_s3, %s1200_s16 }
  0x14 PF: > { %v1496_v1 = vld [vmem:[%s1913_s1 + $0x4] ss:$16 sps:$4 sm:$0xff]   ;;  %v1501_v2 = vld [vmem:[%s1913_s1] ss:$16 sps:$4 sm:$0xff]   ;;  %v1449_v3 = vmov 0   ;;  %v241_v37 = vld [vmem:[%s1481_s19 + $0x8] sm:$0xff] }
  0x15   : > { %437 = vmatprep.mubr.bf16.mxu0 %v1449_v3  ;;  %478 = vmatprep.mubr.bf16.mxu1 %v1449_v3  ;;  %v1509_v4 = vld [vmem:[%s1913_s1 + $0x24] ss:$16 sps:$4 sm:$0xff]   ;;  %v1515_v5 = vld [vmem:[%s1913_s1 + $0x20] ss:$16 sps:$4 sm:$0xff]   ;;  %v1526_v7 = vld [vmem:[%s1913_s1 + $0xc] ss:$16 sps:$4 sm:$0xff]  }
  0x16   : > { %405 = vmatprep.subr.bf16.mxu0 %v1496_v1  ;;  %v1521_v6 = vld [vmem:[%s1913_s1 + $0x44] ss:$16 sps:$4 sm:$0xff]   ;;  %v1531_v8 = vld [vmem:[%s1913_s1 + $0x8] ss:$16 sps:$4 sm:$0xff]   ;;  %v1537_v9 = vld [vmem:[%s1913_s1 + $0x40] ss:$16 sps:$4 sm:$0xff]   ;;  %446 = vmatprep.subr.bf16.mxu1 %v1526_v7 }
  0x17   : > { %406 = vmatpush1.bf16.msra.mxu0 %v1501_v2  ;;  %v1544_v10 = vld [vmem:[%s1913_s1 + $0x64] ss:$16 sps:$4 sm:$0xff]   ;;  %447 = vmatpush1.bf16.msra.mxu1 %v1531_v8  ;;  %v1550_v11 = vld [vmem:[%s1913_s1 + $0x2c] ss:$16 sps:$4 sm:$0xff]   ;;  %v1555_v12 = vld [vmem:[%s1913_s1 + $0x28] ss:$16 sps:$4 sm:$0xff]  }
  0x18   : > { %407 = vmatprep.subr.bf16.mxu0 %v1509_v4  ;;  %448 = vmatprep.subr.bf16.mxu1 %v1550_v11  ;;  %v1562_v13 = vld [vmem:[%s1913_s1 + $0x60] ss:$16 sps:$4 sm:$0xff]   ;;  %v1567_v14 = vld [vmem:[%s1913_s1 + $0x84] ss:$16 sps:$4 sm:$0xff]   ;;  %v1572_v15 = vld [vmem:[%s1913_s1 + $0x4c] ss:$16 sps:$4 sm:$0xff]  }
  0x19   : > { %v1579_v16 = vld [vmem:[%s1913_s1 + $0x48] ss:$16 sps:$4 sm:$0xff]   ;;  %v1585_v17 = vld [vmem:[%s1913_s1 + $0x6c] ss:$16 sps:$4 sm:$0xff]   ;;  %v1591_v18 = vld [vmem:[%s1913_s1 + $0x80] ss:$16 sps:$4 sm:$0xff]  }
  0x1a   : > { %v1597_v19 = vld [vmem:[%s1913_s1 + $0xa4] ss:$16 sps:$4 sm:$0xff]   ;;  %v1603_v20 = vld [vmem:[%s1913_s1 + $0x68] ss:$16 sps:$4 sm:$0xff]   ;;  %v1609_v21 = vld [vmem:[%s1913_s1 + $0x8c] ss:$16 sps:$4 sm:$0xff]  }
  0x1b   : > { %408 = vmatpush1.bf16.msra.mxu0 %v1515_v5  ;;  %449 = vmatpush1.bf16.msra.mxu1 %v1555_v12  ;;  %v1614_v22 = vld [vmem:[%s1913_s1 + $0xa0] ss:$16 sps:$4 sm:$0xff]   ;;  %v1620_v23 = vld [vmem:[%s1913_s1 + $0xc4] ss:$16 sps:$4 sm:$0xff]   ;;  %v1627_v24 = vld [vmem:[%s1913_s1 + $0x88] ss:$16 sps:$4 sm:$0xff]  }
  0x1c   : > { %409 = vmatprep.subr.bf16.mxu0 %v1521_v6  ;;  %450 = vmatprep.subr.bf16.mxu1 %v1572_v15  ;;  %v1633_v25 = vld [vmem:[%s1913_s1 + $0xac] ss:$16 sps:$4 sm:$0xff]   ;;  %v1639_v26 = vld [vmem:[%s1913_s1 + $0xc0] ss:$16 sps:$4 sm:$0xff]   ;;  %v1645_v27 = vld [vmem:[%s1913_s1 + $0xe4] ss:$16 sps:$4 sm:$0xff]  }
  0x1d   : > { %v1651_v28 = vld [vmem:[%s1913_s1 + $0xa8] ss:$16 sps:$4 sm:$0xff]   ;;  %v1657_v29 = vld [vmem:[%s1913_s1 + $0xcc] ss:$16 sps:$4 sm:$0xff]   ;;  %v1663_v30 = vld [vmem:[%s1913_s1 + $0xe0] ss:$16 sps:$4 sm:$0xff]  }
  0x1e   : > { %v238_v31 = vld [vmem:[#allocation2] sm:$0xff]  ;;  %v1670_v32 = vld [vmem:[%s1913_s1 + $0xc8] ss:$16 sps:$4 sm:$0xff]   ;;  %v1676_v33 = vld [vmem:[%s1913_s1 + $0xec] ss:$16 sps:$4 sm:$0xff]  }
  0x1f   : > { %410 = vmatpush1.bf16.msra.mxu0 %v1537_v9  ;;  %451 = vmatpush1.bf16.msra.mxu1 %v1579_v16  ;;  %v244_v34 = vpack.c.bf16 %v238_v31, %v238_v31  ;;  %v1683_v35 = vld [vmem:[%s1913_s1 + $0xe8] ss:$16 sps:$4 sm:$0xff]   ;;  %v240_v36 = vld [vmem:[%s1481_s19] sm:$0xff]  ;;  %v242_v52 = vld [vmem:[%s1481_s19 + $0x10] sm:$0xff] }
  0x20   : > { %411 = vmatprep.subr.bf16.mxu0 %v1544_v10  ;;  %452 = vmatprep.subr.bf16.mxu1 %v1585_v17  ;;  %v243_v46 = vld [vmem:[%s1481_s19 + $0x18] sm:$0xff]  ;;  %v239_v61 = vld [vmem:[#allocation3] sm:$0xff] }
  0x23   : > { %412 = vmatpush1.bf16.msra.mxu0 %v1562_v13  ;;  %453 = vmatpush1.bf16.msra.mxu1 %v1603_v20 }
  0x24   : > { %413 = vmatprep.subr.bf16.mxu0 %v1567_v14  ;;  %454 = vmatprep.subr.bf16.mxu1 %v1609_v21 }
  0x27   : > { %414 = vmatpush1.bf16.msra.mxu0 %v1591_v18  ;;  %455 = vmatpush1.bf16.msra.mxu1 %v1627_v24 }
  0x28   : > { %415 = vmatprep.subr.bf16.mxu0 %v1597_v19  ;;  %456 = vmatprep.subr.bf16.mxu1 %v1633_v25 }
  0x2b   : > { %416 = vmatpush1.bf16.msra.mxu0 %v1614_v22  ;;  %457 = vmatpush1.bf16.msra.mxu1 %v1651_v28 }
  0x2c   : > { %417 = vmatprep.subr.bf16.mxu0 %v1620_v23  ;;  %458 = vmatprep.subr.bf16.mxu1 %v1657_v29 }
  0x2f   : > { %418 = vmatpush1.bf16.msra.mxu0 %v1639_v26  ;;  %459 = vmatpush1.bf16.msra.mxu1 %v1670_v32 }
  0x30   : > { %419 = vmatprep.subr.bf16.mxu0 %v1645_v27  ;;  %460 = vmatprep.subr.bf16.mxu1 %v1676_v33 }
  0x33   : > { %420 = vmatpush1.bf16.msra.mxu0 %v1663_v30  ;;  %461 = vmatpush1.bf16.msra.mxu1 %v1683_v35 }
  0x34   : > { %524 = vmatprep.subr.bf16.mxu0 %v1496_v1  ;;  %565 = vmatprep.subr.bf16.mxu1 %v1526_v7 }
  0x36   : > { %438 = vmatmul.mubr.bf16.vlgmr.msra.gmra.mrb[0].mxu0 %v244_v34  ;;  %479 = vmatmul.mubr.bf16.vlgmr.msra.gmra.mrb[0].mxu1 %v244_v34 }
  0x37   : > { %525 = vmatpush1.bf16.msra.mxu0 %v1501_v2  ;;  %556 = vmatprep.mubr.bf16.mxu0 %v1449_v3 }
  0x38   : > { %526 = vmatprep.subr.bf16.mxu0 %v1509_v4  ;;  %566 = vmatpush1.bf16.msra.mxu1 %v1531_v8 }
  0x39   : > { %567 = vmatprep.subr.bf16.mxu1 %v1550_v11  ;;  %597 = vmatprep.mubr.bf16.mxu1 %v1449_v3 }
  0x3b   : > { %527 = vmatpush1.bf16.msra.mxu0 %v1515_v5 }
  0x3c   : > { %528 = vmatprep.subr.bf16.mxu0 %v1521_v6  ;;  %568 = vmatpush1.bf16.msra.mxu1 %v1555_v12 }
  0x3d   : > { %569 = vmatprep.subr.bf16.mxu1 %v1572_v15 }
  0x3f   : > { %529 = vmatpush1.bf16.msra.mxu0 %v1537_v9 }
  0x40   : > { %530 = vmatprep.subr.bf16.mxu0 %v1544_v10  ;;  %570 = vmatpush1.bf16.msra.mxu1 %v1579_v16 }
  0x41   : > { %571 = vmatprep.subr.bf16.mxu1 %v1585_v17 }
  0x43   : > { %531 = vmatpush1.bf16.msra.mxu0 %v1562_v13 }
  0x44   : > { %532 = vmatprep.subr.bf16.mxu0 %v1567_v14  ;;  %572 = vmatpush1.bf16.msra.mxu1 %v1603_v20 }
  0x45   : > { %573 = vmatprep.subr.bf16.mxu1 %v1609_v21 }
  0x47   : > { %533 = vmatpush1.bf16.msra.mxu0 %v1591_v18 }
  0x48   : > { %534 = vmatprep.subr.bf16.mxu0 %v1597_v19  ;;  %574 = vmatpush1.bf16.msra.mxu1 %v1627_v24 }
  0x49   : > { %575 = vmatprep.subr.bf16.mxu1 %v1633_v25 }
  0x4b   : > { %535 = vmatpush1.bf16.msra.mxu0 %v1614_v22 }
  0x4c   : > { %536 = vmatprep.subr.bf16.mxu0 %v1620_v23  ;;  %576 = vmatpush1.bf16.msra.mxu1 %v1651_v28 }
  0x4d   : > { %577 = vmatprep.subr.bf16.mxu1 %v1657_v29 }
  0x4f   : > { %537 = vmatpush1.bf16.msra.mxu0 %v1639_v26 }
  0x50   : > { %538 = vmatprep.subr.bf16.mxu0 %v1645_v27  ;;  %578 = vmatpush1.bf16.msra.mxu1 %v1670_v32 }
  0x51   : > { %579 = vmatprep.subr.bf16.mxu1 %v1676_v33 }
  0x53   : > { %539 = vmatpush1.bf16.msra.mxu0 %v1663_v30 }
  0x54   : > { %645 = vmatprep.subr.bf16.mxu0 %v1496_v1  ;;  %580 = vmatpush1.bf16.msra.mxu1 %v1683_v35 }
  0x55   : > { %686 = vmatprep.subr.bf16.mxu1 %v1526_v7 }
 0x109   : > { %v439_v38 = vpop.f32.mrb[0].mxu0  ;;  %v480_v47 = vpop.f32.mrb[0].mxu1 }
 0x10a   : > { %v487_v39 = vadd.f32 %v439_v38, %v240_v36  ;;  %v441_v40 = vpop.f32.mrb[1].mxu0  ;;  %v482_v48 = vpop.f32.mrb[1].mxu1  ;;  %v489_v54 = vadd.f32 %v480_v47, %v242_v52 }
 0x10b   : > { %v488_v41 = vadd.f32 %v441_v40, %v241_v37  ;;  %v443_v42 = vpop.f32.mrb[2].mxu0  ;;  %v490_v49 = vadd.f32 %v482_v48, %v243_v46  ;;  %v484_v50 = vpop.f32.mrb[2].mxu1 }
 0x10c   : > { %v1235_v43 = vmul.f32 -1.442695, %v487_v39  ;;  %v444_v44 = vpop.f32.mrb[3].mxu0  ;;  %v485_v51 = vpop.f32.mrb[3].mxu1  ;;  %v515_v39 = vld [vmem:[%s1486_s22] sm:$0xff] }
 0x10d   : > { %v1236_v45 = vmul.f32 -1.442695, %v488_v41  ;;  %v1237_v53 = vmul.f32 -1.442695, %v490_v49  ;;  %v1239_v44 = vld [vmem:[%s1481_s19 + $0x28] sm:$0xff] }
 0x10e   : > { %1344 = vpow2.f32 %v1235_v43  ;;  %v1238_v43 = vld [vmem:[%s1481_s19 + $0x20] sm:$0xff] }
 0x10f   : > { %1346 = vpow2.f32 %v1236_v45 }
 0x110   : > { %1348 = vpow2.f32 %v1237_v53 }
 0x111   : > { %1350 = vtanh.f32 %v489_v54 }
 0x118   : > { %v1345_v55 = vpop.eup %1344 }
 0x119   : > { %v1347_v56 = vpop.eup %1346  ;;  %v494_v57 = vadd.f32 1.0, %v1345_v55 }
 0x11a   : > { %v500_v58 = vadd.f32 1.0, %v1347_v56  ;;  %v1349_v59 = vpop.eup %1348 }
 0x11b   : > { %1352 = vrcp.f32 %v494_v57  ;;  %v1351_v60 = vpop.eup %1350  ;;  %v507_v63 = vadd.f32 1.0, %v1349_v59  ;;  %v1241_v57 = vld [vmem:[%s1481_s19 + $0x38] sm:$0xff]  ;;  %v1240_v59 = vld [vmem:[%s1481_s19 + $0x30] sm:$0xff] }
 0x11c   : > { %1354 = vrcp.f32 %v500_v58 }
 0x11d   : > { %1356 = vrcp.f32 %v507_v63 }
 0x125   : > { %v1353_v62 = vpop.eup %1352 }
 0x126   : > { %v1355_v0 = vpop.eup %1354  ;;  %v511_v31 = vmul.f32 %v1353_v62, %v1351_v60 }
 0x127   : > { %v510_v34 = vmul.f32 %v1355_v0, %v239_v61  ;;  %v1357_v37 = vpop.eup %1356 }
 0x129   : > { %v1727_v36 = vadd.f32 %v511_v31, %v510_v34 }
 0x12b   : > { %1358 = vtanh.f32 %v1727_v36 }
 0x135   : > { %v1359_v38 = vpop.eup %1358 }
 0x136   : > { %v514_v40 = vmul.f32 %v1359_v38, %v1357_v37 }
 0x138   : > { %v516_v41 = vadd.f32 %v515_v39, %v514_v40  ;;  %v523_v42 = vpack.c.bf16 %v514_v40, %v514_v40 }
 0x13a   : > { %517 = vst [vmem:[%s1491_s25] sm:$0xff] %v516_v41  ;;  %557 = vmatmul.mubr.bf16.vlgmr.msra.gmra.mrb[4].mxu0 %v523_v42  ;;  %598 = vmatmul.mubr.bf16.vlgmr.msra.gmra.mrb[4].mxu1 %v523_v42 }
 0x13b   : > { %646 = vmatpush1.bf16.msra.mxu0 %v1501_v2  ;;  %687 = vmatpush1.bf16.msra.mxu1 %v1531_v8 }
 0x13c   : > { %647 = vmatprep.subr.bf16.mxu0 %v1509_v4  ;;  %688 = vmatprep.subr.bf16.mxu1 %v1550_v11 }
 0x13d   : > { %677 = vmatprep.mubr.bf16.mxu0 %v1449_v3  ;;  %718 = vmatprep.mubr.bf16.mxu1 %v1449_v3 }
 0x13f   : > { %648 = vmatpush1.bf16.msra.mxu0 %v1515_v5  ;;  %689 = vmatpush1.bf16.msra.mxu1 %v1555_v12 }
 0x140   : > { %649 = vmatprep.subr.bf16.mxu0 %v1521_v6  ;;  %690 = vmatprep.subr.bf16.mxu1 %v1572_v15 }
 0x143   : > { %650 = vmatpush1.bf16.msra.mxu0 %v1537_v9  ;;  %691 = vmatpush1.bf16.msra.mxu1 %v1579_v16 }
 0x144   : > { %651 = vmatprep.subr.bf16.mxu0 %v1544_v10  ;;  %692 = vmatprep.subr.bf16.mxu1 %v1585_v17 }
 0x147   : > { %652 = vmatpush1.bf16.msra.mxu0 %v1562_v13  ;;  %693 = vmatpush1.bf16.msra.mxu1 %v1603_v20 }
 0x148   : > { %653 = vmatprep.subr.bf16.mxu0 %v1567_v14  ;;  %694 = vmatprep.subr.bf16.mxu1 %v1609_v21 }
 0x14b   : > { %654 = vmatpush1.bf16.msra.mxu0 %v1591_v18  ;;  %695 = vmatpush1.bf16.msra.mxu1 %v1627_v24 }
 0x14c   : > { %655 = vmatprep.subr.bf16.mxu0 %v1597_v19  ;;  %696 = vmatprep.subr.bf16.mxu1 %v1633_v25 }
 0x14f   : > { %656 = vmatpush1.bf16.msra.mxu0 %v1614_v22  ;;  %697 = vmatpush1.bf16.msra.mxu1 %v1651_v28 }
 0x150   : > { %657 = vmatprep.subr.bf16.mxu0 %v1620_v23  ;;  %698 = vmatprep.subr.bf16.mxu1 %v1657_v29 }
 0x153   : > { %658 = vmatpush1.bf16.msra.mxu0 %v1639_v26  ;;  %699 = vmatpush1.bf16.msra.mxu1 %v1670_v32 }
 0x154   : > { %659 = vmatprep.subr.bf16.mxu0 %v1645_v27  ;;  %700 = vmatprep.subr.bf16.mxu1 %v1676_v33 }
 0x157   : > { %660 = vmatpush1.bf16.msra.mxu0 %v1663_v30  ;;  %701 = vmatpush1.bf16.msra.mxu1 %v1683_v35 }
 0x158   : > { %766 = vmatprep.subr.bf16.mxu0 %v1496_v1  ;;  %807 = vmatprep.subr.bf16.mxu1 %v1526_v7 }
 0x20d   : > { %v558_v45 = vpop.f32.mrb[4].mxu0  ;;  %v599_v46 = vpop.f32.mrb[4].mxu1 }
 0x20e   : > { %v606_v47 = vadd.f32 %v1238_v43, %v558_v45  ;;  %v560_v48 = vpop.f32.mrb[5].mxu0  ;;  %v601_v49 = vpop.f32.mrb[5].mxu1  ;;  %v608_v61 = vadd.f32 %v1240_v59, %v599_v46  ;;  %v1245_v46 = vld [vmem:[%s1486_s22 + $0x8] sm:$0xff] }
 0x20f   : > { %v607_v50 = vadd.f32 %v1239_v44, %v560_v48  ;;  %v562_v51 = vpop.f32.mrb[6].mxu0  ;;  %v603_v52 = vpop.f32.mrb[6].mxu1  ;;  %v609_v58 = vadd.f32 %v1241_v57, %v601_v49 }
 0x210   : > { %v1242_v53 = vmul.f32 -1.442695, %v606_v47  ;;  %v563_v54 = vpop.f32.mrb[7].mxu0  ;;  %v604_v55 = vpop.f32.mrb[7].mxu1 }
 0x211   : > { %v1243_v56 = vmul.f32 -1.442695, %v607_v50  ;;  %v1244_v60 = vmul.f32 -1.442695, %v609_v58  ;;  %v1248_v50 = vld [vmem:[%s1481_s19 + $0x48] sm:$0xff] }
 0x212   : > { %1360 = vpow2.f32 %v1242_v53 }
 0x213   : > { %1362 = vpow2.f32 %v1243_v56 }
 0x214   : > { %1364 = vpow2.f32 %v1244_v60 }
 0x215   : > { %1366 = vtanh.f32 %v608_v61 }
 0x21c   : > { %v1361_v62 = vpop.eup %1360 }
 0x21d   : > { %v1363_v63 = vpop.eup %1362  ;;  %v613_v0 = vadd.f32 1.0, %v1361_v62 }
 0x21e   : > { %v619_v31 = vadd.f32 1.0, %v1363_v63  ;;  %v1365_v34 = vpop.eup %1364  ;;  %v1250_v63 = vld [vmem:[%s1481_s19 + $0x58] sm:$0xff] }
 0x21f   : > { %1368 = vrcp.f32 %v613_v0  ;;  %v1367_v37 = vpop.eup %1366  ;;  %v626_v41 = vadd.f32 1.0, %v1365_v34 }
 0x220   : > { %1370 = vrcp.f32 %v619_v31  ;;  %v1249_v31 = vld [vmem:[%s1481_s19 + $0x50] sm:$0xff] }
 0x221   : > { %1372 = vrcp.f32 %v626_v41 }
 0x229   : > { %v1369_v38 = vpop.eup %1368 }
 0x22a   : > { %v1371_v39 = vpop.eup %1370  ;;  %v630_v40 = vmul.f32 %v1369_v38, %v1367_v37 }
 0x22b   : > { %v629_v42 = vmul.f32 %v1371_v39, %v1727_v36  ;;  %v1373_v44 = vpop.eup %1372  ;;  %v1247_v36 = vld [vmem:[%s1481_s19 + $0x40] sm:$0xff] }
 0x22d   : > { %v1771_v43 = vadd.f32 %v630_v40, %v629_v42 }
 0x22f   : > { %1374 = vtanh.f32 %v1771_v43 }
 0x239   : > { %v1375_v45 = vpop.eup %1374 }
 0x23a   : > { %v633_v47 = vmul.f32 %v1375_v45, %v1373_v44 }
 0x23c   : > { %v636_v48 = vadd.f32 %v1245_v46, %v633_v47  ;;  %v644_v49 = vpack.c.bf16 %v633_v47, %v633_v47 }
 0x23e   : > { %1246 = vst [vmem:[%s1491_s25 + $0x8] sm:$0xff] %v636_v48  ;;  %678 = vmatmul.mubr.bf16.vlgmr.msra.gmra.mrb[8].mxu0 %v644_v49  ;;  %719 = vmatmul.mubr.bf16.vlgmr.msra.gmra.mrb[8].mxu1 %v644_v49 }
 0x23f   : > { %767 = vmatpush1.bf16.msra.mxu0 %v1501_v2  ;;  %808 = vmatpush1.bf16.msra.mxu1 %v1531_v8 }
 0x240   : > { %768 = vmatprep.subr.bf16.mxu0 %v1509_v4  ;;  %809 = vmatprep.subr.bf16.mxu1 %v1550_v11 }
 0x241   : > { %798 = vmatprep.mubr.bf16.mxu0 %v1449_v3  ;;  %839 = vmatprep.mubr.bf16.mxu1 %v1449_v3 }
 0x243   : > { %769 = vmatpush1.bf16.msra.mxu0 %v1515_v5  ;;  %810 = vmatpush1.bf16.msra.mxu1 %v1555_v12 }
 0x244   : > { %770 = vmatprep.subr.bf16.mxu0 %v1521_v6  ;;  %811 = vmatprep.subr.bf16.mxu1 %v1572_v15 }
 0x247   : > { %771 = vmatpush1.bf16.msra.mxu0 %v1537_v9  ;;  %812 = vmatpush1.bf16.msra.mxu1 %v1579_v16 }
 0x248   : > { %772 = vmatprep.subr.bf16.mxu0 %v1544_v10  ;;  %813 = vmatprep.subr.bf16.mxu1 %v1585_v17 }
 0x24b   : > { %773 = vmatpush1.bf16.msra.mxu0 %v1562_v13  ;;  %814 = vmatpush1.bf16.msra.mxu1 %v1603_v20 }
 0x24c   : > { %774 = vmatprep.subr.bf16.mxu0 %v1567_v14  ;;  %815 = vmatprep.subr.bf16.mxu1 %v1609_v21 }
 0x24f   : > { %775 = vmatpush1.bf16.msra.mxu0 %v1591_v18  ;;  %816 = vmatpush1.bf16.msra.mxu1 %v1627_v24 }
 0x250   : > { %776 = vmatprep.subr.bf16.mxu0 %v1597_v19  ;;  %817 = vmatprep.subr.bf16.mxu1 %v1633_v25 }
 0x253   : > { %777 = vmatpush1.bf16.msra.mxu0 %v1614_v22  ;;  %818 = vmatpush1.bf16.msra.mxu1 %v1651_v28 }
 0x254   : > { %778 = vmatprep.subr.bf16.mxu0 %v1620_v23  ;;  %819 = vmatprep.subr.bf16.mxu1 %v1657_v29 }
 0x257   : > { %779 = vmatpush1.bf16.msra.mxu0 %v1639_v26  ;;  %820 = vmatpush1.bf16.msra.mxu1 %v1670_v32 }
 0x258   : > { %780 = vmatprep.subr.bf16.mxu0 %v1645_v27  ;;  %821 = vmatprep.subr.bf16.mxu1 %v1676_v33 }
 0x25b   : > { %781 = vmatpush1.bf16.msra.mxu0 %v1663_v30  ;;  %822 = vmatpush1.bf16.msra.mxu1 %v1683_v35 }
 0x25c   : > { %887 = vmatprep.subr.bf16.mxu0 %v1496_v1  ;;  %928 = vmatprep.subr.bf16.mxu1 %v1526_v7 }
 0x311   : > { %v679_v51 = vpop.f32.mrb[8].mxu0  ;;  %v720_v52 = vpop.f32.mrb[8].mxu1 }
 0x312   : > { %v727_v53 = vadd.f32 %v1247_v36, %v679_v51  ;;  %v681_v54 = vpop.f32.mrb[9].mxu0  ;;  %v722_v55 = vpop.f32.mrb[9].mxu1  ;;  %v729_v37 = vadd.f32 %v1249_v31, %v720_v52  ;;  %v1254_v52 = vld [vmem:[%s1486_s22 + $0x10] sm:$0xff] }
 0x313   : > { %v728_v56 = vadd.f32 %v1248_v50, %v681_v54  ;;  %v683_v57 = vpop.f32.mrb[10].mxu0  ;;  %v724_v58 = vpop.f32.mrb[10].mxu1  ;;  %v730_v0 = vadd.f32 %v1250_v63, %v722_v55 }
 0x314   : > { %v1251_v59 = vmul.f32 -1.442695, %v727_v53  ;;  %v684_v60 = vpop.f32.mrb[11].mxu0  ;;  %v725_v61 = vpop.f32.mrb[11].mxu1 }
 0x315   : > { %v1252_v62 = vmul.f32 -1.442695, %v728_v56  ;;  %v1253_v34 = vmul.f32 -1.442695, %v730_v0  ;;  %v1257_v56 = vld [vmem:[%s1481_s19 + $0x68] sm:$0xff] }
 0x316   : > { %1376 = vpow2.f32 %v1251_v59 }
 0x317   : > { %1378 = vpow2.f32 %v1252_v62 }
 0x318   : > { %1380 = vpow2.f32 %v1253_v34 }
 0x319   : > { %1382 = vtanh.f32 %v729_v37 }
 0x320   : > { %v1377_v38 = vpop.eup %1376 }
 0x321   : > { %v1379_v39 = vpop.eup %1378  ;;  %v734_v40 = vadd.f32 1.0, %v1377_v38 }
 0x322   : > { %v740_v41 = vadd.f32 1.0, %v1379_v39  ;;  %v1381_v42 = vpop.eup %1380  ;;  %v1258_v39 = vld [vmem:[%s1481_s19 + $0x70] sm:$0xff] }
 0x323   : > { %1384 = vrcp.f32 %v734_v40  ;;  %v1383_v44 = vpop.eup %1382  ;;  %v747_v48 = vadd.f32 1.0, %v1381_v42 }
 0x324   : > { %1386 = vrcp.f32 %v740_v41 }
 0x325   : > { %1388 = vrcp.f32 %v747_v48 }
 0x32d   : > { %v1385_v45 = vpop.eup %1384 }
 0x32e   : > { %v1387_v46 = vpop.eup %1386  ;;  %v751_v47 = vmul.f32 %v1385_v45, %v1383_v44 }
 0x32f   : > { %v750_v49 = vmul.f32 %v1387_v46, %v1771_v43  ;;  %v1389_v50 = vpop.eup %1388  ;;  %v1256_v43 = vld [vmem:[%s1481_s19 + $0x60] sm:$0xff] }
 0x331   : > { %v1815_v36 = vadd.f32 %v751_v47, %v750_v49 }
 0x333   : > { %1390 = vtanh.f32 %v1815_v36 }
 0x33d   : > { %v1391_v51 = vpop.eup %1390 }
 0x33e   : > { %v754_v53 = vmul.f32 %v1391_v51, %v1389_v50 }
 0x340   : > { %v757_v54 = vadd.f32 %v1254_v52, %v754_v53  ;;  %v765_v55 = vpack.c.bf16 %v754_v53, %v754_v53 }
 0x342   : > { %1255 = vst [vmem:[%s1491_s25 + $0x10] sm:$0xff] %v757_v54  ;;  %799 = vmatmul.mubr.bf16.vlgmr.msra.gmra.mrb[12].mxu0 %v765_v55  ;;  %840 = vmatmul.mubr.bf16.vlgmr.msra.gmra.mrb[12].mxu1 %v765_v55 }
 0x343   : > { %888 = vmatpush1.bf16.msra.mxu0 %v1501_v2  ;;  %929 = vmatpush1.bf16.msra.mxu1 %v1531_v8 }
 0x344   : > { %889 = vmatprep.subr.bf16.mxu0 %v1509_v4  ;;  %930 = vmatprep.subr.bf16.mxu1 %v1550_v11 }
 0x345   : > { %919 = vmatprep.mubr.bf16.mxu0 %v1449_v3  ;;  %960 = vmatprep.mubr.bf16.mxu1 %v1449_v3 }
 0x347   : > { %890 = vmatpush1.bf16.msra.mxu0 %v1515_v5  ;;  %931 = vmatpush1.bf16.msra.mxu1 %v1555_v12 }
 0x348   : > { %891 = vmatprep.subr.bf16.mxu0 %v1521_v6  ;;  %932 = vmatprep.subr.bf16.mxu1 %v1572_v15 }
 0x34b   : > { %892 = vmatpush1.bf16.msra.mxu0 %v1537_v9  ;;  %933 = vmatpush1.bf16.msra.mxu1 %v1579_v16 }
 0x34c   : > { %893 = vmatprep.subr.bf16.mxu0 %v1544_v10  ;;  %934 = vmatprep.subr.bf16.mxu1 %v1585_v17 }
 0x34f   : > { %894 = vmatpush1.bf16.msra.mxu0 %v1562_v13  ;;  %935 = vmatpush1.bf16.msra.mxu1 %v1603_v20 }
 0x350   : > { %895 = vmatprep.subr.bf16.mxu0 %v1567_v14  ;;  %936 = vmatprep.subr.bf16.mxu1 %v1609_v21 }
 0x353   : > { %896 = vmatpush1.bf16.msra.mxu0 %v1591_v18  ;;  %937 = vmatpush1.bf16.msra.mxu1 %v1627_v24 }
 0x354   : > { %897 = vmatprep.subr.bf16.mxu0 %v1597_v19  ;;  %938 = vmatprep.subr.bf16.mxu1 %v1633_v25 }
 0x357   : > { %898 = vmatpush1.bf16.msra.mxu0 %v1614_v22  ;;  %939 = vmatpush1.bf16.msra.mxu1 %v1651_v28 }
 0x358   : > { %899 = vmatprep.subr.bf16.mxu0 %v1620_v23  ;;  %940 = vmatprep.subr.bf16.mxu1 %v1657_v29 }
 0x35b   : > { %900 = vmatpush1.bf16.msra.mxu0 %v1639_v26  ;;  %941 = vmatpush1.bf16.msra.mxu1 %v1670_v32 }
 0x35c   : > { %901 = vmatprep.subr.bf16.mxu0 %v1645_v27  ;;  %942 = vmatprep.subr.bf16.mxu1 %v1676_v33 }
 0x35f   : > { %902 = vmatpush1.bf16.msra.mxu0 %v1663_v30  ;;  %943 = vmatpush1.bf16.msra.mxu1 %v1683_v35 }
 0x360   : > { %1008 = vmatprep.subr.bf16.mxu0 %v1496_v1  ;;  %1049 = vmatprep.subr.bf16.mxu1 %v1526_v7  ;;  %v1259_v1 = vld [vmem:[%s1481_s19 + $0x78] sm:$0xff] }
 0x415   : > { %v800_v57 = vpop.f32.mrb[12].mxu0  ;;  %v841_v58 = vpop.f32.mrb[12].mxu1 }
 0x416   : > { %v848_v59 = vadd.f32 %v1256_v43, %v800_v57  ;;  %v802_v60 = vpop.f32.mrb[13].mxu0  ;;  %v843_v61 = vpop.f32.mrb[13].mxu1  ;;  %v850_v41 = vadd.f32 %v1258_v39, %v841_v58 }
 0x417   : > { %v849_v62 = vadd.f32 %v1257_v56, %v802_v60  ;;  %v804_v63 = vpop.f32.mrb[14].mxu0  ;;  %v845_v0 = vpop.f32.mrb[14].mxu1  ;;  %v851_v7 = vadd.f32 %v1259_v1, %v843_v61  ;;  %v1263_v56 = vld [vmem:[%s1486_s22 + $0x18] sm:$0xff]  ;;  %v1272_v61 = vld [vmem:[%s1486_s22 + $0x20] sm:$0xff] }
 0x418   : > { %v1260_v31 = vmul.f32 -1.442695, %v848_v59  ;;  %v805_v34 = vpop.f32.mrb[15].mxu0  ;;  %v846_v37 = vpop.f32.mrb[15].mxu1 }
 0x419   : > { %v1261_v38 = vmul.f32 -1.442695, %v849_v62  ;;  %v1262_v40 = vmul.f32 -1.442695, %v851_v7  ;;  %v1275_v34 = vld [vmem:[%s1481_s19 + $0xa8] sm:$0xff] }
 0x41a   : > { %1392 = vpow2.f32 %v1260_v31  ;;  %v1274_v31 = vld [vmem:[%s1481_s19 + $0xa0] sm:$0xff] }
 0x41b   : > { %1394 = vpow2.f32 %v1261_v38 }
 0x41c   : > { %1396 = vpow2.f32 %v1262_v40 }
 0x41d   : > { %1398 = vtanh.f32 %v850_v41 }
 0x424   : > { %v1393_v42 = vpop.eup %1392 }
 0x425   : > { %v1395_v44 = vpop.eup %1394  ;;  %v855_v45 = vadd.f32 1.0, %v1393_v42 }
 0x426   : > { %v861_v46 = vadd.f32 1.0, %v1395_v44  ;;  %v1397_v47 = vpop.eup %1396 }
 0x427   : > { %1400 = vrcp.f32 %v855_v45  ;;  %v1399_v48 = vpop.eup %1398  ;;  %v868_v52 = vadd.f32 1.0, %v1397_v47 }
 0x428   : > { %1402 = vrcp.f32 %v861_v46 }
 0x429   : > { %1404 = vrcp.f32 %v868_v52 }
 0x431   : > { %v1401_v49 = vpop.eup %1400 }
 0x432   : > { %v1403_v50 = vpop.eup %1402  ;;  %v872_v51 = vmul.f32 %v1401_v49, %v1399_v48  ;;  %v1277_v48 = vld [vmem:[%s1481_s19 + $0xb8] sm:$0xff] }
 0x433   : > { %v871_v53 = vmul.f32 %v1403_v50, %v1815_v36  ;;  %v1405_v55 = vpop.eup %1404  ;;  %v1276_v50 = vld [vmem:[%s1481_s19 + $0xb0] sm:$0xff] }
 0x435   : > { %v1859_v54 = vadd.f32 %v872_v51, %v871_v53 }
 0x437   : > { %1406 = vtanh.f32 %v1859_v54 }
 0x441   : > { %v1407_v43 = vpop.eup %1406 }
 0x442   : > { %v875_v57 = vmul.f32 %v1407_v43, %v1405_v55 }
 0x444   : > { %v878_v58 = vadd.f32 %v1263_v56, %v875_v57  ;;  %v886_v59 = vpack.c.bf16 %v875_v57, %v875_v57 }
 0x446   : > { %1264 = vst [vmem:[%s1491_s25 + $0x18] sm:$0xff] %v878_v58  ;;  %920 = vmatmul.mubr.bf16.vlgmr.msra.gmra.mrb[16].mxu0 %v886_v59  ;;  %961 = vmatmul.mubr.bf16.vlgmr.msra.gmra.mrb[16].mxu1 %v886_v59 }
 0x447   : > { %1009 = vmatpush1.bf16.msra.mxu0 %v1501_v2  ;;  %1050 = vmatpush1.bf16.msra.mxu1 %v1531_v8  ;;  %v1265_v2 = vld [vmem:[%s1481_s19 + $0x80] sm:$0xff] }
 0x448   : > { %1010 = vmatprep.subr.bf16.mxu0 %v1509_v4  ;;  %1051 = vmatprep.subr.bf16.mxu1 %v1550_v11 }
 0x449   : > { %1040 = vmatprep.mubr.bf16.mxu0 %v1449_v3  ;;  %1081 = vmatprep.mubr.bf16.mxu1 %v1449_v3  ;;  %v1266_v3 = vld [vmem:[%s1481_s19 + $0x88] sm:$0xff] }
 0x44b   : > { %1011 = vmatpush1.bf16.msra.mxu0 %v1515_v5  ;;  %1052 = vmatpush1.bf16.msra.mxu1 %v1555_v12 }
 0x44c   : > { %1012 = vmatprep.subr.bf16.mxu0 %v1521_v6  ;;  %1053 = vmatprep.subr.bf16.mxu1 %v1572_v15 }
 0x44f   : > { %1013 = vmatpush1.bf16.msra.mxu0 %v1537_v9  ;;  %1054 = vmatpush1.bf16.msra.mxu1 %v1579_v16 }
 0x450   : > { %1014 = vmatprep.subr.bf16.mxu0 %v1544_v10  ;;  %1055 = vmatprep.subr.bf16.mxu1 %v1585_v17  ;;  %v1268_v17 = vld [vmem:[%s1481_s19 + $0x98] sm:$0xff] }
 0x453   : > { %1015 = vmatpush1.bf16.msra.mxu0 %v1562_v13  ;;  %1056 = vmatpush1.bf16.msra.mxu1 %v1603_v20 }
 0x454   : > { %1016 = vmatprep.subr.bf16.mxu0 %v1567_v14  ;;  %1057 = vmatprep.subr.bf16.mxu1 %v1609_v21 }
 0x457   : > { %1017 = vmatpush1.bf16.msra.mxu0 %v1591_v18  ;;  %1058 = vmatpush1.bf16.msra.mxu1 %v1627_v24 }
 0x458   : > { %1018 = vmatprep.subr.bf16.mxu0 %v1597_v19  ;;  %1059 = vmatprep.subr.bf16.mxu1 %v1633_v25  ;;  %v1267_v19 = vld [vmem:[%s1481_s19 + $0x90] sm:$0xff] }
 0x45b   : > { %1019 = vmatpush1.bf16.msra.mxu0 %v1614_v22  ;;  %1060 = vmatpush1.bf16.msra.mxu1 %v1651_v28 }
 0x45c   : > { %1020 = vmatprep.subr.bf16.mxu0 %v1620_v23  ;;  %1061 = vmatprep.subr.bf16.mxu1 %v1657_v29 }
 0x45f   : > { %1021 = vmatpush1.bf16.msra.mxu0 %v1639_v26  ;;  %1062 = vmatpush1.bf16.msra.mxu1 %v1670_v32 }
 0x460   : > { %1022 = vmatprep.subr.bf16.mxu0 %v1645_v27  ;;  %1063 = vmatprep.subr.bf16.mxu1 %v1676_v33 }
 0x463   : > { %1023 = vmatpush1.bf16.msra.mxu0 %v1663_v30  ;;  %1064 = vmatpush1.bf16.msra.mxu1 %v1683_v35 }
 0x519   : > { %v921_v4 = vpop.f32.mrb[16].mxu0  ;;  %v962_v5 = vpop.f32.mrb[16].mxu1 }
 0x51a   : > { %v969_v6 = vadd.f32 %v1265_v2, %v921_v4  ;;  %v923_v8 = vpop.f32.mrb[17].mxu0  ;;  %v964_v9 = vpop.f32.mrb[17].mxu1  ;;  %v971_v21 = vadd.f32 %v1267_v19, %v962_v5 }
 0x51b   : > { %v970_v10 = vadd.f32 %v1266_v3, %v923_v8  ;;  %v925_v11 = vpop.f32.mrb[18].mxu0  ;;  %v966_v12 = vpop.f32.mrb[18].mxu1  ;;  %v972_v18 = vadd.f32 %v1268_v17, %v964_v9  ;;  %v1281_v9 = vld [vmem:[%s1486_s22 + $0x28] sm:$0xff] }
 0x51c   : > { %v1269_v13 = vmul.f32 -1.442695, %v969_v6  ;;  %v926_v14 = vpop.f32.mrb[19].mxu0  ;;  %v967_v15 = vpop.f32.mrb[19].mxu1 }
 0x51d   : > { %v1270_v16 = vmul.f32 -1.442695, %v970_v10  ;;  %v1271_v20 = vmul.f32 -1.442695, %v972_v18 }
 0x51e   : > { %1408 = vpow2.f32 %v1269_v13 }
 0x51f   : > { %1410 = vpow2.f32 %v1270_v16 }
 0x520   : > { %1412 = vpow2.f32 %v1271_v20 }
 0x521   : > { %1414 = vtanh.f32 %v971_v21 }
 0x528   : > { %v1409_v22 = vpop.eup %1408 }
 0x529   : > { %v1411_v23 = vpop.eup %1410  ;;  %v976_v24 = vadd.f32 1.0, %v1409_v22 }
 0x52a   : > { %v982_v25 = vadd.f32 1.0, %v1411_v23  ;;  %v1413_v26 = vpop.eup %1412 }
 0x52b   : > { %1416 = vrcp.f32 %v976_v24  ;;  %v1415_v27 = vpop.eup %1414  ;;  %v989_v32 = vadd.f32 1.0, %v1413_v26 }
 0x52c   : > { %1418 = vrcp.f32 %v982_v25 }
 0x52d   : > { %1420 = vrcp.f32 %v989_v32 }
 0x535   : > { %v1417_v28 = vpop.eup %1416 }
 0x536   : > { %v1419_v29 = vpop.eup %1418  ;;  %v993_v30 = vmul.f32 %v1417_v28, %v1415_v27 }
 0x537   : > { %v992_v33 = vmul.f32 %v1419_v29, %v1859_v54  ;;  %v1421_v36 = vpop.eup %1420 }
 0x539   : > { %v994_v35 = vadd.f32 %v993_v30, %v992_v33 }
 0x53b   : > { %1422 = vtanh.f32 %v994_v35 }
 0x545   : > { %v1423_v60 = vpop.eup %1422 }
 0x546   : > { %v996_v62 = vmul.f32 %v1423_v60, %v1421_v36 }
 0x548   : > { %v999_v63 = vadd.f32 %v1272_v61, %v996_v62  ;;  %v1007_v0 = vpack.c.bf16 %v996_v62, %v996_v62 }
 0x54a   : > { %1273 = vst [vmem:[%s1491_s25 + $0x20] sm:$0xff] %v999_v63  ;;  %1041 = vmatmul.mubr.bf16.vlgmr.msra.gmra.mrb[20].mxu0 %v1007_v0  ;;  %1082 = vmatmul.mubr.bf16.vlgmr.msra.gmra.mrb[20].mxu1 %v1007_v0 }
 0x61d   : > { %v1042_v37 = vpop.f32.mrb[20].mxu0  ;;  %v1083_v38 = vpop.f32.mrb[20].mxu1 }
 0x61e   : > { %v1090_v1 = vadd.f32 %v1274_v31, %v1042_v37  ;;  %v1044_v7 = vpop.f32.mrb[21].mxu0  ;;  %v1085_v39 = vpop.f32.mrb[21].mxu1  ;;  %v1092_v52 = vadd.f32 %v1276_v50, %v1083_v38 }
 0x61f   : > { %v1091_v40 = vadd.f32 %v1275_v34, %v1044_v7  ;;  %v1046_v41 = vpop.f32.mrb[22].mxu0  ;;  %v1087_v42 = vpop.f32.mrb[22].mxu1  ;;  %v1093_v49 = vadd.f32 %v1277_v48, %v1085_v39 }
 0x620   : > { %v1278_v44 = vmul.f32 -1.442695, %v1090_v1  ;;  %v1047_v45 = vpop.f32.mrb[23].mxu0  ;;  %v1088_v46 = vpop.f32.mrb[23].mxu1 }
 0x621   : > { %v1279_v47 = vmul.f32 -1.442695, %v1091_v40  ;;  %v1280_v51 = vmul.f32 -1.442695, %v1093_v49 }
 0x622   : > { %1424 = vpow2.f32 %v1278_v44 }
 0x623   : > { %1426 = vpow2.f32 %v1279_v47 }
 0x624   : > { %1428 = vpow2.f32 %v1280_v51 }
 0x625   : > { %1430 = vtanh.f32 %v1092_v52 }
 0x62c   : > { %v1425_v53 = vpop.eup %1424 }
 0x62d   : > { %v1427_v54 = vpop.eup %1426  ;;  %v1097_v55 = vadd.f32 1.0, %v1425_v53 }
 0x62e   : > { %v1103_v43 = vadd.f32 1.0, %v1427_v54  ;;  %v1429_v56 = vpop.eup %1428 }
 0x62f   : > { %1432 = vrcp.f32 %v1097_v55  ;;  %v1431_v57 = vpop.eup %1430  ;;  %v1110_v3 = vadd.f32 1.0, %v1429_v56 }
 0x630   : > { %1434 = vrcp.f32 %v1103_v43 }
 0x631   : > { %1436 = vrcp.f32 %v1110_v3 }
 0x639   : > { %v1433_v58 = vpop.eup %1432 }
 0x63a   : > { %v1435_v59 = vpop.eup %1434  ;;  %v1114_v2 = vmul.f32 %v1433_v58, %v1431_v57 }
 0x63b   : > { %v1113_v4 = vmul.f32 %v1435_v59, %v994_v35  ;;  %v1437_v6 = vpop.eup %1436 }
 0x63d   : > { %v1115_v5 = vadd.f32 %v1114_v2, %v1113_v4 }
 0x63f   : > { %1438 = vtanh.f32 %v1115_v5  ;;  %1124 = vst [vmem:[#allocation3] sm:$0xff] %v1115_v5 }
 0x649   : > { %v1439_v8 = vpop.eup %1438 }
 0x64a   : > { %v1117_v10 = vmul.f32 %v1439_v8, %v1437_v6 }
 0x64c   : > { %v1120_v11 = vadd.f32 %v1281_v9, %v1117_v10  ;;  %1123 = vst [vmem:[#allocation2] sm:$0xff] %v1117_v10 }
 0x64e   : > { %1282 = vst [vmem:[%s1491_s25 + $0x28] sm:$0xff] %v1120_v11 }
 0x64f PF: > { %s13_s12 = sadd.s32 1, %s1446_s12  }
 0x650   : > { %p10_p5 = scmp.ge.s32.totalorder %s13_s12, 4  }
 0x652   :  { %12 = sbr.rel (!%p10_p5) target bundleno = 1 (0x1), region = 84 }

// kernel: stage1_forward.15
= control target key start
LH: loop header
LB: loop body
LE: loop exit
PB: predicated region body
PF: predicated region fallthrough
CT: control target
= control target key end

     0   :  { %v504_v1 = vmov 0   ;;  %v61_v45 = vlaneseq  ;;  %s792_s1 = inlined_call_operand.vmem [shape: bf16[128,512], index: 1, kind: input, shape index: {}]   ;;  %s793_s0 = inlined_call_operand.vmem [shape: f32[64,128], index: 0, kind: input, shape index: {}]   ;;  %s794_s2 = inlined_call_operand.vmem [shape: f32[1,512], index: 2, kind: input, shape index: {}]   ;;  %s795_s3 = inlined_call_operand.vmem [shape: f32[64,512], index: 3, kind: output, shape index: {}]  }
   0x1   :  { %v456_v0 = vld [vmem:[%s792_s1 + $0x4] ss:$16 sps:$4 sm:$0xff]   ;;  %273 = vmatprep.mubr.bf16.mxu0 %v504_v1  ;;  %346 = vmatprep.mubr.bf16.mxu1 %v504_v1  ;;  %v458_v2 = vld [vmem:[%s792_s1 + $0xc] ss:$16 sps:$4 sm:$0xff]   ;;  %v460_v3 = vld [vmem:[%s792_s1] ss:$16 sps:$4 sm:$0xff]  }
   0x2   :  { %241 = vmatprep.subr.bf16.mxu0 %v456_v0  ;;  %v461_v4 = vld [vmem:[%s792_s1 + $0x8] ss:$16 sps:$4 sm:$0xff]   ;;  %314 = vmatprep.subr.bf16.mxu1 %v458_v2  ;;  %v462_v5 = vld [vmem:[%s792_s1 + $0x24] ss:$16 sps:$4 sm:$0xff]   ;;  %v464_v6 = vld [vmem:[%s792_s1 + $0x2c] ss:$16 sps:$4 sm:$0xff]  }
   0x3   :  { %242 = vmatpush1.bf16.msra.mxu0 %v460_v3  ;;  %315 = vmatpush1.bf16.msra.mxu1 %v461_v4  ;;  %v466_v7 = vld [vmem:[%s792_s1 + $0x20] ss:$16 sps:$4 sm:$0xff]   ;;  %v467_v8 = vld [vmem:[%s792_s1 + $0x28] ss:$16 sps:$4 sm:$0xff]   ;;  %v468_v9 = vld [vmem:[%s792_s1 + $0x44] ss:$16 sps:$4 sm:$0xff]  }
   0x4   :  { %243 = vmatprep.subr.bf16.mxu0 %v462_v5  ;;  %316 = vmatprep.subr.bf16.mxu1 %v464_v6  ;;  %v470_v10 = vld [vmem:[%s792_s1 + $0x4c] ss:$16 sps:$4 sm:$0xff]   ;;  %v472_v11 = vld [vmem:[%s792_s1 + $0x40] ss:$16 sps:$4 sm:$0xff]   ;;  %v473_v12 = vld [vmem:[%s792_s1 + $0x48] ss:$16 sps:$4 sm:$0xff]  }
   0x5   :  { %v474_v13 = vld [vmem:[%s792_s1 + $0x64] ss:$16 sps:$4 sm:$0xff]   ;;  %v476_v14 = vld [vmem:[%s792_s1 + $0x6c] ss:$16 sps:$4 sm:$0xff]   ;;  %v478_v15 = vld [vmem:[%s792_s1 + $0x60] ss:$16 sps:$4 sm:$0xff]  }
   0x6   :  { %v479_v16 = vld [vmem:[%s792_s1 + $0x68] ss:$16 sps:$4 sm:$0xff]   ;;  %v480_v17 = vld [vmem:[%s792_s1 + $0x84] ss:$16 sps:$4 sm:$0xff]   ;;  %v482_v18 = vld [vmem:[%s792_s1 + $0x8c] ss:$16 sps:$4 sm:$0xff]  }
   0x7   :  { %244 = vmatpush1.bf16.msra.mxu0 %v466_v7  ;;  %317 = vmatpush1.bf16.msra.mxu1 %v467_v8  ;;  %v484_v19 = vld [vmem:[%s792_s1 + $0x80] ss:$16 sps:$4 sm:$0xff]   ;;  %v485_v20 = vld [vmem:[%s792_s1 + $0x88] ss:$16 sps:$4 sm:$0xff]   ;;  %v486_v21 = vld [vmem:[%s792_s1 + $0xa4] ss:$16 sps:$4 sm:$0xff]  }
   0x8   :  { %245 = vmatprep.subr.bf16.mxu0 %v468_v9  ;;  %318 = vmatprep.subr.bf16.mxu1 %v470_v10  ;;  %v488_v22 = vld [vmem:[%s792_s1 + $0xac] ss:$16 sps:$4 sm:$0xff]   ;;  %v490_v23 = vld [vmem:[%s792_s1 + $0xa0] ss:$16 sps:$4 sm:$0xff]   ;;  %v491_v24 = vld [vmem:[%s792_s1 + $0xa8] ss:$16 sps:$4 sm:$0xff]  }
   0x9   :  { %v492_v25 = vld [vmem:[%s792_s1 + $0xc4] ss:$16 sps:$4 sm:$0xff]   ;;  %v494_v26 = vld [vmem:[%s792_s1 + $0xcc] ss:$16 sps:$4 sm:$0xff]   ;;  %v496_v27 = vld [vmem:[%s792_s1 + $0xc0] ss:$16 sps:$4 sm:$0xff]  }
   0xa   :  { %v497_v28 = vld [vmem:[%s792_s1 + $0xc8] ss:$16 sps:$4 sm:$0xff]   ;;  %v498_v29 = vld [vmem:[%s792_s1 + $0xe4] ss:$16 sps:$4 sm:$0xff]   ;;  %v500_v30 = vld [vmem:[%s792_s1 + $0xec] ss:$16 sps:$4 sm:$0xff]  }
   0xb   :  { %246 = vmatpush1.bf16.msra.mxu0 %v472_v11  ;;  %319 = vmatpush1.bf16.msra.mxu1 %v473_v12  ;;  %v502_v31 = vld [vmem:[%s792_s1 + $0xe0] ss:$16 sps:$4 sm:$0xff]   ;;  %v503_v32 = vld [vmem:[%s792_s1 + $0xe8] ss:$16 sps:$4 sm:$0xff]   ;;  %v62_v46 = vshrl.u32 %v61_v45, 7 }
   0xc   :  { %247 = vmatprep.subr.bf16.mxu0 %v474_v13  ;;  %320 = vmatprep.subr.bf16.mxu1 %v476_v14  ;;  %v15_v33 = vld [vmem:[%s793_s0] sm:$0xff]  ;;  %v16_v34 = vld [vmem:[%s793_s0 + $0x8] sm:$0xff]  ;;  %v17_v36 = vld [vmem:[%s793_s0 + $0x10] sm:$0xff] }
   0xd   :  { %v23_v35 = vpack.c.bf16 %v16_v34, %v15_v33  ;;  %v18_v37 = vld [vmem:[%s793_s0 + $0x18] sm:$0xff]  ;;  %v19_v39 = vld [vmem:[%s793_s0 + $0x20] sm:$0xff]  ;;  %v20_v40 = vld [vmem:[%s793_s0 + $0x28] sm:$0xff]  ;;  %v63_v47 = vsub.s32 0, %v62_v46  ;;  %v71_v48 = vsub.s32 2, %v62_v46  ;;  %v67_v50 = vsub.s32 1, %v62_v46 }
   0xe   :  { %v24_v38 = vpack.c.bf16 %v18_v37, %v17_v36  ;;  %v25_v41 = vpack.c.bf16 %v20_v40, %v19_v39  ;;  %v21_v42 = vld [vmem:[%s793_s0 + $0x30] sm:$0xff]  ;;  %v22_v43 = vld [vmem:[%s793_s0 + $0x38] sm:$0xff]  ;;  %v59_v49 = vld [vmem:[%s794_s2] sm:$0xf]  ;;  %v75_v51 = vsub.s32 3, %v62_v46 }
   0xf   :  { %248 = vmatpush1.bf16.msra.mxu0 %v478_v15  ;;  %321 = vmatpush1.bf16.msra.mxu1 %v479_v16  ;;  %v26_v44 = vpack.c.bf16 %v22_v43, %v21_v42  ;;  %v656_v52 = vrot.slane %v59_v49, %v63_v47  ;;  %v658_v53 = vrot.slane %v59_v49, %v71_v48 }
  0x10   :  { %249 = vmatprep.subr.bf16.mxu0 %v480_v17  ;;  %322 = vmatprep.subr.bf16.mxu1 %v482_v18  ;;  %v660_v54 = vrot.slane %v59_v49, %v67_v50  ;;  %v662_v55 = vrot.slane %v59_v49, %v75_v51 }
  0x13   :  { %250 = vmatpush1.bf16.msra.mxu0 %v484_v19  ;;  %323 = vmatpush1.bf16.msra.mxu1 %v485_v20 }
  0x14   :  { %251 = vmatprep.subr.bf16.mxu0 %v486_v21  ;;  %324 = vmatprep.subr.bf16.mxu1 %v488_v22 }
  0x17   :  { %252 = vmatpush1.bf16.msra.mxu0 %v490_v23  ;;  %325 = vmatpush1.bf16.msra.mxu1 %v491_v24 }
  0x18   :  { %253 = vmatprep.subr.bf16.mxu0 %v492_v25  ;;  %326 = vmatprep.subr.bf16.mxu1 %v494_v26 }
  0x1b   :  { %254 = vmatpush1.bf16.msra.mxu0 %v496_v27  ;;  %327 = vmatpush1.bf16.msra.mxu1 %v497_v28 }
  0x1c   :  { %255 = vmatprep.subr.bf16.mxu0 %v498_v29  ;;  %328 = vmatprep.subr.bf16.mxu1 %v500_v30 }
  0x1f   :  { %256 = vmatpush1.bf16.msra.mxu0 %v502_v31  ;;  %329 = vmatpush1.bf16.msra.mxu1 %v503_v32 }
  0x22   :  { %274 = vmatmul.mubr.bf16.vlgmr.msra.gmra.mrb[0].mxu0 %v23_v35  ;;  %347 = vmatmul.mubr.bf16.vlgmr.msra.gmra.mrb[0].mxu1 %v23_v35 }
  0x23   :  { %283 = vmatprep.mubr.bf16.mxu0 %v504_v1  ;;  %356 = vmatprep.mubr.bf16.mxu1 %v504_v1 }
  0x2a   :  { %284 = vmatmul.mubr.bf16.gmra.mrb[4].mxu0 %v24_v38  ;;  %357 = vmatmul.mubr.bf16.gmra.mrb[4].mxu1 %v24_v38 }
  0x2b   :  { %293 = vmatprep.mubr.bf16.mxu0 %v504_v1  ;;  %366 = vmatprep.mubr.bf16.mxu1 %v504_v1 }
  0x32   :  { %294 = vmatmul.mubr.bf16.gmra.mrb[8].mxu0 %v25_v41  ;;  %367 = vmatmul.mubr.bf16.gmra.mrb[8].mxu1 %v25_v41 }
  0x33   :  { %303 = vmatprep.mubr.bf16.mxu0 %v504_v1  ;;  %376 = vmatprep.mubr.bf16.mxu1 %v504_v1 }
  0x3a   :  { %304 = vmatmul.mubr.bf16.gmra.mrb[12].mxu0 %v26_v44  ;;  %377 = vmatmul.mubr.bf16.gmra.mrb[12].mxu1 %v26_v44 }
  0xf5   :  { %v275_v56 = vpop.f32.mrb[0].mxu0  ;;  %v348_v57 = vpop.f32.mrb[0].mxu1 }
  0xf6   :  { %v276_v58 = vadd.f32 %v275_v56, %v656_v52  ;;  %v349_v59 = vadd.f32 %v348_v57, %v658_v53  ;;  %v277_v60 = vpop.f32.mrb[1].mxu0  ;;  %v350_v61 = vpop.f32.mrb[1].mxu1 }
  0xf7   :  { %v278_v62 = vadd.f32 %v277_v60, %v660_v54  ;;  %v351_v63 = vadd.f32 %v350_v61, %v662_v55  ;;  %v279_v0 = vpop.f32.mrb[2].mxu0  ;;  %v352_v1 = vpop.f32.mrb[2].mxu1 }
  0xf8   :  { %387 = vst [vmem:[%s795_s3] sm:$0xff] %v276_v58  ;;  %389 = vst [vmem:[%s795_s3 + $0x10] sm:$0xff] %v349_v59  ;;  %v280_v2 = vadd.f32 %v279_v0, %v656_v52  ;;  %v353_v3 = vadd.f32 %v352_v1, %v658_v53  ;;  %v281_v4 = vpop.f32.mrb[3].mxu0  ;;  %v354_v5 = vpop.f32.mrb[3].mxu1 }
  0xf9   :  { %388 = vst [vmem:[%s795_s3 + $0x8] sm:$0xff] %v278_v62  ;;  %390 = vst [vmem:[%s795_s3 + $0x18] sm:$0xff] %v351_v63  ;;  %v282_v6 = vadd.f32 %v281_v4, %v660_v54  ;;  %v355_v7 = vadd.f32 %v354_v5, %v662_v55 }
  0xfa   :  { %391 = vst [vmem:[%s795_s3 + $0x20] sm:$0xff] %v280_v2  ;;  %393 = vst [vmem:[%s795_s3 + $0x30] sm:$0xff] %v353_v3 }
  0xfb   :  { %392 = vst [vmem:[%s795_s3 + $0x28] sm:$0xff] %v282_v6  ;;  %394 = vst [vmem:[%s795_s3 + $0x38] sm:$0xff] %v355_v7 }
  0xfd   :  { %v285_v8 = vpop.f32.mrb[4].mxu0  ;;  %v358_v9 = vpop.f32.mrb[4].mxu1 }
  0xfe   :  { %v286_v10 = vadd.f32 %v285_v8, %v656_v52  ;;  %v359_v11 = vadd.f32 %v358_v9, %v658_v53  ;;  %v287_v12 = vpop.f32.mrb[5].mxu0  ;;  %v360_v13 = vpop.f32.mrb[5].mxu1 }
  0xff   :  { %v288_v14 = vadd.f32 %v287_v12, %v660_v54  ;;  %v361_v15 = vadd.f32 %v360_v13, %v662_v55  ;;  %v289_v16 = vpop.f32.mrb[6].mxu0  ;;  %v362_v17 = vpop.f32.mrb[6].mxu1 }
 0x100   :  { %395 = vst [vmem:[%s795_s3 + $0x40] sm:$0xff] %v286_v10  ;;  %397 = vst [vmem:[%s795_s3 + $0x50] sm:$0xff] %v359_v11  ;;  %v290_v18 = vadd.f32 %v289_v16, %v656_v52  ;;  %v363_v19 = vadd.f32 %v362_v17, %v658_v53  ;;  %v291_v20 = vpop.f32.mrb[7].mxu0  ;;  %v364_v21 = vpop.f32.mrb[7].mxu1 }
 0x101   :  { %396 = vst [vmem:[%s795_s3 + $0x48] sm:$0xff] %v288_v14  ;;  %398 = vst [vmem:[%s795_s3 + $0x58] sm:$0xff] %v361_v15  ;;  %v292_v22 = vadd.f32 %v291_v20, %v660_v54  ;;  %v365_v23 = vadd.f32 %v364_v21, %v662_v55 }
 0x102   :  { %399 = vst [vmem:[%s795_s3 + $0x60] sm:$0xff] %v290_v18  ;;  %401 = vst [vmem:[%s795_s3 + $0x70] sm:$0xff] %v363_v19 }
 0x103   :  { %400 = vst [vmem:[%s795_s3 + $0x68] sm:$0xff] %v292_v22  ;;  %402 = vst [vmem:[%s795_s3 + $0x78] sm:$0xff] %v365_v23 }
 0x105   :  { %v295_v24 = vpop.f32.mrb[8].mxu0  ;;  %v368_v25 = vpop.f32.mrb[8].mxu1 }
 0x106   :  { %v296_v26 = vadd.f32 %v295_v24, %v656_v52  ;;  %v369_v27 = vadd.f32 %v368_v25, %v658_v53  ;;  %v297_v28 = vpop.f32.mrb[9].mxu0  ;;  %v370_v29 = vpop.f32.mrb[9].mxu1 }
 0x107   :  { %v298_v30 = vadd.f32 %v297_v28, %v660_v54  ;;  %v371_v31 = vadd.f32 %v370_v29, %v662_v55  ;;  %v299_v32 = vpop.f32.mrb[10].mxu0  ;;  %v372_v33 = vpop.f32.mrb[10].mxu1 }
 0x108   :  { %403 = vst [vmem:[%s795_s3 + $0x80] sm:$0xff] %v296_v26  ;;  %405 = vst [vmem:[%s795_s3 + $0x90] sm:$0xff] %v369_v27  ;;  %v300_v34 = vadd.f32 %v299_v32, %v656_v52  ;;  %v373_v35 = vadd.f32 %v372_v33, %v658_v53  ;;  %v301_v36 = vpop.f32.mrb[11].mxu0  ;;  %v374_v37 = vpop.f32.mrb[11].mxu1 }
 0x109   :  { %404 = vst [vmem:[%s795_s3 + $0x88] sm:$0xff] %v298_v30  ;;  %406 = vst [vmem:[%s795_s3 + $0x98] sm:$0xff] %v371_v31  ;;  %v302_v38 = vadd.f32 %v301_v36, %v660_v54  ;;  %v375_v39 = vadd.f32 %v374_v37, %v662_v55 }
 0x10a   :  { %407 = vst [vmem:[%s795_s3 + $0xa0] sm:$0xff] %v300_v34  ;;  %409 = vst [vmem:[%s795_s3 + $0xb0] sm:$0xff] %v373_v35 }
 0x10b   :  { %408 = vst [vmem:[%s795_s3 + $0xa8] sm:$0xff] %v302_v38  ;;  %410 = vst [vmem:[%s795_s3 + $0xb8] sm:$0xff] %v375_v39 }
 0x10d   :  { %v305_v40 = vpop.f32.mrb[12].mxu0  ;;  %v378_v41 = vpop.f32.mrb[12].mxu1 }
 0x10e   :  { %v306_v42 = vadd.f32 %v305_v40, %v656_v52  ;;  %v379_v43 = vadd.f32 %v378_v41, %v658_v53  ;;  %v307_v44 = vpop.f32.mrb[13].mxu0  ;;  %v380_v45 = vpop.f32.mrb[13].mxu1 }
 0x10f   :  { %v308_v46 = vadd.f32 %v307_v44, %v660_v54  ;;  %v381_v47 = vadd.f32 %v380_v45, %v662_v55  ;;  %v309_v48 = vpop.f32.mrb[14].mxu0  ;;  %v382_v49 = vpop.f32.mrb[14].mxu1 }
 0x110   :  { %411 = vst [vmem:[%s795_s3 + $0xc0] sm:$0xff] %v306_v42  ;;  %413 = vst [vmem:[%s795_s3 + $0xd0] sm:$0xff] %v379_v43  ;;  %v310_v50 = vadd.f32 %v309_v48, %v656_v52  ;;  %v383_v51 = vadd.f32 %v382_v49, %v658_v53  ;;  %v311_v56 = vpop.f32.mrb[15].mxu0  ;;  %v384_v57 = vpop.f32.mrb[15].mxu1 }
 0x111   :  { %412 = vst [vmem:[%s795_s3 + $0xc8] sm:$0xff] %v308_v46  ;;  %414 = vst [vmem:[%s795_s3 + $0xd8] sm:$0xff] %v381_v47  ;;  %v312_v58 = vadd.f32 %v311_v56, %v660_v54  ;;  %v385_v59 = vadd.f32 %v384_v57, %v662_v55 }
 0x112   :  { %415 = vst [vmem:[%s795_s3 + $0xe0] sm:$0xff] %v310_v50  ;;  %417 = vst [vmem:[%s795_s3 + $0xf0] sm:$0xff] %v383_v51 }
 0x113   :  { %416 = vst [vmem:[%s795_s3 + $0xe8] sm:$0xff] %v312_v58  ;;  %418 = vst [vmem:[%s795_s3 + $0xf8] sm:$0xff] %v385_v59 }

// kernel: stage1_forward.17
= control target key start
LH: loop header
LB: loop body
LE: loop exit
PB: predicated region body
PF: predicated region fallthrough
CT: control target
= control target key end

     0   :  { %s339_s1 = inlined_call_operand.vmem [shape: bf16[128,128], index: 1, kind: input, shape index: {}]   ;;  %s340_s0 = inlined_call_operand.vmem [shape: f32[64,128], index: 0, kind: input, shape index: {}]   ;;  %s341_s2 = inlined_call_operand.vmem [shape: f32[1,128], index: 2, kind: input, shape index: {}]   ;;  %s342_s3 = inlined_call_operand.vmem [shape: f32[64,128], index: 3, kind: output, shape index: {}]  }
   0x1   :  { %v236_v0 = vld [vmem:[%s339_s1] sm:$0xff]   ;;  %v237_v1 = vld [vmem:[%s339_s1 + $0x8] sm:$0xff]   ;;  %v238_v2 = vld [vmem:[%s339_s1 + $0x10] sm:$0xff]  }
   0x2   :  { %196 = vmatprep.subr.bf16.mxu0 %v236_v0  ;;  %220 = vmatprep.subr.bf16.mxu1 %v236_v0  ;;  %v239_v3 = vld [vmem:[%s339_s1 + $0x18] sm:$0xff]   ;;  %v15_v4 = vld [vmem:[%s340_s0] sm:$0xff]  ;;  %v16_v5 = vld [vmem:[%s340_s0 + $0x8] sm:$0xff] }
   0x3   :  { %197 = vmatpush3.bf16.msra.mxu0 %v236_v0  ;;  %228 = vmatpush3.bf16.msra.mxu1 %v236_v0  ;;  %v19_v6 = vld [vmem:[%s340_s0 + $0x20] sm:$0xff]  ;;  %v23_v7 = vpack.c.bf16 %v16_v5, %v15_v4  ;;  %v20_v8 = vld [vmem:[%s340_s0 + $0x28] sm:$0xff]  ;;  %v242_v12 = vld [vmem:[%s339_s1 + $0x30] sm:$0xff]  }
   0x4   :  { %198 = vmatprep.subr.bf16.mxu0 %v237_v1  ;;  %221 = vmatprep.subr.bf16.mxu1 %v237_v1  ;;  %v25_v9 = vpack.c.bf16 %v20_v8, %v19_v6  ;;  %v240_v10 = vld [vmem:[%s339_s1 + $0x20] sm:$0xff]   ;;  %v241_v11 = vld [vmem:[%s339_s1 + $0x28] sm:$0xff]   ;;  %v243_v13 = vld [vmem:[%s339_s1 + $0x38] sm:$0xff]  }
   0x5   :  { %212 = vmatprep.mubr.bf16.mxu0 %v23_v7  ;;  %v17_v14 = vld [vmem:[%s340_s0 + $0x10] sm:$0xff]  ;;  %v18_v15 = vld [vmem:[%s340_s0 + $0x18] sm:$0xff]  ;;  %v175_v20 = vld [vmem:[%s341_s2] ss:$0 sm:$0xff] }
   0x6   :  { %216 = vmatprep.mubr.bf16.mxu1 %v25_v9  ;;  %v21_v16 = vld [vmem:[%s340_s0 + $0x30] sm:$0xff]  ;;  %v22_v17 = vld [vmem:[%s340_s0 + $0x38] sm:$0xff]  ;;  %v24_v18 = vpack.c.bf16 %v18_v15, %v17_v14 }
   0x7   :  { %199 = vmatpush3.bf16.msra.mxu0 %v237_v1  ;;  %229 = vmatpush3.bf16.msra.mxu1 %v237_v1  ;;  %v26_v19 = vpack.c.bf16 %v22_v17, %v21_v16 }
   0x8   :  { %200 = vmatprep.subr.bf16.mxu0 %v238_v2  ;;  %222 = vmatprep.subr.bf16.mxu1 %v238_v2 }
   0xb   :  { %201 = vmatpush3.bf16.msra.mxu0 %v238_v2  ;;  %230 = vmatpush3.bf16.msra.mxu1 %v238_v2 }
   0xc   :  { %202 = vmatprep.subr.bf16.mxu0 %v239_v3  ;;  %223 = vmatprep.subr.bf16.mxu1 %v239_v3 }
   0xf   :  { %203 = vmatpush3.bf16.msra.mxu0 %v239_v3  ;;  %231 = vmatpush3.bf16.msra.mxu1 %v239_v3 }
  0x10   :  { %204 = vmatprep.subr.bf16.mxu0 %v240_v10  ;;  %224 = vmatprep.subr.bf16.mxu1 %v240_v10 }
  0x13   :  { %205 = vmatpush3.bf16.msra.mxu0 %v240_v10  ;;  %232 = vmatpush3.bf16.msra.mxu1 %v240_v10 }
  0x14   :  { %206 = vmatprep.subr.bf16.mxu0 %v241_v11  ;;  %225 = vmatprep.subr.bf16.mxu1 %v241_v11 }
  0x17   :  { %207 = vmatpush3.bf16.msra.mxu0 %v241_v11  ;;  %233 = vmatpush3.bf16.msra.mxu1 %v241_v11 }
  0x18   :  { %208 = vmatprep.subr.bf16.mxu0 %v242_v12  ;;  %226 = vmatprep.subr.bf16.mxu1 %v242_v12 }
  0x1b   :  { %209 = vmatpush3.bf16.msra.mxu0 %v242_v12  ;;  %234 = vmatpush3.bf16.msra.mxu1 %v242_v12 }
  0x1c   :  { %210 = vmatprep.subr.bf16.mxu0 %v243_v13  ;;  %227 = vmatprep.subr.bf16.mxu1 %v243_v13 }
  0x1f   :  { %211 = vmatpush3.bf16.msra.mxu0 %v243_v13  ;;  %235 = vmatpush3.bf16.msra.mxu1 %v243_v13 }
  0x22   :  { %213 = vmatmul.mubr.bf16.vlgmr.msra.gmra.mrb[0].mxu0 %v24_v18  ;;  %217 = vmatmul.mubr.bf16.vlgmr.msra.gmra.mrb[0].mxu1 %v26_v19 }
  0xf5   :  { %v214_v21 = vpop.f32.mrb[0].mxu0  ;;  %v218_v22 = vpop.f32.mrb[0].mxu1 }
  0xf6   :  { %v141_v23 = vadd.f32 %v214_v21, %v175_v20  ;;  %v157_v24 = vadd.f32 %v218_v22, %v175_v20  ;;  %v132_v25 = vpop.f32.mrb[1].mxu0  ;;  %v148_v26 = vpop.f32.mrb[1].mxu1 }
  0xf7   :  { %v133_v27 = vadd.f32 %v175_v20, %v132_v25  ;;  %v149_v28 = vadd.f32 %v175_v20, %v148_v26  ;;  %v215_v29 = vpop.f32.mrb[2].mxu0  ;;  %v219_v30 = vpop.f32.mrb[2].mxu1 }
  0xf8   :  { %165 = vst [vmem:[%s342_s3 + $0x10] sm:$0xff] %v141_v23  ;;  %169 = vst [vmem:[%s342_s3 + $0x30] sm:$0xff] %v157_v24  ;;  %v144_v31 = vadd.f32 %v215_v29, %v175_v20  ;;  %v160_v32 = vadd.f32 %v219_v30, %v175_v20  ;;  %v135_v33 = vpop.f32.mrb[3].mxu0  ;;  %v151_v34 = vpop.f32.mrb[3].mxu1 }
  0xf9   :  { %163 = vst [vmem:[%s342_s3] sm:$0xff] %v133_v27  ;;  %167 = vst [vmem:[%s342_s3 + $0x20] sm:$0xff] %v149_v28  ;;  %v136_v35 = vadd.f32 %v175_v20, %v135_v33  ;;  %v152_v36 = vadd.f32 %v175_v20, %v151_v34 }
  0xfa   :  { %166 = vst [vmem:[%s342_s3 + $0x18] sm:$0xff] %v144_v31  ;;  %170 = vst [vmem:[%s342_s3 + $0x38] sm:$0xff] %v160_v32 }
  0xfb   :  { %164 = vst [vmem:[%s342_s3 + $0x8] sm:$0xff] %v136_v35  ;;  %168 = vst [vmem:[%s342_s3 + $0x28] sm:$0xff] %v152_v36 }

// kernel: stage1_forward.16
= control target key start
LH: loop header
LB: loop body
LE: loop exit
PB: predicated region body
PF: predicated region fallthrough
CT: control target
= control target key end

     0   :  { %v1461_v1 = vmov 0   ;;  %v1462_v33 = vmov 0.0|0.0   ;;  %s2118_s1 = inlined_call_operand.vmem [shape: bf16[128,512], index: 1, kind: input, shape index: {}]   ;;  %s2119_s0 = inlined_call_operand.vmem [shape: f32[8,8,512], index: 0, kind: input, shape index: {}]   ;;  %s2120_s2 = inlined_call_operand.vmem [shape: f32[8,8,128], index: 2, kind: output, shape index: {}]  }
   0x1   :  { %v1481_v0 = vld [vmem:[%s2118_s1 + $0x4] ss:$16 sps:$4 sm:$0xff]   ;;  %249 = vmatprep.mubr.bf16.mxu0 %v1461_v1  ;;  %290 = vmatprep.mubr.bf16.mxu1 %v1461_v1  ;;  %v1488_v2 = vld [vmem:[%s2118_s1] ss:$16 sps:$4 sm:$0xff]   ;;  %v1511_v6 = vld [vmem:[%s2118_s1 + $0xc] ss:$16 sps:$4 sm:$0xff]  }
   0x2   :  { %217 = vmatprep.subr.bf16.mxu0 %v1481_v0  ;;  %v1494_v3 = vld [vmem:[%s2118_s1 + $0x24] ss:$16 sps:$4 sm:$0xff]   ;;  %v1500_v4 = vld [vmem:[%s2118_s1 + $0x20] ss:$16 sps:$4 sm:$0xff]   ;;  %v1516_v7 = vld [vmem:[%s2118_s1 + $0x8] ss:$16 sps:$4 sm:$0xff]   ;;  %258 = vmatprep.subr.bf16.mxu1 %v1511_v6 }
   0x3   :  { %218 = vmatpush1.bf16.msra.mxu0 %v1488_v2  ;;  %v1506_v5 = vld [vmem:[%s2118_s1 + $0x44] ss:$16 sps:$4 sm:$0xff]   ;;  %v1522_v8 = vld [vmem:[%s2118_s1 + $0x40] ss:$16 sps:$4 sm:$0xff]   ;;  %259 = vmatpush1.bf16.msra.mxu1 %v1516_v7  ;;  %v1535_v10 = vld [vmem:[%s2118_s1 + $0x2c] ss:$16 sps:$4 sm:$0xff]  }
   0x4   :  { %219 = vmatprep.subr.bf16.mxu0 %v1494_v3  ;;  %v1529_v9 = vld [vmem:[%s2118_s1 + $0x64] ss:$16 sps:$4 sm:$0xff]   ;;  %v1540_v11 = vld [vmem:[%s2118_s1 + $0x28] ss:$16 sps:$4 sm:$0xff]   ;;  %260 = vmatprep.subr.bf16.mxu1 %v1535_v10  ;;  %v1547_v12 = vld [vmem:[%s2118_s1 + $0x60] ss:$16 sps:$4 sm:$0xff]  }
   0x5   :  { %v1552_v13 = vld [vmem:[%s2118_s1 + $0x84] ss:$16 sps:$4 sm:$0xff]   ;;  %v1557_v14 = vld [vmem:[%s2118_s1 + $0x4c] ss:$16 sps:$4 sm:$0xff]   ;;  %v1564_v15 = vld [vmem:[%s2118_s1 + $0x48] ss:$16 sps:$4 sm:$0xff]  }
   0x6   :  { %v1570_v16 = vld [vmem:[%s2118_s1 + $0x6c] ss:$16 sps:$4 sm:$0xff]   ;;  %v1576_v17 = vld [vmem:[%s2118_s1 + $0x80] ss:$16 sps:$4 sm:$0xff]   ;;  %v1582_v18 = vld [vmem:[%s2118_s1 + $0xa4] ss:$16 sps:$4 sm:$0xff]  }
   0x7   :  { %220 = vmatpush1.bf16.msra.mxu0 %v1500_v4  ;;  %261 = vmatpush1.bf16.msra.mxu1 %v1540_v11  ;;  %v1588_v19 = vld [vmem:[%s2118_s1 + $0x68] ss:$16 sps:$4 sm:$0xff]   ;;  %v1594_v20 = vld [vmem:[%s2118_s1 + $0x8c] ss:$16 sps:$4 sm:$0xff]   ;;  %v1600_v21 = vld [vmem:[%s2118_s1 + $0xa0] ss:$16 sps:$4 sm:$0xff]  }
   0x8   :  { %221 = vmatprep.subr.bf16.mxu0 %v1506_v5  ;;  %262 = vmatprep.subr.bf16.mxu1 %v1557_v14  ;;  %v1605_v22 = vld [vmem:[%s2118_s1 + $0xc4] ss:$16 sps:$4 sm:$0xff]   ;;  %v1612_v23 = vld [vmem:[%s2118_s1 + $0x88] ss:$16 sps:$4 sm:$0xff]   ;;  %v1618_v24 = vld [vmem:[%s2118_s1 + $0xac] ss:$16 sps:$4 sm:$0xff]  }
   0x9   :  { %v1624_v25 = vld [vmem:[%s2118_s1 + $0xc0] ss:$16 sps:$4 sm:$0xff]   ;;  %v1630_v26 = vld [vmem:[%s2118_s1 + $0xe4] ss:$16 sps:$4 sm:$0xff]   ;;  %v1636_v27 = vld [vmem:[%s2118_s1 + $0xa8] ss:$16 sps:$4 sm:$0xff]  }
   0xa   :  { %v1642_v28 = vld [vmem:[%s2118_s1 + $0xcc] ss:$16 sps:$4 sm:$0xff]   ;;  %v1648_v29 = vld [vmem:[%s2118_s1 + $0xe0] ss:$16 sps:$4 sm:$0xff]   ;;  %v1655_v30 = vld [vmem:[%s2118_s1 + $0xc8] ss:$16 sps:$4 sm:$0xff]  }
   0xb   :  { %222 = vmatpush1.bf16.msra.mxu0 %v1522_v8  ;;  %263 = vmatpush1.bf16.msra.mxu1 %v1564_v15  ;;  %v1661_v31 = vld [vmem:[%s2118_s1 + $0xec] ss:$16 sps:$4 sm:$0xff]   ;;  %v1668_v32 = vld [vmem:[%s2118_s1 + $0xe8] ss:$16 sps:$4 sm:$0xff]   ;;  %v52_v34 = vld [vmem:[%s2119_s0] sm:$0xff] }
   0xc   :  { %223 = vmatprep.subr.bf16.mxu0 %v1529_v9  ;;  %264 = vmatprep.subr.bf16.mxu1 %v1570_v16  ;;  %v53_v35 = vld [vmem:[%s2119_s0 + $0x8] sm:$0xff]  ;;  %v55_v44 = vld [vmem:[%s2119_s0 + $0x18] sm:$0xff]  ;;  %v54_v50 = vld [vmem:[%s2119_s0 + $0x10] sm:$0xff] }
   0xf   :  { %224 = vmatpush1.bf16.msra.mxu0 %v1547_v12  ;;  %265 = vmatpush1.bf16.msra.mxu1 %v1588_v19 }
  0x10   :  { %225 = vmatprep.subr.bf16.mxu0 %v1552_v13  ;;  %266 = vmatprep.subr.bf16.mxu1 %v1594_v20 }
  0x13   :  { %226 = vmatpush1.bf16.msra.mxu0 %v1576_v17  ;;  %267 = vmatpush1.bf16.msra.mxu1 %v1612_v23 }
  0x14   :  { %227 = vmatprep.subr.bf16.mxu0 %v1582_v18  ;;  %268 = vmatprep.subr.bf16.mxu1 %v1618_v24 }
  0x17   :  { %228 = vmatpush1.bf16.msra.mxu0 %v1600_v21  ;;  %269 = vmatpush1.bf16.msra.mxu1 %v1636_v27 }
  0x18   :  { %229 = vmatprep.subr.bf16.mxu0 %v1605_v22  ;;  %270 = vmatprep.subr.bf16.mxu1 %v1642_v28 }
  0x1b   :  { %230 = vmatpush1.bf16.msra.mxu0 %v1624_v25  ;;  %271 = vmatpush1.bf16.msra.mxu1 %v1655_v30 }
  0x1c   :  { %231 = vmatprep.subr.bf16.mxu0 %v1630_v26  ;;  %272 = vmatprep.subr.bf16.mxu1 %v1661_v31 }
  0x1f   :  { %232 = vmatpush1.bf16.msra.mxu0 %v1648_v29  ;;  %273 = vmatpush1.bf16.msra.mxu1 %v1668_v32 }
  0x20   :  { %334 = vmatprep.subr.bf16.mxu0 %v1481_v0  ;;  %375 = vmatprep.subr.bf16.mxu1 %v1511_v6 }
  0x22   :  { %250 = vmatmul.mubr.bf16.vlgmr.msra.gmra.mrb[0].mxu0 %v1462_v33  ;;  %291 = vmatmul.mubr.bf16.vlgmr.msra.gmra.mrb[0].mxu1 %v1462_v33 }
  0x23   :  { %335 = vmatpush1.bf16.msra.mxu0 %v1488_v2  ;;  %366 = vmatprep.mubr.bf16.mxu0 %v1461_v1 }
  0x24   :  { %336 = vmatprep.subr.bf16.mxu0 %v1494_v3  ;;  %376 = vmatpush1.bf16.msra.mxu1 %v1516_v7 }
  0x25   :  { %377 = vmatprep.subr.bf16.mxu1 %v1535_v10  ;;  %407 = vmatprep.mubr.bf16.mxu1 %v1461_v1 }
  0x27   :  { %337 = vmatpush1.bf16.msra.mxu0 %v1500_v4 }
  0x28   :  { %338 = vmatprep.subr.bf16.mxu0 %v1506_v5  ;;  %378 = vmatpush1.bf16.msra.mxu1 %v1540_v11 }
  0x29   :  { %379 = vmatprep.subr.bf16.mxu1 %v1557_v14 }
  0x2b   :  { %339 = vmatpush1.bf16.msra.mxu0 %v1522_v8 }
  0x2c   :  { %340 = vmatprep.subr.bf16.mxu0 %v1529_v9  ;;  %380 = vmatpush1.bf16.msra.mxu1 %v1564_v15 }
  0x2d   :  { %381 = vmatprep.subr.bf16.mxu1 %v1570_v16 }
  0x2f   :  { %341 = vmatpush1.bf16.msra.mxu0 %v1547_v12 }
  0x30   :  { %342 = vmatprep.subr.bf16.mxu0 %v1552_v13  ;;  %382 = vmatpush1.bf16.msra.mxu1 %v1588_v19 }
  0x31   :  { %383 = vmatprep.subr.bf16.mxu1 %v1594_v20 }
  0x33   :  { %343 = vmatpush1.bf16.msra.mxu0 %v1576_v17 }
  0x34   :  { %344 = vmatprep.subr.bf16.mxu0 %v1582_v18  ;;  %384 = vmatpush1.bf16.msra.mxu1 %v1612_v23 }
  0x35   :  { %385 = vmatprep.subr.bf16.mxu1 %v1618_v24 }
  0x37   :  { %345 = vmatpush1.bf16.msra.mxu0 %v1600_v21 }
  0x38   :  { %346 = vmatprep.subr.bf16.mxu0 %v1605_v22  ;;  %386 = vmatpush1.bf16.msra.mxu1 %v1636_v27 }
  0x39   :  { %387 = vmatprep.subr.bf16.mxu1 %v1642_v28 }
  0x3b   :  { %347 = vmatpush1.bf16.msra.mxu0 %v1624_v25 }
  0x3c   :  { %348 = vmatprep.subr.bf16.mxu0 %v1630_v26  ;;  %388 = vmatpush1.bf16.msra.mxu1 %v1655_v30 }
  0x3d   :  { %389 = vmatprep.subr.bf16.mxu1 %v1661_v31 }
  0x3f   :  { %349 = vmatpush1.bf16.msra.mxu0 %v1648_v29 }
  0x40   :  { %452 = vmatprep.subr.bf16.mxu0 %v1481_v0  ;;  %390 = vmatpush1.bf16.msra.mxu1 %v1668_v32 }
  0x41   :  { %493 = vmatprep.subr.bf16.mxu1 %v1511_v6 }
  0xf5   :  { %v251_v36 = vpop.f32.mrb[0].mxu0  ;;  %v292_v45 = vpop.f32.mrb[0].mxu1 }
  0xf6   :  { %v299_v37 = vadd.f32 %v251_v36, %v52_v34  ;;  %v253_v38 = vpop.f32.mrb[1].mxu0  ;;  %v294_v46 = vpop.f32.mrb[1].mxu1  ;;  %v301_v52 = vadd.f32 %v292_v45, %v54_v50 }
  0xf7   :  { %v300_v39 = vadd.f32 %v253_v38, %v53_v35  ;;  %v255_v40 = vpop.f32.mrb[2].mxu0  ;;  %v302_v47 = vadd.f32 %v294_v46, %v55_v44  ;;  %v296_v48 = vpop.f32.mrb[2].mxu1  ;;  %v1195_v38 = vld [vmem:[%s2119_s0 + $0x20] sm:$0xff] }
  0xf8   :  { %v1192_v41 = vmul.f32 -1.442695, %v299_v37  ;;  %v256_v42 = vpop.f32.mrb[3].mxu0  ;;  %v297_v49 = vpop.f32.mrb[3].mxu1 }
  0xf9   :  { %v1193_v43 = vmul.f32 -1.442695, %v300_v39  ;;  %v1194_v51 = vmul.f32 -1.442695, %v302_v47  ;;  %v1196_v39 = vld [vmem:[%s2119_s0 + $0x28] sm:$0xff] }
  0xfa   :  { %1301 = vpow2.f32 %v1192_v41 }
  0xfb   :  { %1303 = vpow2.f32 %v1193_v43 }
  0xfc   :  { %1305 = vpow2.f32 %v1194_v51 }
  0xfd   :  { %1307 = vtanh.f32 %v301_v52  ;;  %v1198_v52 = vld [vmem:[%s2119_s0 + $0x38] sm:$0xff] }
 0x104   :  { %v1302_v53 = vpop.eup %1301 }
 0x105   :  { %v1304_v54 = vpop.eup %1303  ;;  %v306_v55 = vadd.f32 1.0, %v1302_v53 }
 0x106   :  { %v312_v56 = vadd.f32 1.0, %v1304_v54  ;;  %v1306_v57 = vpop.eup %1305  ;;  %v1197_v54 = vld [vmem:[%s2119_s0 + $0x30] sm:$0xff] }
 0x107   :  { %1309 = vrcp.f32 %v306_v55  ;;  %v1308_v58 = vpop.eup %1307  ;;  %v319_v60 = vadd.f32 1.0, %v1306_v57 }
 0x108   :  { %1311 = vrcp.f32 %v312_v56 }
 0x109   :  { %1313 = vrcp.f32 %v319_v60 }
 0x111   :  { %v1310_v59 = vpop.eup %1309 }
 0x112   :  { %v1312_v61 = vpop.eup %1311  ;;  %v323_v62 = vmul.f32 %v1310_v59, %v1308_v58 }
 0x113   :  { %v322_v63 = vmul.f32 0.0, %v1312_v61  ;;  %v1314_v34 = vpop.eup %1313 }
 0x115   :  { %v1720_v33 = vadd.f32 %v323_v62, %v322_v63 }
 0x117   :  { %1315 = vtanh.f32 %v1720_v33 }
 0x121   :  { %v1316_v35 = vpop.eup %1315 }
 0x122   :  { %v326_v36 = vmul.f32 %v1316_v35, %v1314_v34 }
 0x124   :  { %327 = vst [vmem:[%s2120_s2] sm:$0xff] %v326_v36  ;;  %v333_v37 = vpack.c.bf16 %v326_v36, %v326_v36 }
 0x126   :  { %367 = vmatmul.mubr.bf16.vlgmr.msra.gmra.mrb[4].mxu0 %v333_v37  ;;  %408 = vmatmul.mubr.bf16.vlgmr.msra.gmra.mrb[4].mxu1 %v333_v37 }
 0x127   :  { %453 = vmatpush1.bf16.msra.mxu0 %v1488_v2  ;;  %494 = vmatpush1.bf16.msra.mxu1 %v1516_v7 }
 0x128   :  { %454 = vmatprep.subr.bf16.mxu0 %v1494_v3  ;;  %495 = vmatprep.subr.bf16.mxu1 %v1535_v10 }
 0x129   :  { %484 = vmatprep.mubr.bf16.mxu0 %v1461_v1  ;;  %525 = vmatprep.mubr.bf16.mxu1 %v1461_v1 }
 0x12b   :  { %455 = vmatpush1.bf16.msra.mxu0 %v1500_v4  ;;  %496 = vmatpush1.bf16.msra.mxu1 %v1540_v11 }
 0x12c   :  { %456 = vmatprep.subr.bf16.mxu0 %v1506_v5  ;;  %497 = vmatprep.subr.bf16.mxu1 %v1557_v14 }
 0x12f   :  { %457 = vmatpush1.bf16.msra.mxu0 %v1522_v8  ;;  %498 = vmatpush1.bf16.msra.mxu1 %v1564_v15 }
 0x130   :  { %458 = vmatprep.subr.bf16.mxu0 %v1529_v9  ;;  %499 = vmatprep.subr.bf16.mxu1 %v1570_v16 }
 0x133   :  { %459 = vmatpush1.bf16.msra.mxu0 %v1547_v12  ;;  %500 = vmatpush1.bf16.msra.mxu1 %v1588_v19 }
 0x134   :  { %460 = vmatprep.subr.bf16.mxu0 %v1552_v13  ;;  %501 = vmatprep.subr.bf16.mxu1 %v1594_v20 }
 0x137   :  { %461 = vmatpush1.bf16.msra.mxu0 %v1576_v17  ;;  %502 = vmatpush1.bf16.msra.mxu1 %v1612_v23 }
 0x138   :  { %462 = vmatprep.subr.bf16.mxu0 %v1582_v18  ;;  %503 = vmatprep.subr.bf16.mxu1 %v1618_v24 }
 0x13b   :  { %463 = vmatpush1.bf16.msra.mxu0 %v1600_v21  ;;  %504 = vmatpush1.bf16.msra.mxu1 %v1636_v27 }
 0x13c   :  { %464 = vmatprep.subr.bf16.mxu0 %v1605_v22  ;;  %505 = vmatprep.subr.bf16.mxu1 %v1642_v28 }
 0x13f   :  { %465 = vmatpush1.bf16.msra.mxu0 %v1624_v25  ;;  %506 = vmatpush1.bf16.msra.mxu1 %v1655_v30 }
 0x140   :  { %466 = vmatprep.subr.bf16.mxu0 %v1630_v26  ;;  %507 = vmatprep.subr.bf16.mxu1 %v1661_v31 }
 0x143   :  { %467 = vmatpush1.bf16.msra.mxu0 %v1648_v29  ;;  %508 = vmatpush1.bf16.msra.mxu1 %v1668_v32 }
 0x144   :  { %570 = vmatprep.subr.bf16.mxu0 %v1481_v0  ;;  %611 = vmatprep.subr.bf16.mxu1 %v1511_v6 }
 0x1f9   :  { %v368_v40 = vpop.f32.mrb[4].mxu0  ;;  %v409_v41 = vpop.f32.mrb[4].mxu1 }
 0x1fa   :  { %v416_v42 = vadd.f32 %v1195_v38, %v368_v40  ;;  %v370_v43 = vpop.f32.mrb[5].mxu0  ;;  %v411_v44 = vpop.f32.mrb[5].mxu1  ;;  %v418_v56 = vadd.f32 %v1197_v54, %v409_v41 }
 0x1fb   :  { %v417_v45 = vadd.f32 %v1196_v39, %v370_v43  ;;  %v372_v46 = vpop.f32.mrb[6].mxu0  ;;  %v413_v47 = vpop.f32.mrb[6].mxu1  ;;  %v419_v53 = vadd.f32 %v1198_v52, %v411_v44  ;;  %v1204_v43 = vld [vmem:[%s2119_s0 + $0x48] sm:$0xff] }
 0x1fc   :  { %v1199_v48 = vmul.f32 -1.442695, %v416_v42  ;;  %v373_v49 = vpop.f32.mrb[7].mxu0  ;;  %v414_v50 = vpop.f32.mrb[7].mxu1 }
 0x1fd   :  { %v1200_v51 = vmul.f32 -1.442695, %v417_v45  ;;  %v1201_v55 = vmul.f32 -1.442695, %v419_v53 }
 0x1fe   :  { %1317 = vpow2.f32 %v1199_v48 }
 0x1ff   :  { %1319 = vpow2.f32 %v1200_v51 }
 0x200   :  { %1321 = vpow2.f32 %v1201_v55 }
 0x201   :  { %1323 = vtanh.f32 %v418_v56  ;;  %v1206_v56 = vld [vmem:[%s2119_s0 + $0x58] sm:$0xff] }
 0x208   :  { %v1318_v57 = vpop.eup %1317 }
 0x209   :  { %v1320_v58 = vpop.eup %1319  ;;  %v423_v59 = vadd.f32 1.0, %v1318_v57 }
 0x20a   :  { %v429_v60 = vadd.f32 1.0, %v1320_v58  ;;  %v1322_v61 = vpop.eup %1321  ;;  %v1205_v58 = vld [vmem:[%s2119_s0 + $0x50] sm:$0xff] }
 0x20b   :  { %1325 = vrcp.f32 %v423_v59  ;;  %v1324_v62 = vpop.eup %1323  ;;  %v436_v36 = vadd.f32 1.0, %v1322_v61 }
 0x20c   :  { %1327 = vrcp.f32 %v429_v60 }
 0x20d   :  { %1329 = vrcp.f32 %v436_v36 }
 0x215   :  { %v1326_v63 = vpop.eup %1325 }
 0x216   :  { %v1328_v34 = vpop.eup %1327  ;;  %v440_v35 = vmul.f32 %v1326_v63, %v1324_v62 }
 0x217   :  { %v439_v37 = vmul.f32 %v1328_v34, %v1720_v33  ;;  %v1330_v39 = vpop.eup %1329  ;;  %v1203_v33 = vld [vmem:[%s2119_s0 + $0x40] sm:$0xff] }
 0x219   :  { %v1773_v38 = vadd.f32 %v440_v35, %v439_v37 }
 0x21b   :  { %1331 = vtanh.f32 %v1773_v38 }
 0x225   :  { %v1332_v40 = vpop.eup %1331 }
 0x226   :  { %v443_v41 = vmul.f32 %v1332_v40, %v1330_v39 }
 0x228   :  { %1202 = vst [vmem:[%s2120_s2 + $0x8] sm:$0xff] %v443_v41  ;;  %v451_v42 = vpack.c.bf16 %v443_v41, %v443_v41 }
 0x22a   :  { %485 = vmatmul.mubr.bf16.vlgmr.msra.gmra.mrb[8].mxu0 %v451_v42  ;;  %526 = vmatmul.mubr.bf16.vlgmr.msra.gmra.mrb[8].mxu1 %v451_v42 }
 0x22b   :  { %571 = vmatpush1.bf16.msra.mxu0 %v1488_v2  ;;  %612 = vmatpush1.bf16.msra.mxu1 %v1516_v7 }
 0x22c   :  { %572 = vmatprep.subr.bf16.mxu0 %v1494_v3  ;;  %613 = vmatprep.subr.bf16.mxu1 %v1535_v10 }
 0x22d   :  { %602 = vmatprep.mubr.bf16.mxu0 %v1461_v1  ;;  %643 = vmatprep.mubr.bf16.mxu1 %v1461_v1 }
 0x22f   :  { %573 = vmatpush1.bf16.msra.mxu0 %v1500_v4  ;;  %614 = vmatpush1.bf16.msra.mxu1 %v1540_v11 }
 0x230   :  { %574 = vmatprep.subr.bf16.mxu0 %v1506_v5  ;;  %615 = vmatprep.subr.bf16.mxu1 %v1557_v14 }
 0x233   :  { %575 = vmatpush1.bf16.msra.mxu0 %v1522_v8  ;;  %616 = vmatpush1.bf16.msra.mxu1 %v1564_v15 }
 0x234   :  { %576 = vmatprep.subr.bf16.mxu0 %v1529_v9  ;;  %617 = vmatprep.subr.bf16.mxu1 %v1570_v16 }
 0x237   :  { %577 = vmatpush1.bf16.msra.mxu0 %v1547_v12  ;;  %618 = vmatpush1.bf16.msra.mxu1 %v1588_v19 }
 0x238   :  { %578 = vmatprep.subr.bf16.mxu0 %v1552_v13  ;;  %619 = vmatprep.subr.bf16.mxu1 %v1594_v20 }
 0x23b   :  { %579 = vmatpush1.bf16.msra.mxu0 %v1576_v17  ;;  %620 = vmatpush1.bf16.msra.mxu1 %v1612_v23 }
 0x23c   :  { %580 = vmatprep.subr.bf16.mxu0 %v1582_v18  ;;  %621 = vmatprep.subr.bf16.mxu1 %v1618_v24 }
 0x23f   :  { %581 = vmatpush1.bf16.msra.mxu0 %v1600_v21  ;;  %622 = vmatpush1.bf16.msra.mxu1 %v1636_v27 }
 0x240   :  { %582 = vmatprep.subr.bf16.mxu0 %v1605_v22  ;;  %623 = vmatprep.subr.bf16.mxu1 %v1642_v28 }
 0x243   :  { %583 = vmatpush1.bf16.msra.mxu0 %v1624_v25  ;;  %624 = vmatpush1.bf16.msra.mxu1 %v1655_v30 }
 0x244   :  { %584 = vmatprep.subr.bf16.mxu0 %v1630_v26  ;;  %625 = vmatprep.subr.bf16.mxu1 %v1661_v31 }
 0x247   :  { %585 = vmatpush1.bf16.msra.mxu0 %v1648_v29  ;;  %626 = vmatpush1.bf16.msra.mxu1 %v1668_v32 }
 0x248   :  { %688 = vmatprep.subr.bf16.mxu0 %v1481_v0  ;;  %729 = vmatprep.subr.bf16.mxu1 %v1511_v6 }
 0x2fd   :  { %v486_v44 = vpop.f32.mrb[8].mxu0  ;;  %v527_v45 = vpop.f32.mrb[8].mxu1 }
 0x2fe   :  { %v534_v46 = vadd.f32 %v1203_v33, %v486_v44  ;;  %v488_v47 = vpop.f32.mrb[9].mxu0  ;;  %v529_v48 = vpop.f32.mrb[9].mxu1  ;;  %v536_v60 = vadd.f32 %v1205_v58, %v527_v45 }
 0x2ff   :  { %v535_v49 = vadd.f32 %v1204_v43, %v488_v47  ;;  %v490_v50 = vpop.f32.mrb[10].mxu0  ;;  %v531_v51 = vpop.f32.mrb[10].mxu1  ;;  %v537_v57 = vadd.f32 %v1206_v56, %v529_v48  ;;  %v1212_v47 = vld [vmem:[%s2119_s0 + $0x68] sm:$0xff] }
 0x300   :  { %v1207_v52 = vmul.f32 -1.442695, %v534_v46  ;;  %v491_v53 = vpop.f32.mrb[11].mxu0  ;;  %v532_v54 = vpop.f32.mrb[11].mxu1 }
 0x301   :  { %v1208_v55 = vmul.f32 -1.442695, %v535_v49  ;;  %v1209_v59 = vmul.f32 -1.442695, %v537_v57 }
 0x302   :  { %1333 = vpow2.f32 %v1207_v52 }
 0x303   :  { %1335 = vpow2.f32 %v1208_v55 }
 0x304   :  { %1337 = vpow2.f32 %v1209_v59 }
 0x305   :  { %1339 = vtanh.f32 %v536_v60  ;;  %v1214_v60 = vld [vmem:[%s2119_s0 + $0x78] sm:$0xff] }
 0x30c   :  { %v1334_v61 = vpop.eup %1333 }
 0x30d   :  { %v1336_v62 = vpop.eup %1335  ;;  %v541_v63 = vadd.f32 1.0, %v1334_v61 }
 0x30e   :  { %v547_v34 = vadd.f32 1.0, %v1336_v62  ;;  %v1338_v35 = vpop.eup %1337  ;;  %v1213_v62 = vld [vmem:[%s2119_s0 + $0x70] sm:$0xff] }
 0x30f   :  { %1341 = vrcp.f32 %v541_v63  ;;  %v1340_v36 = vpop.eup %1339  ;;  %v554_v41 = vadd.f32 1.0, %v1338_v35 }
 0x310   :  { %1343 = vrcp.f32 %v547_v34 }
 0x311   :  { %1345 = vrcp.f32 %v554_v41 }
 0x319   :  { %v1342_v37 = vpop.eup %1341 }
 0x31a   :  { %v1344_v39 = vpop.eup %1343  ;;  %v558_v40 = vmul.f32 %v1342_v37, %v1340_v36 }
 0x31b   :  { %v557_v42 = vmul.f32 %v1344_v39, %v1773_v38  ;;  %v1346_v43 = vpop.eup %1345  ;;  %v1211_v38 = vld [vmem:[%s2119_s0 + $0x60] sm:$0xff] }
 0x31d   :  { %v1826_v33 = vadd.f32 %v558_v40, %v557_v42 }
 0x31f   :  { %1347 = vtanh.f32 %v1826_v33 }
 0x329   :  { %v1348_v44 = vpop.eup %1347 }
 0x32a   :  { %v561_v45 = vmul.f32 %v1348_v44, %v1346_v43 }
 0x32c   :  { %1210 = vst [vmem:[%s2120_s2 + $0x10] sm:$0xff] %v561_v45  ;;  %v569_v46 = vpack.c.bf16 %v561_v45, %v561_v45 }
 0x32e   :  { %603 = vmatmul.mubr.bf16.vlgmr.msra.gmra.mrb[12].mxu0 %v569_v46  ;;  %644 = vmatmul.mubr.bf16.vlgmr.msra.gmra.mrb[12].mxu1 %v569_v46 }
 0x32f   :  { %689 = vmatpush1.bf16.msra.mxu0 %v1488_v2  ;;  %730 = vmatpush1.bf16.msra.mxu1 %v1516_v7 }
 0x330   :  { %690 = vmatprep.subr.bf16.mxu0 %v1494_v3  ;;  %731 = vmatprep.subr.bf16.mxu1 %v1535_v10 }
 0x331   :  { %720 = vmatprep.mubr.bf16.mxu0 %v1461_v1  ;;  %761 = vmatprep.mubr.bf16.mxu1 %v1461_v1 }
 0x333   :  { %691 = vmatpush1.bf16.msra.mxu0 %v1500_v4  ;;  %732 = vmatpush1.bf16.msra.mxu1 %v1540_v11 }
 0x334   :  { %692 = vmatprep.subr.bf16.mxu0 %v1506_v5  ;;  %733 = vmatprep.subr.bf16.mxu1 %v1557_v14 }
 0x337   :  { %693 = vmatpush1.bf16.msra.mxu0 %v1522_v8  ;;  %734 = vmatpush1.bf16.msra.mxu1 %v1564_v15 }
 0x338   :  { %694 = vmatprep.subr.bf16.mxu0 %v1529_v9  ;;  %735 = vmatprep.subr.bf16.mxu1 %v1570_v16 }
 0x33b   :  { %695 = vmatpush1.bf16.msra.mxu0 %v1547_v12  ;;  %736 = vmatpush1.bf16.msra.mxu1 %v1588_v19 }
 0x33c   :  { %696 = vmatprep.subr.bf16.mxu0 %v1552_v13  ;;  %737 = vmatprep.subr.bf16.mxu1 %v1594_v20 }
 0x33f   :  { %697 = vmatpush1.bf16.msra.mxu0 %v1576_v17  ;;  %738 = vmatpush1.bf16.msra.mxu1 %v1612_v23 }
 0x340   :  { %698 = vmatprep.subr.bf16.mxu0 %v1582_v18  ;;  %739 = vmatprep.subr.bf16.mxu1 %v1618_v24 }
 0x343   :  { %699 = vmatpush1.bf16.msra.mxu0 %v1600_v21  ;;  %740 = vmatpush1.bf16.msra.mxu1 %v1636_v27 }
 0x344   :  { %700 = vmatprep.subr.bf16.mxu0 %v1605_v22  ;;  %741 = vmatprep.subr.bf16.mxu1 %v1642_v28 }
 0x347   :  { %701 = vmatpush1.bf16.msra.mxu0 %v1624_v25  ;;  %742 = vmatpush1.bf16.msra.mxu1 %v1655_v30 }
 0x348   :  { %702 = vmatprep.subr.bf16.mxu0 %v1630_v26  ;;  %743 = vmatprep.subr.bf16.mxu1 %v1661_v31 }
 0x34b   :  { %703 = vmatpush1.bf16.msra.mxu0 %v1648_v29  ;;  %744 = vmatpush1.bf16.msra.mxu1 %v1668_v32 }
 0x34c   :  { %806 = vmatprep.subr.bf16.mxu0 %v1481_v0  ;;  %847 = vmatprep.subr.bf16.mxu1 %v1511_v6 }
 0x401   :  { %v604_v48 = vpop.f32.mrb[12].mxu0  ;;  %v645_v49 = vpop.f32.mrb[12].mxu1 }
 0x402   :  { %v652_v50 = vadd.f32 %v1211_v38, %v604_v48  ;;  %v606_v51 = vpop.f32.mrb[13].mxu0  ;;  %v647_v52 = vpop.f32.mrb[13].mxu1  ;;  %v654_v34 = vadd.f32 %v1213_v62, %v645_v49  ;;  %v1222_v62 = vld [vmem:[%s2119_s0 + $0x98] sm:$0xff] }
 0x403   :  { %v653_v53 = vadd.f32 %v1212_v47, %v606_v51  ;;  %v608_v54 = vpop.f32.mrb[14].mxu0  ;;  %v649_v55 = vpop.f32.mrb[14].mxu1  ;;  %v655_v61 = vadd.f32 %v1214_v60, %v647_v52  ;;  %v1220_v51 = vld [vmem:[%s2119_s0 + $0x88] sm:$0xff] }
 0x404   :  { %v1215_v56 = vmul.f32 -1.442695, %v652_v50  ;;  %v609_v57 = vpop.f32.mrb[15].mxu0  ;;  %v650_v58 = vpop.f32.mrb[15].mxu1 }
 0x405   :  { %v1216_v59 = vmul.f32 -1.442695, %v653_v53  ;;  %v1217_v63 = vmul.f32 -1.442695, %v655_v61 }
 0x406   :  { %1349 = vpow2.f32 %v1215_v56 }
 0x407   :  { %1351 = vpow2.f32 %v1216_v59 }
 0x408   :  { %1353 = vpow2.f32 %v1217_v63 }
 0x409   :  { %1355 = vtanh.f32 %v654_v34  ;;  %v1221_v34 = vld [vmem:[%s2119_s0 + $0x90] sm:$0xff] }
 0x410   :  { %v1350_v35 = vpop.eup %1349 }
 0x411   :  { %v1352_v36 = vpop.eup %1351  ;;  %v659_v37 = vadd.f32 1.0, %v1350_v35 }
 0x412   :  { %v665_v39 = vadd.f32 1.0, %v1352_v36  ;;  %v1354_v40 = vpop.eup %1353 }
 0x413   :  { %1357 = vrcp.f32 %v659_v37  ;;  %v1356_v41 = vpop.eup %1355  ;;  %v672_v45 = vadd.f32 1.0, %v1354_v40 }
 0x414   :  { %1359 = vrcp.f32 %v665_v39 }
 0x415   :  { %1361 = vrcp.f32 %v672_v45 }
 0x41d   :  { %v1358_v42 = vpop.eup %1357 }
 0x41e   :  { %v1360_v43 = vpop.eup %1359  ;;  %v676_v44 = vmul.f32 %v1358_v42, %v1356_v41 }
 0x41f   :  { %v675_v46 = vmul.f32 %v1360_v43, %v1826_v33  ;;  %v1362_v47 = vpop.eup %1361  ;;  %v1219_v33 = vld [vmem:[%s2119_s0 + $0x80] sm:$0xff] }
 0x421   :  { %v1879_v38 = vadd.f32 %v676_v44, %v675_v46 }
 0x423   :  { %1363 = vtanh.f32 %v1879_v38 }
 0x42d   :  { %v1364_v48 = vpop.eup %1363 }
 0x42e   :  { %v679_v49 = vmul.f32 %v1364_v48, %v1362_v47 }
 0x430   :  { %1218 = vst [vmem:[%s2120_s2 + $0x18] sm:$0xff] %v679_v49  ;;  %v687_v50 = vpack.c.bf16 %v679_v49, %v679_v49 }
 0x432   :  { %721 = vmatmul.mubr.bf16.vlgmr.msra.gmra.mrb[16].mxu0 %v687_v50  ;;  %762 = vmatmul.mubr.bf16.vlgmr.msra.gmra.mrb[16].mxu1 %v687_v50 }
 0x433   :  { %807 = vmatpush1.bf16.msra.mxu0 %v1488_v2  ;;  %848 = vmatpush1.bf16.msra.mxu1 %v1516_v7 }
 0x434   :  { %808 = vmatprep.subr.bf16.mxu0 %v1494_v3  ;;  %849 = vmatprep.subr.bf16.mxu1 %v1535_v10 }
 0x435   :  { %838 = vmatprep.mubr.bf16.mxu0 %v1461_v1  ;;  %879 = vmatprep.mubr.bf16.mxu1 %v1461_v1 }
 0x437   :  { %809 = vmatpush1.bf16.msra.mxu0 %v1500_v4  ;;  %850 = vmatpush1.bf16.msra.mxu1 %v1540_v11 }
 0x438   :  { %810 = vmatprep.subr.bf16.mxu0 %v1506_v5  ;;  %851 = vmatprep.subr.bf16.mxu1 %v1557_v14 }
 0x43b   :  { %811 = vmatpush1.bf16.msra.mxu0 %v1522_v8  ;;  %852 = vmatpush1.bf16.msra.mxu1 %v1564_v15 }
 0x43c   :  { %812 = vmatprep.subr.bf16.mxu0 %v1529_v9  ;;  %853 = vmatprep.subr.bf16.mxu1 %v1570_v16 }
 0x43f   :  { %813 = vmatpush1.bf16.msra.mxu0 %v1547_v12  ;;  %854 = vmatpush1.bf16.msra.mxu1 %v1588_v19 }
 0x440   :  { %814 = vmatprep.subr.bf16.mxu0 %v1552_v13  ;;  %855 = vmatprep.subr.bf16.mxu1 %v1594_v20 }
 0x443   :  { %815 = vmatpush1.bf16.msra.mxu0 %v1576_v17  ;;  %856 = vmatpush1.bf16.msra.mxu1 %v1612_v23 }
 0x444   :  { %816 = vmatprep.subr.bf16.mxu0 %v1582_v18  ;;  %857 = vmatprep.subr.bf16.mxu1 %v1618_v24 }
 0x447   :  { %817 = vmatpush1.bf16.msra.mxu0 %v1600_v21  ;;  %858 = vmatpush1.bf16.msra.mxu1 %v1636_v27 }
 0x448   :  { %818 = vmatprep.subr.bf16.mxu0 %v1605_v22  ;;  %859 = vmatprep.subr.bf16.mxu1 %v1642_v28 }
 0x44b   :  { %819 = vmatpush1.bf16.msra.mxu0 %v1624_v25  ;;  %860 = vmatpush1.bf16.msra.mxu1 %v1655_v30 }
 0x44c   :  { %820 = vmatprep.subr.bf16.mxu0 %v1630_v26  ;;  %861 = vmatprep.subr.bf16.mxu1 %v1661_v31 }
 0x44f   :  { %821 = vmatpush1.bf16.msra.mxu0 %v1648_v29  ;;  %862 = vmatpush1.bf16.msra.mxu1 %v1668_v32 }
 0x450   :  { %924 = vmatprep.subr.bf16.mxu0 %v1481_v0  ;;  %965 = vmatprep.subr.bf16.mxu1 %v1511_v6 }
 0x505   :  { %v722_v52 = vpop.f32.mrb[16].mxu0  ;;  %v763_v53 = vpop.f32.mrb[16].mxu1 }
 0x506   :  { %v770_v54 = vadd.f32 %v1219_v33, %v722_v52  ;;  %v724_v55 = vpop.f32.mrb[17].mxu0  ;;  %v765_v56 = vpop.f32.mrb[17].mxu1  ;;  %v772_v36 = vadd.f32 %v1221_v34, %v763_v53  ;;  %v1438_v34 = vld [vmem:[%s2118_s1 + $0x4c] ss:$16 sps:$4 sm:$0xff]  }
 0x507   :  { %v771_v57 = vadd.f32 %v1220_v51, %v724_v55  ;;  %v726_v58 = vpop.f32.mrb[18].mxu0  ;;  %v767_v59 = vpop.f32.mrb[18].mxu1  ;;  %v773_v63 = vadd.f32 %v1222_v62, %v765_v56  ;;  %v1436_v62 = vld [vmem:[%s2118_s1 + $0x28] ss:$16 sps:$4 sm:$0xff]  }
 0x508   :  { %v1223_v60 = vmul.f32 -1.442695, %v770_v54  ;;  %v727_v0 = vpop.f32.mrb[19].mxu0  ;;  %v768_v61 = vpop.f32.mrb[19].mxu1  ;;  %v1431_v59 = vld [vmem:[%s2118_s1] ss:$16 sps:$4 sm:$0xff]  }
 0x509   :  { %v1224_v6 = vmul.f32 -1.442695, %v771_v57  ;;  %v1225_v35 = vmul.f32 -1.442695, %v773_v63  ;;  %v1433_v0 = vld [vmem:[%s2118_s1 + $0x24] ss:$16 sps:$4 sm:$0xff]  }
 0x50a   :  { %1365 = vpow2.f32 %v1223_v60  ;;  %v1432_v60 = vld [vmem:[%s2118_s1 + $0x8] ss:$16 sps:$4 sm:$0xff]   ;;  %v1434_v61 = vld [vmem:[%s2118_s1 + $0x2c] ss:$16 sps:$4 sm:$0xff]   ;;  %v1437_v63 = vld [vmem:[%s2118_s1 + $0x44] ss:$16 sps:$4 sm:$0xff]  }
 0x50b   :  { %1367 = vpow2.f32 %v1224_v6  ;;  %v1435_v6 = vld [vmem:[%s2118_s1 + $0x20] ss:$16 sps:$4 sm:$0xff]  }
 0x50c   :  { %1369 = vpow2.f32 %v1225_v35  ;;  %v1440_v35 = vld [vmem:[%s2118_s1 + $0x48] ss:$16 sps:$4 sm:$0xff]  }
 0x50d   :  { %1371 = vtanh.f32 %v772_v36  ;;  %v1441_v36 = vld [vmem:[%s2118_s1 + $0x64] ss:$16 sps:$4 sm:$0xff]  }
 0x514   :  { %v1366_v37 = vpop.eup %1365 }
 0x515   :  { %v1368_v39 = vpop.eup %1367  ;;  %v777_v40 = vadd.f32 1.0, %v1366_v37  ;;  %v1442_v37 = vld [vmem:[%s2118_s1 + $0x6c] ss:$16 sps:$4 sm:$0xff]  }
 0x516   :  { %v783_v41 = vadd.f32 1.0, %v1368_v39  ;;  %v1370_v42 = vpop.eup %1369  ;;  %v1443_v39 = vld [vmem:[%s2118_s1 + $0x60] ss:$16 sps:$4 sm:$0xff]  }
 0x517   :  { %1373 = vrcp.f32 %v777_v40  ;;  %v1372_v43 = vpop.eup %1371  ;;  %v790_v47 = vadd.f32 1.0, %v1370_v42  ;;  %v1444_v40 = vld [vmem:[%s2118_s1 + $0x68] ss:$16 sps:$4 sm:$0xff]   ;;  %v1446_v42 = vld [vmem:[%s2118_s1 + $0x8c] ss:$16 sps:$4 sm:$0xff]  }
 0x518   :  { %1375 = vrcp.f32 %v783_v41  ;;  %v1445_v41 = vld [vmem:[%s2118_s1 + $0x84] ss:$16 sps:$4 sm:$0xff]  }
 0x519   :  { %1377 = vrcp.f32 %v790_v47  ;;  %v1451_v47 = vld [vmem:[%s2118_s1 + $0xa0] ss:$16 sps:$4 sm:$0xff]  }
 0x521   :  { %v1374_v44 = vpop.eup %1373 }
 0x522   :  { %v1376_v45 = vpop.eup %1375  ;;  %v794_v46 = vmul.f32 %v1374_v44, %v1372_v43  ;;  %v1447_v43 = vld [vmem:[%s2118_s1 + $0x80] ss:$16 sps:$4 sm:$0xff]   ;;  %v1448_v44 = vld [vmem:[%s2118_s1 + $0x88] ss:$16 sps:$4 sm:$0xff]  }
 0x523   :  { %v793_v48 = vmul.f32 %v1376_v45, %v1879_v38  ;;  %v1378_v50 = vpop.eup %1377  ;;  %v1449_v45 = vld [vmem:[%s2118_s1 + $0xa4] ss:$16 sps:$4 sm:$0xff]  }
 0x525   :  { %v1932_v49 = vadd.f32 %v794_v46, %v793_v48  ;;  %v1450_v46 = vld [vmem:[%s2118_s1 + $0xac] ss:$16 sps:$4 sm:$0xff]   ;;  %v1452_v48 = vld [vmem:[%s2118_s1 + $0xa8] ss:$16 sps:$4 sm:$0xff]  }
 0x527   :  { %1379 = vtanh.f32 %v1932_v49 }
 0x531   :  { %v1380_v33 = vpop.eup %1379 }
 0x532   :  { %v797_v51 = vmul.f32 %v1380_v33, %v1378_v50  ;;  %v1454_v50 = vld [vmem:[%s2118_s1 + $0xcc] ss:$16 sps:$4 sm:$0xff]   ;;  %v1455_v33 = vld [vmem:[%s2118_s1 + $0xc0] ss:$16 sps:$4 sm:$0xff]  }
 0x534   :  { %1226 = vst [vmem:[%s2120_s2 + $0x20] sm:$0xff] %v797_v51  ;;  %v805_v52 = vpack.c.bf16 %v797_v51, %v797_v51  ;;  %v1456_v51 = vld [vmem:[%s2118_s1 + $0xc8] ss:$16 sps:$4 sm:$0xff]  }
 0x536   :  { %839 = vmatmul.mubr.bf16.vlgmr.msra.gmra.mrb[20].mxu0 %v805_v52  ;;  %880 = vmatmul.mubr.bf16.vlgmr.msra.gmra.mrb[20].mxu1 %v805_v52  ;;  %v1457_v52 = vld [vmem:[%s2118_s1 + $0xe4] ss:$16 sps:$4 sm:$0xff]  }
 0x537   :  { %925 = vmatpush1.bf16.msra.mxu0 %v1488_v2  ;;  %966 = vmatpush1.bf16.msra.mxu1 %v1516_v7  ;;  %v1429_v2 = vld [vmem:[%s2118_s1 + $0x4] ss:$16 sps:$4 sm:$0xff]  }
 0x538   :  { %926 = vmatprep.subr.bf16.mxu0 %v1494_v3  ;;  %967 = vmatprep.subr.bf16.mxu1 %v1535_v10  ;;  %v1430_v3 = vld [vmem:[%s2118_s1 + $0xc] ss:$16 sps:$4 sm:$0xff]  }
 0x539   :  { %956 = vmatprep.mubr.bf16.mxu0 %v1461_v1  ;;  %997 = vmatprep.mubr.bf16.mxu1 %v1461_v1 }
 0x53b   :  { %927 = vmatpush1.bf16.msra.mxu0 %v1500_v4  ;;  %968 = vmatpush1.bf16.msra.mxu1 %v1540_v11  ;;  %v1227_v4 = vld [vmem:[%s2119_s0 + $0xa0] sm:$0xff] }
 0x53c   :  { %928 = vmatprep.subr.bf16.mxu0 %v1506_v5  ;;  %969 = vmatprep.subr.bf16.mxu1 %v1557_v14  ;;  %v1228_v5 = vld [vmem:[%s2119_s0 + $0xa8] sm:$0xff] }
 0x53f   :  { %929 = vmatpush1.bf16.msra.mxu0 %v1522_v8  ;;  %970 = vmatpush1.bf16.msra.mxu1 %v1564_v15 }
 0x540   :  { %930 = vmatprep.subr.bf16.mxu0 %v1529_v9  ;;  %971 = vmatprep.subr.bf16.mxu1 %v1570_v16 }
 0x543   :  { %931 = vmatpush1.bf16.msra.mxu0 %v1547_v12  ;;  %972 = vmatpush1.bf16.msra.mxu1 %v1588_v19  ;;  %v1230_v19 = vld [vmem:[%s2119_s0 + $0xb8] sm:$0xff] }
 0x544   :  { %932 = vmatprep.subr.bf16.mxu0 %v1552_v13  ;;  %973 = vmatprep.subr.bf16.mxu1 %v1594_v20 }
 0x547   :  { %933 = vmatpush1.bf16.msra.mxu0 %v1576_v17  ;;  %974 = vmatpush1.bf16.msra.mxu1 %v1612_v23 }
 0x548   :  { %934 = vmatprep.subr.bf16.mxu0 %v1582_v18  ;;  %975 = vmatprep.subr.bf16.mxu1 %v1618_v24 }
 0x54b   :  { %935 = vmatpush1.bf16.msra.mxu0 %v1600_v21  ;;  %976 = vmatpush1.bf16.msra.mxu1 %v1636_v27  ;;  %v1229_v21 = vld [vmem:[%s2119_s0 + $0xb0] sm:$0xff] }
 0x54c   :  { %936 = vmatprep.subr.bf16.mxu0 %v1605_v22  ;;  %977 = vmatprep.subr.bf16.mxu1 %v1642_v28 }
 0x54f   :  { %937 = vmatpush1.bf16.msra.mxu0 %v1624_v25  ;;  %978 = vmatpush1.bf16.msra.mxu1 %v1655_v30 }
 0x550   :  { %938 = vmatprep.subr.bf16.mxu0 %v1630_v26  ;;  %979 = vmatprep.subr.bf16.mxu1 %v1661_v31 }
 0x553   :  { %939 = vmatpush1.bf16.msra.mxu0 %v1648_v29  ;;  %980 = vmatpush1.bf16.msra.mxu1 %v1668_v32 }
 0x554   :  { %1042 = vmatprep.subr.bf16.mxu0 %v1429_v2  ;;  %1083 = vmatprep.subr.bf16.mxu1 %v1430_v3  ;;  %v1458_v2 = vld [vmem:[%s2118_s1 + $0xec] ss:$16 sps:$4 sm:$0xff]   ;;  %v1459_v3 = vld [vmem:[%s2118_s1 + $0xe0] ss:$16 sps:$4 sm:$0xff]  }
 0x609   :  { %v840_v7 = vpop.f32.mrb[20].mxu0  ;;  %v881_v8 = vpop.f32.mrb[20].mxu1 }
 0x60a   :  { %v888_v9 = vadd.f32 %v1227_v4, %v840_v7  ;;  %v842_v10 = vpop.f32.mrb[21].mxu0  ;;  %v883_v11 = vpop.f32.mrb[21].mxu1  ;;  %v890_v23 = vadd.f32 %v1229_v21, %v881_v8  ;;  %v1460_v4 = vld [vmem:[%s2118_s1 + $0xe8] ss:$16 sps:$4 sm:$0xff]  }
 0x60b   :  { %v889_v12 = vadd.f32 %v1228_v5, %v842_v10  ;;  %v844_v13 = vpop.f32.mrb[22].mxu0  ;;  %v885_v14 = vpop.f32.mrb[22].mxu1  ;;  %v891_v20 = vadd.f32 %v1230_v19, %v883_v11  ;;  %v1235_v5 = vld [vmem:[%s2119_s0 + $0xc0] sm:$0xff]  ;;  %v1236_v7 = vld [vmem:[%s2119_s0 + $0xc8] sm:$0xff] }
 0x60c   :  { %v1231_v15 = vmul.f32 -1.442695, %v888_v9  ;;  %v845_v16 = vpop.f32.mrb[23].mxu0  ;;  %v886_v17 = vpop.f32.mrb[23].mxu1 }
 0x60d   :  { %v1232_v18 = vmul.f32 -1.442695, %v889_v12  ;;  %v1233_v22 = vmul.f32 -1.442695, %v891_v20  ;;  %v1238_v20 = vld [vmem:[%s2119_s0 + $0xd8] sm:$0xff] }
 0x60e   :  { %1381 = vpow2.f32 %v1231_v15 }
 0x60f   :  { %1383 = vpow2.f32 %v1232_v18 }
 0x610   :  { %1385 = vpow2.f32 %v1233_v22  ;;  %v1237_v22 = vld [vmem:[%s2119_s0 + $0xd0] sm:$0xff] }
 0x611   :  { %1387 = vtanh.f32 %v890_v23 }
 0x618   :  { %v1382_v24 = vpop.eup %1381 }
 0x619   :  { %v1384_v25 = vpop.eup %1383  ;;  %v895_v26 = vadd.f32 1.0, %v1382_v24 }
 0x61a   :  { %v901_v27 = vadd.f32 1.0, %v1384_v25  ;;  %v1386_v28 = vpop.eup %1385 }
 0x61b   :  { %1389 = vrcp.f32 %v895_v26  ;;  %v1388_v29 = vpop.eup %1387  ;;  %v908_v38 = vadd.f32 1.0, %v1386_v28 }
 0x61c   :  { %1391 = vrcp.f32 %v901_v27 }
 0x61d   :  { %1393 = vrcp.f32 %v908_v38 }
 0x625   :  { %v1390_v30 = vpop.eup %1389 }
 0x626   :  { %v1392_v31 = vpop.eup %1391  ;;  %v912_v32 = vmul.f32 %v1390_v30, %v1388_v29 }
 0x627   :  { %v911_v53 = vmul.f32 %v1392_v31, %v1932_v49  ;;  %v1394_v55 = vpop.eup %1393  ;;  %v1453_v49 = vld [vmem:[%s2118_s1 + $0xc4] ss:$16 sps:$4 sm:$0xff]  }
 0x629   :  { %v1989_v54 = vadd.f32 %v912_v32, %v911_v53 }
 0x62b   :  { %1395 = vtanh.f32 %v1989_v54 }
 0x635   :  { %v1396_v56 = vpop.eup %1395 }
 0x636   :  { %v915_v57 = vmul.f32 %v1396_v56, %v1394_v55 }
 0x638   :  { %1234 = vst [vmem:[%s2120_s2 + $0x28] sm:$0xff] %v915_v57  ;;  %v923_v58 = vpack.c.bf16 %v915_v57, %v915_v57 }
 0x63a   :  { %957 = vmatmul.mubr.bf16.vlgmr.msra.gmra.mrb[24].mxu0 %v923_v58  ;;  %998 = vmatmul.mubr.bf16.vlgmr.msra.gmra.mrb[24].mxu1 %v923_v58 }
 0x63b   :  { %1043 = vmatpush1.bf16.msra.mxu0 %v1431_v59  ;;  %1084 = vmatpush1.bf16.msra.mxu1 %v1432_v60 }
 0x63c   :  { %1044 = vmatprep.subr.bf16.mxu0 %v1433_v0  ;;  %1085 = vmatprep.subr.bf16.mxu1 %v1434_v61  ;;  %v1243_v0 = vld [vmem:[%s2119_s0 + $0xe0] sm:$0xff] }
 0x63d   :  { %1074 = vmatprep.mubr.bf16.mxu0 %v1461_v1  ;;  %1115 = vmatprep.mubr.bf16.mxu1 %v1461_v1  ;;  %v1439_v1 = vld [vmem:[%s2118_s1 + $0x40] ss:$16 sps:$4 sm:$0xff]  }
 0x63f   :  { %1045 = vmatpush1.bf16.msra.mxu0 %v1435_v6  ;;  %1086 = vmatpush1.bf16.msra.mxu1 %v1436_v62 }
 0x640   :  { %1046 = vmatprep.subr.bf16.mxu0 %v1437_v63  ;;  %1087 = vmatprep.subr.bf16.mxu1 %v1438_v34 }
 0x643   :  { %1047 = vmatpush1.bf16.msra.mxu0 %v1439_v1  ;;  %1088 = vmatpush1.bf16.msra.mxu1 %v1440_v35 }
 0x644   :  { %1048 = vmatprep.subr.bf16.mxu0 %v1441_v36  ;;  %1089 = vmatprep.subr.bf16.mxu1 %v1442_v37 }
 0x647   :  { %1049 = vmatpush1.bf16.msra.mxu0 %v1443_v39  ;;  %1090 = vmatpush1.bf16.msra.mxu1 %v1444_v40 }
 0x648   :  { %1050 = vmatprep.subr.bf16.mxu0 %v1445_v41  ;;  %1091 = vmatprep.subr.bf16.mxu1 %v1446_v42  ;;  %v1246_v42 = vld [vmem:[%s2119_s0 + $0xf8] sm:$0xff] }
 0x64b   :  { %1051 = vmatpush1.bf16.msra.mxu0 %v1447_v43  ;;  %1092 = vmatpush1.bf16.msra.mxu1 %v1448_v44  ;;  %v1245_v44 = vld [vmem:[%s2119_s0 + $0xf0] sm:$0xff] }
 0x64c   :  { %1052 = vmatprep.subr.bf16.mxu0 %v1449_v45  ;;  %1093 = vmatprep.subr.bf16.mxu1 %v1450_v46 }
 0x64f   :  { %1053 = vmatpush1.bf16.msra.mxu0 %v1451_v47  ;;  %1094 = vmatpush1.bf16.msra.mxu1 %v1452_v48 }
 0x650   :  { %1054 = vmatprep.subr.bf16.mxu0 %v1453_v49  ;;  %1095 = vmatprep.subr.bf16.mxu1 %v1454_v50 }
 0x653   :  { %1055 = vmatpush1.bf16.msra.mxu0 %v1455_v33  ;;  %1096 = vmatpush1.bf16.msra.mxu1 %v1456_v51 }
 0x654   :  { %1056 = vmatprep.subr.bf16.mxu0 %v1457_v52  ;;  %1097 = vmatprep.subr.bf16.mxu1 %v1458_v2 }
 0x657   :  { %1057 = vmatpush1.bf16.msra.mxu0 %v1459_v3  ;;  %1098 = vmatpush1.bf16.msra.mxu1 %v1460_v4 }
 0x70d   :  { %v958_v8 = vpop.f32.mrb[24].mxu0  ;;  %v999_v9 = vpop.f32.mrb[24].mxu1 }
 0x70e   :  { %v1006_v10 = vadd.f32 %v1235_v5, %v958_v8  ;;  %v960_v11 = vpop.f32.mrb[25].mxu0  ;;  %v1001_v12 = vpop.f32.mrb[25].mxu1  ;;  %v1008_v24 = vadd.f32 %v1237_v22, %v999_v9 }
 0x70f   :  { %v1007_v13 = vadd.f32 %v1236_v7, %v960_v11  ;;  %v962_v14 = vpop.f32.mrb[26].mxu0  ;;  %v1003_v15 = vpop.f32.mrb[26].mxu1  ;;  %v1009_v21 = vadd.f32 %v1238_v20, %v1001_v12 }
 0x710   :  { %v1239_v16 = vmul.f32 -1.442695, %v1006_v10  ;;  %v963_v17 = vpop.f32.mrb[27].mxu0  ;;  %v1004_v18 = vpop.f32.mrb[27].mxu1 }
 0x711   :  { %v1240_v19 = vmul.f32 -1.442695, %v1007_v13  ;;  %v1241_v23 = vmul.f32 -1.442695, %v1009_v21 }
 0x712   :  { %1397 = vpow2.f32 %v1239_v16 }
 0x713   :  { %1399 = vpow2.f32 %v1240_v19 }
 0x714   :  { %1401 = vpow2.f32 %v1241_v23 }
 0x715   :  { %1403 = vtanh.f32 %v1008_v24 }
 0x71c   :  { %v1398_v25 = vpop.eup %1397 }
 0x71d   :  { %v1400_v26 = vpop.eup %1399  ;;  %v1013_v27 = vadd.f32 1.0, %v1398_v25 }
 0x71e   :  { %v1019_v28 = vadd.f32 1.0, %v1400_v26  ;;  %v1402_v29 = vpop.eup %1401 }
 0x71f   :  { %1405 = vrcp.f32 %v1013_v27  ;;  %v1404_v30 = vpop.eup %1403  ;;  %v1026_v53 = vadd.f32 1.0, %v1402_v29 }
 0x720   :  { %1407 = vrcp.f32 %v1019_v28 }
 0x721   :  { %1409 = vrcp.f32 %v1026_v53 }
 0x729   :  { %v1406_v31 = vpop.eup %1405 }
 0x72a   :  { %v1408_v32 = vpop.eup %1407  ;;  %v1030_v38 = vmul.f32 %v1406_v31, %v1404_v30 }
 0x72b   :  { %v1029_v55 = vmul.f32 %v1408_v32, %v1989_v54  ;;  %v1410_v57 = vpop.eup %1409  ;;  %v1244_v54 = vld [vmem:[%s2119_s0 + $0xe8] sm:$0xff] }
 0x72d   :  { %v1031_v56 = vadd.f32 %v1030_v38, %v1029_v55 }
 0x72f   :  { %1411 = vtanh.f32 %v1031_v56 }
 0x739   :  { %v1412_v58 = vpop.eup %1411 }
 0x73a   :  { %v1033_v59 = vmul.f32 %v1412_v58, %v1410_v57 }
 0x73c   :  { %1242 = vst [vmem:[%s2120_s2 + $0x30] sm:$0xff] %v1033_v59  ;;  %v1041_v60 = vpack.c.bf16 %v1033_v59, %v1033_v59 }
 0x73e   :  { %1075 = vmatmul.mubr.bf16.vlgmr.msra.gmra.mrb[28].mxu0 %v1041_v60  ;;  %1116 = vmatmul.mubr.bf16.vlgmr.msra.gmra.mrb[28].mxu1 %v1041_v60 }
 0x811   :  { %v1076_v61 = vpop.f32.mrb[28].mxu0  ;;  %v1117_v6 = vpop.f32.mrb[28].mxu1 }
 0x812   :  { %v1124_v62 = vadd.f32 %v1243_v0, %v1076_v61  ;;  %v1078_v63 = vpop.f32.mrb[29].mxu0  ;;  %v1119_v34 = vpop.f32.mrb[29].mxu1  ;;  %v1126_v46 = vadd.f32 %v1245_v44, %v1117_v6 }
 0x813   :  { %v1125_v1 = vadd.f32 %v1244_v54, %v1078_v63  ;;  %v1080_v35 = vpop.f32.mrb[30].mxu0  ;;  %v1121_v36 = vpop.f32.mrb[30].mxu1  ;;  %v1127_v43 = vadd.f32 %v1246_v42, %v1119_v34 }
 0x814   :  { %v1247_v37 = vmul.f32 -1.442695, %v1124_v62  ;;  %v1081_v39 = vpop.f32.mrb[31].mxu0  ;;  %v1122_v40 = vpop.f32.mrb[31].mxu1 }
 0x815   :  { %v1248_v41 = vmul.f32 -1.442695, %v1125_v1  ;;  %v1249_v45 = vmul.f32 -1.442695, %v1127_v43 }
 0x816   :  { %1413 = vpow2.f32 %v1247_v37 }
 0x817   :  { %1415 = vpow2.f32 %v1248_v41 }
 0x818   :  { %1417 = vpow2.f32 %v1249_v45 }
 0x819   :  { %1419 = vtanh.f32 %v1126_v46 }
 0x820   :  { %v1414_v47 = vpop.eup %1413 }
 0x821   :  { %v1416_v48 = vpop.eup %1415  ;;  %v1131_v49 = vadd.f32 1.0, %v1414_v47 }
 0x822   :  { %v1137_v50 = vadd.f32 1.0, %v1416_v48  ;;  %v1418_v33 = vpop.eup %1417 }
 0x823   :  { %1421 = vrcp.f32 %v1131_v49  ;;  %v1420_v51 = vpop.eup %1419  ;;  %v1144_v4 = vadd.f32 1.0, %v1418_v33 }
 0x824   :  { %1423 = vrcp.f32 %v1137_v50 }
 0x825   :  { %1425 = vrcp.f32 %v1144_v4 }
 0x82d   :  { %v1422_v52 = vpop.eup %1421 }
 0x82e   :  { %v1424_v2 = vpop.eup %1423  ;;  %v1148_v3 = vmul.f32 %v1422_v52, %v1420_v51 }
 0x82f   :  { %v1147_v5 = vmul.f32 %v1424_v2, %v1031_v56  ;;  %v1426_v8 = vpop.eup %1425 }
 0x831   :  { %v1149_v7 = vadd.f32 %v1148_v3, %v1147_v5 }
 0x833   :  { %1427 = vtanh.f32 %v1149_v7 }
 0x83d   :  { %v1428_v9 = vpop.eup %1427 }
 0x83e   :  { %v1151_v10 = vmul.f32 %v1428_v9, %v1426_v8 }
 0x840   :  { %1250 = vst [vmem:[%s2120_s2 + $0x38] sm:$0xff] %v1151_v10 }

// kernel: stage1_forward.19
= control target key start
LH: loop header
LB: loop body
LE: loop exit
PB: predicated region body
PF: predicated region fallthrough
CT: control target
= control target key end

     0   :  { %s946_s0 = inlined_call_operand.vmem [shape: s32[8], index: 0, kind: input, shape index: {}]   ;;  %s947_s1 = inlined_call_operand.vmem [shape: f32[8,8,128], index: 1, kind: input, shape index: {}]   ;;  %s948_s2 = inlined_call_operand.vmem [shape: f32[8,12,128], index: 2, kind: input, shape index: {}]   ;;  %s949_s3 = inlined_call_operand.vmem [shape: f32[8,12,128], index: 3, kind: input, shape index: {}]   ;;  %s950_s4 = inlined_call_operand.vmem [shape: f32[1,128], index: 4, kind: input, shape index: {}]   ;;  %s951_s5 = inlined_call_operand.vmem [shape: f32[8,8,128], index: 5, kind: output, shape index: {}]  }
   0x1   :  { %s10_s20 = sshll.u32 %s946_s0, 4  ;;  %s11_s20 = int_to_ptr.vmem [resolvable:$true] %s10_s20 }
   0x2   :  { %s756_s21 = scalar_lea.vmem %s11_s20, 16  ;;  %p761_p1 = scmp.lt.s32.totalorder %s11_s20, %s11_s20 }
   0x3   :  { %p757_p0 = scmp.ne.s32.totalorder %s11_s20, %s756_s21  ;;  %p762_p2 = scmp.lt.s32.totalorder %s756_s21, %s756_s21 }
   0x5   :  { %p763_p3 = por %p762_p2, %p761_p1 }
   0x7   :  { %p764_p4 = pnand %p763_p3, %p757_p0 }
   0x9   :  { %767 = shalt.err (!%p764_p4)  }
   0xa   :  { %s778_s22 = smov [#allocation3]  }
   0xb   :  { %13 = dma.vmem_to_smem %s11_s20, 16, %s778_s22, [#allocation2] }
   0xc   :  { %772 = dma.done.wait [#allocation2], 16 }
   0xd   :  { %773 = vsyncadd [#allocation2], 4294967280 }
   0xe   :  { %15 = sfence }
   0xf   :  { %s815_s23 = smov 0  }
  0x10 LB: > { %s821_s0 = sadd.s32 4294967295, %s776_s23   ;;  %p686_p5 = scmp.ge.s32.totalorder %s776_s23, 1  ;;  %s776_s23 = sphi %s815_s23, %s21_s23  }
  0x11   : > { %p188_p6 = scmp.lt.s32.totalorder %s776_s23, 9 }
  0x13   : > { %p189_p7 = pnand %p686_p5, %p188_p6 }
  0x14   : > { %p222_p8 = scmp.lt.s32.totalorder (!%p189_p7), %s821_s0, 7  ;;  %v253_v0 = vlaneseq (!%p189_p7)  ;;  %v779_v1 = vmov (!%p189_p7), 1966171168   ;;  %v867_v39 = vld [vmem:[%s950_s4] ss:$0 sm:$0xff] (!%p189_p7)  ;;  %vm394_vm0 = vcmask (!%p189_p7), 1043456  }
  0x15   : > { %192 = sbr.rel (%p189_p7) target bundleno = 762 (0x2fa), region = 36  ;;  %v251_v2 = vunpack.c.l.s4 (!%p189_p7), %v779_v1  ;;  %vm462_vm1 = vcmask (!%p189_p7), 130112   ;;  %vm527_vm2 = vcmask (!%p189_p7), 1041409   ;;  %vm529_vm3 = vcmask (!%p189_p7), 1042434   ;;  %s241_s10 = sld [smem:[#allocation3 + %s821_s0]] (!%p189_p7) }
  0x16   : > { %v829_v3 = vshrl.u32 (!%p189_p7), %v253_v0, 7  ;;  %v831_v4 = vand.u32 (!%p189_p7), 127, %v253_v0  ;;  %vm531_vm4 = vcmask (!%p189_p7), 1043459   ;;  %vm533_vm5 = vcmask (!%p189_p7), 1044484  }
  0x17   : > { %v252_v5 = vunpack.c.0.s8 (!%p189_p7), %v251_v2  ;;  %vm535_vm6 = vcmask (!%p189_p7), 1045509   ;;  %vm537_vm7 = vcmask (!%p189_p7), 1046534   ;;  %vm539_vm8 = vcmask (!%p189_p7), 1047559  }
  0x18   : > { %v837_v6 = vsub.s32 (!%p189_p7), %v831_v4, %v829_v3  ;;  %v300_v10 = vsub.s32 (!%p189_p7), 0, %v829_v3  ;;  %vm543_vm10 = vcmask (!%p189_p7), 97280   ;;  %vm560_vm11 = vcmask (!%p189_p7), 1045504  }
  0x19   : > { %v255_v7 = vsub.s32 (!%p189_p7), %v252_v5, %v829_v3  ;;  %vm781_vm12 = vmmov (!%p189_p7), 0  }
  0x1c   : > { %s827_s24 = scalar_select %p222_p8, %s821_s0, 7 }
  0x1e   : > { %s687_s25 = sshll.u32 %s827_s24, 3  ;;  %s697_s26 = sshll.u32 %s827_s24, 4 }
  0x1f   : > { %s225_s29 = scalar_lea.vmem %s947_s1, %s687_s25  ;;  %s230_s7 = scalar_lea.vmem %s948_s2, %s697_s26 }
  0x20   : > { %v242_v8 = vld [vmem:[%s225_s29] sm:$0xff]  ;;  %v853_v16 = vld [vmem:[%s230_s7 + $0x8] sm:$0xf]  ;;  %s235_s13 = scalar_lea.vmem %s949_s3, %s697_s26  ;;  %s239_s16 = scalar_lea.vmem %s951_s5, %s687_s25 }
  0x21   : > { %v256_v9 = vrot.slane %v242_v8, %v255_v7  ;;  %v249_v11 = vcombine.high %v242_v8, %v242_v8  ;;  %v851_v15 = vld [vmem:[%s230_s7] sm:$0xff] }
  0x23   : > { %v272_v12 = vrot.slane %v256_v9, %v255_v7  ;;  %v264_v13 = vcombine.high %v256_v9, %v256_v9  ;;  %v263_v14 = vrot.slane %v249_v11, %v255_v7 }
  0x25   : > { %v301_v17 = vrot.slane %v272_v12, %v300_v10  ;;  %v286_v18 = vrot.slane %v264_v13, %v255_v7  ;;  %v294_v19 = vcombine.high %v272_v12, %v272_v12  ;;  %v279_v20 = vrot.slane %v263_v14, %v255_v7 }
  0x26   : > { %v265_v27 = vcombine.high %v263_v14, %v263_v14 }
  0x27   : > { %v338_v21 = vadd.f32 %v301_v17, %v851_v15  ;;  %v305_v22 = vrot.slane %v286_v18, %v300_v10  ;;  %v339_v23 = vadd.f32 %v301_v17, %v853_v16  ;;  %v296_v24 = vcombine.high %v286_v18, %v286_v18 }
  0x28   : > { %v309_v25 = vrot.slane %v294_v19, %v300_v10  ;;  %v317_v26 = vrot.slane %v279_v20, %v300_v10  ;;  %v293_v34 = vrot.slane %v265_v27, %v255_v7  ;;  %v295_v36 = vcombine.high %v279_v20, %v279_v20 }
  0x29   : > { %720 = vtanh.f32 %v338_v21  ;;  %v340_v28 = vadd.f32 %v305_v22, %v851_v15  ;;  %v341_v29 = vadd.f32 %v305_v22, %v853_v16  ;;  %v313_v33 = vrot.slane %v296_v24, %v300_v10 }
  0x2a   : > { %722 = vtanh.f32 %v339_v23  ;;  %v342_v30 = vadd.f32 %v309_v25, %v851_v15  ;;  %v343_v31 = vadd.f32 %v309_v25, %v853_v16  ;;  %v347_v32 = vadd.f32 %v317_v26, %v853_v16 }
  0x2b   : > { %724 = vtanh.f32 %v340_v28  ;;  %v346_v35 = vadd.f32 %v317_v26, %v851_v15  ;;  %v345_v37 = vadd.f32 %v313_v33, %v853_v16  ;;  %v321_v38 = vrot.slane %v293_v34, %v300_v10 }
  0x2c   : > { %726 = vtanh.f32 %v341_v29  ;;  %v344_v40 = vadd.f32 %v313_v33, %v851_v15  ;;  %v325_v42 = vrot.slane %v295_v36, %v300_v10  ;;  %v297_v46 = vcombine.high %v293_v34, %v293_v34 }
  0x2d   : > { %728 = vtanh.f32 %v342_v30  ;;  %v349_v45 = vadd.f32 %v321_v38, %v853_v16  ;;  %v348_v49 = vadd.f32 %v321_v38, %v851_v15 }
  0x2e   : > { %730 = vtanh.f32 %v343_v31  ;;  %v351_v56 = vadd.f32 %v325_v42, %v853_v16  ;;  %v329_v57 = vrot.slane %v297_v46, %v300_v10  ;;  %v350_v60 = vadd.f32 %v325_v42, %v851_v15 }
  0x2f   : > { %732 = vtanh.f32 %v347_v32 }
  0x30   : > { %734 = vtanh.f32 %v346_v35  ;;  %v353_v0 = vadd.f32 %v329_v57, %v853_v16  ;;  %v352_v5 = vadd.f32 %v329_v57, %v851_v15  ;;  %v457_v15 = vadd.s32 4294967288, %v831_v4 }
  0x31   : > { %736 = vtanh.f32 %v345_v37 }
  0x32   : > { %738 = vtanh.f32 %v344_v40  ;;  %v895_v20 = vsub.s32 %v457_v15, %v829_v3 }
  0x33   : > { %v721_v41 = vpop.eup %720  ;;  %740 = vtanh.f32 %v349_v45 }
  0x34   : > { %v723_v43 = vpop.eup %722  ;;  %v376_v44 = vmul.f32 %v721_v41, %v867_v39  ;;  %742 = vtanh.f32 %v348_v49 }
  0x35   : > { %v725_v47 = vpop.eup %724  ;;  %v377_v48 = vmul.f32 %v723_v43, %v867_v39  ;;  %744 = vtanh.f32 %v351_v56 }
  0x36   : > { %v727_v50 = vpop.eup %726  ;;  %392 = vadd.xlane.f32.xlu0 %v376_v44  ;;  %v378_v51 = vmul.f32 %v725_v47, %v867_v39  ;;  %746 = vtanh.f32 %v350_v60 }
  0x37   : > { %v729_v52 = vpop.eup %728  ;;  %v395_v53 = vsel %vm394_vm0, %v377_v48, 0.0  ;;  %v379_v54 = vmul.f32 %v727_v50, %v867_v39  ;;  %748 = vtanh.f32 %v353_v0 }
  0x38   : > { %v731_v55 = vpop.eup %730  ;;  %398 = vadd.xlane.f32.xlu1 %v378_v51  ;;  %v380_v62 = vmul.f32 %v729_v52, %v867_v39  ;;  %750 = vtanh.f32 %v352_v5 }
  0x39   : > { %v400_v58 = vsel %vm394_vm0, %v379_v54, 0.0  ;;  %v381_v59 = vmul.f32 %v731_v55, %v867_v39  ;;  %v733_v61 = vpop.eup %732 }
  0x3a   : > { %396 = vadd.xlane.f32.xlu0 %v395_v53  ;;  %v735_v63 = vpop.eup %734  ;;  %v385_v2 = vmul.f32 %v733_v61, %v867_v39 }
  0x3b   : > { %v405_v1 = vsel %vm394_vm0, %v381_v59, 0.0  ;;  %v737_v7 = vpop.eup %736  ;;  %v384_v8 = vmul.f32 %v735_v63, %v867_v39 }
  0x3c   : > { %401 = vadd.xlane.f32.xlu1 %v400_v58  ;;  %v739_v9 = vpop.eup %738  ;;  %v415_v10 = vsel %vm394_vm0, %v385_v2, 0.0  ;;  %v383_v11 = vmul.f32 %v737_v7, %v867_v39 }
  0x3d   : > { %v741_v12 = vpop.eup %740  ;;  %v382_v13 = vmul.f32 %v739_v9, %v867_v39 }
  0x3e   : > { %403 = vadd.xlane.f32.xlu0 %v380_v62  ;;  %v743_v14 = vpop.eup %742  ;;  %v410_v16 = vsel %vm394_vm0, %v383_v11, 0.0  ;;  %v387_v17 = vmul.f32 %v741_v12, %v867_v39  ;;  %v435_v11 = vstv %s241_s10 }
  0x3f   : > { %v745_v18 = vpop.eup %744  ;;  %v386_v19 = vmul.f32 %v743_v14, %v867_v39  ;;  %vm436_vm9 = vcmp.lt.s32.totalorder %v831_v4, %v435_v11  ;;  %v780_v4 = vmov 0.0  }
  0x40   : > { %406 = vadd.xlane.f32.xlu1 %v405_v1  ;;  %v747_v21 = vpop.eup %746  ;;  %v420_v22 = vsel %vm394_vm0, %v387_v17, 0.0  ;;  %v389_v23 = vmul.f32 %v745_v18, %v867_v39  ;;  %701 = vmatprep.subr.bf16.mxu0 %v780_v4 }
  0x41   : > { %v749_v24 = vpop.eup %748  ;;  %v388_v25 = vmul.f32 %v747_v21, %v867_v39  ;;  %703 = vmatprep.mubr.msk.bf16.mxu0 %vm781_vm12, %v780_v4 }
  0x42   : > { %413 = vadd.xlane.f32.xlu0 %v384_v8  ;;  %v751_v26 = vpop.eup %750  ;;  %v425_v27 = vsel %vm394_vm0, %v389_v23, 0.0  ;;  %v391_v28 = vmul.f32 %v749_v24, %v867_v39  ;;  %v246_v24 = vld [vmem:[%s235_s13 + $0x8] sm:$0xf] }
  0x43   : > { %v390_v3 = vmul.f32 %v751_v26, %v867_v39 }
  0x44   : > { %416 = vadd.xlane.f32.xlu1 %v415_v10  ;;  %v430_v29 = vsel %vm394_vm0, %v391_v28, 0.0 }
  0x46   : > { %408 = vadd.xlane.f32.xlu0 %v382_v13 }
  0x48   : > { %411 = vadd.xlane.f32.xlu1 %v410_v16 }
  0x4a   : > { %418 = vadd.xlane.f32.xlu0 %v386_v19 }
  0x4c   : > { %421 = vadd.xlane.f32.xlu1 %v420_v22 }
  0x4e   : > { %423 = vadd.xlane.f32.xlu0 %v388_v25 }
  0x50   : > { %426 = vadd.xlane.f32.xlu1 %v425_v27 }
  0x52   : > { %428 = vadd.xlane.f32.xlu0 %v390_v3 }
  0x54   : > { %431 = vadd.xlane.f32.xlu1 %v430_v29 }
  0xc3   : > { %v393_v30 = vpop.xlane.xlu0 %392 }
  0xc4   : > { %v456_v33 = vrot.slane %v393_v30, %v837_v6 }
  0xc5   : > { %v399_v31 = vpop.xlane.xlu1 %398 }
  0xc6   : > { %v467_v36 = vrot.slane %v399_v31, %v837_v6 }
  0xc7   : > { %v397_v32 = vpop.xlane.xlu0 %396 }
  0xc8   : > { %v461_v34 = vrot.slane %v397_v32, %v895_v20 }
  0xc9   : > { %v402_v35 = vpop.xlane.xlu1 %401 }
  0xca   : > { %v463_v37 = vsel %vm462_vm1, %v461_v34, %v456_v33  ;;  %v471_v38 = vrot.slane %v402_v35, %v895_v20 }
  0xcb   : > { %v404_v39 = vpop.xlane.xlu0 %403 }
  0xcc   : > { %v472_v40 = vsel %vm462_vm1, %v471_v38, %v467_v36  ;;  %v476_v41 = vrot.slane %v404_v39, %v837_v6 }
  0xcd   : > { %v528_v42 = vsel %vm527_vm2, %v472_v40, %v463_v37  ;;  %v407_v43 = vpop.xlane.xlu1 %406 }
  0xce   : > { %v480_v44 = vrot.slane %v407_v43, %v895_v20 }
  0xcf   : > { %v414_v45 = vpop.xlane.xlu0 %413 }
  0xd0   : > { %v481_v46 = vsel %vm462_vm1, %v480_v44, %v476_v41  ;;  %v494_v47 = vrot.slane %v414_v45, %v837_v6 }
  0xd1   : > { %v530_v48 = vsel %vm529_vm3, %v481_v46, %v528_v42  ;;  %v417_v49 = vpop.xlane.xlu1 %416 }
  0xd2   : > { %v498_v50 = vrot.slane %v417_v49, %v895_v20 }
  0xd3   : > { %v409_v51 = vpop.xlane.xlu0 %408 }
  0xd4   : > { %v499_v52 = vsel %vm462_vm1, %v498_v50, %v494_v47  ;;  %v485_v53 = vrot.slane %v409_v51, %v837_v6 }
  0xd5   : > { %v412_v54 = vpop.xlane.xlu1 %411 }
  0xd6   : > { %v489_v55 = vrot.slane %v412_v54, %v895_v20 }
  0xd7   : > { %v419_v56 = vpop.xlane.xlu0 %418 }
  0xd8   : > { %v490_v57 = vsel %vm462_vm1, %v489_v55, %v485_v53  ;;  %v503_v58 = vrot.slane %v419_v56, %v837_v6 }
  0xd9   : > { %v532_v59 = vsel %vm531_vm4, %v490_v57, %v530_v48  ;;  %v422_v60 = vpop.xlane.xlu1 %421 }
  0xda   : > { %v507_v61 = vrot.slane %v422_v60, %v895_v20  ;;  %v534_v62 = vsel %vm533_vm5, %v499_v52, %v532_v59 }
  0xdb   : > { %v424_v63 = vpop.xlane.xlu0 %423 }
  0xdc   : > { %v508_v0 = vsel %vm462_vm1, %v507_v61, %v503_v58  ;;  %v512_v1 = vrot.slane %v424_v63, %v837_v6 }
  0xdd   : > { %v427_v2 = vpop.xlane.xlu1 %426  ;;  %v536_v5 = vsel %vm535_vm6, %v508_v0, %v534_v62 }
  0xde   : > { %v516_v7 = vrot.slane %v427_v2, %v895_v20 }
  0xdf   : > { %v429_v8 = vpop.xlane.xlu0 %428 }
  0xe0   : > { %v517_v9 = vsel %vm462_vm1, %v516_v7, %v512_v1  ;;  %v521_v10 = vrot.slane %v429_v8, %v837_v6 }
  0xe1   : > { %v432_v12 = vpop.xlane.xlu1 %431  ;;  %v538_v13 = vsel %vm537_vm7, %v517_v9, %v536_v5 }
  0xe2   : > { %v525_v14 = vrot.slane %v432_v12, %v895_v20  ;;  %v245_v20 = vld [vmem:[%s235_s13] sm:$0xff] }
  0xe3   : > { %v556_v25 = vpack.c.bf16 %v246_v24, %v245_v20 }
  0xe4   : > { %v526_v15 = vsel %vm462_vm1, %v525_v14, %v521_v10 }
  0xe5   : > { %v540_v16 = vsel %vm539_vm8, %v526_v15, %v538_v13  ;;  %v562_v26 = vsel %vm560_vm11, %v556_v25, 0 }
  0xe6   : > { %v542_v17 = vsel %vm436_vm9, %v540_v16, -1e+30  ;;  %702 = vmatpush3.bf16.msra.mxu0 %v562_v26 }
  0xe7   : > { %v544_v18 = vsel %vm543_vm10, %v542_v17, -inf }
  0xe8   : > { %545 = vmax.xlane.f32.xlu0 %v544_v18 }
 0x175   : > { %v546_v19 = vpop.xlane.xlu0 %545 }
 0x176   : > { %v547_v21 = vsub.f32 %v542_v17, %v546_v19 }
 0x178   : > { %v548_v6 = vmul.f32 1.442695, %v547_v21 }
 0x17a   : > { %752 = vpow2.f32 %v548_v6 }
 0x184   : > { %v753_v22 = vpop.eup %752 }
 0x185   : > { %v550_v23 = vsel %vm543_vm10, %v753_v22, 0.0 }
 0x186   : > { %551 = vadd.xlane.f32.xlu1 %v550_v23 }
 0x213   : > { %v552_v27 = vpop.xlane.xlu1 %551 }
 0x214   : > { %754 = vrcp.f32 %v552_v27 }
 0x21e   : > { %v755_v28 = vpop.eup %754 }
 0x21f   : > { %v554_v3 = vmul.f32 %v755_v28, %v753_v22 }
 0x221   : > { %v555_v29 = vpack.c.bf16 %v554_v3, %v554_v3 }
 0x223   : > { %704 = vmatmul.mubr.msk.bf16.vlgmr.msra.gmra.mrb[0].mxu0 %vm543_vm10, %v555_v29 }
 0x2f6   : > { %v598_v30 = vpop.f32.mrb[0].mxu0 }
 0x2f7   : > { %604 = vst [vmem:[%s239_s16] sm:$0xff] %v598_v30  ;;  %v705_v31 = vpop.f32.mrb[1].mxu0 }
 0x2f8   : > { %v601_v32 = vpop.f32.mrb[2].mxu0 }
 0x2f9   : > { %v706_v33 = vpop.f32.mrb[3].mxu0 }
 0x2fa PF: > { %s21_s23 = sadd.s32 1, %s776_s23  }
 0x2fb   : > { %p18_p9 = scmp.ge.s32.totalorder %s21_s23, 10  }
 0x2fd   :  { %20 = sbr.rel (!%p18_p9) target bundleno = 16 (0x10), region = 72 }

</bundles_post_ra>
